<compile_context>
chip_gen: v5e
topology: v5e:2x2
jax: 0.10.0
libtpu: 0.0.40
codegen_flags: <defaults>
</compile_context>

<pallas_src>
import functools
import math

import jax
import jax.numpy as jnp
from jax.experimental import pallas as pl
from jax.experimental.pallas import tpu as pltpu

DEFAULT_CONFIG = {
    "Mc_n": 20,
    "Md_n": 20,
    "lambda_d": 0.7,
    "lambda_a": 100.0,
    "warmup_ratio": 0.5,
}


def _coherence_kernel(idx_ref, pcv_ref, q_ref, corr_ref, w_hbm, out_ref,
                      wbuf, sems, *, mc_n, mc_n_pad, vocab):
    """One topic per (sequential) grid step.

    idx_ref : (T*mc_n,)         int32 SMEM  top-Mc_n column indices per topic
    pcv_ref : (1, 8, mc_n_pad)  f32   VMEM  softmax(top-k beta) in row 0, zero pad
    q_ref   : (1, 1, V)         f32   VMEM  softmax(beta)^2 * diversity weight
    corr_ref: (1, 1, V)         f32   VMEM  dense fill_diagonal_(1) correction for s
    w_hbm   : (V, V)                  HBM   raw coherence weights (rows DMA-gathered)
    out_ref : (T, 1)            f32   SMEM  per-topic partial sums
    wbuf    : (2, mc_n_pad, V)        VMEM  double-buffered gathered W rows
    sems    : (2,)                          one DMA semaphore per slot
    """
    t = pl.program_id(0)
    num_t = pl.num_programs(0)
    slot = t % 2

    def start_gather(topic, s):
        base = topic * mc_n
        for k in range(mc_n):
            pltpu.make_async_copy(
                w_hbm.at[pl.ds(idx_ref[base + k], 1), :],
                wbuf.at[s, pl.ds(k, 1), :],
                sems.at[s],
            ).start()

    def wait_gather(s):
        # All mc_n row copies of this slot signal the same DMA semaphore (by
        # byte count); one wait whose descriptor covers the whole slot (same
        # total bytes) consumes them all.
        pltpu.make_async_copy(
            w_hbm.at[pl.ds(0, mc_n), :],
            wbuf.at[s, pl.ds(0, mc_n), :],
            sems.at[s],
        ).wait()

    @pl.when(t == 0)
    def _():
        # Zero the sublane-padding rows once so the MXU dot never reads
        # uninitialized VMEM (pcv's pad entries are 0, but 0 * NaN = NaN).
        if mc_n_pad > mc_n:                      # static Python
            pad = mc_n_pad - mc_n
            for s in range(2):
                wbuf[s, pl.ds(mc_n, pad), :] = jnp.zeros((pad, vocab), wbuf.dtype)
        start_gather(0, 0)                       # prologue: fill slot 0

    # Prefetch next topic's W rows into the other slot BEFORE waiting on the
    # current slot (the slots are disjoint) so the next DMA gets a head start.
    @pl.when(t + 1 < num_t)
    def _():
        start_gather(t + 1, 1 - slot)

    wait_gather(slot)

    # s[t, :] = softmax(beta + Mc)[t, :] @ W on the MXU.  Only row 0 of the
    # (8, mc_n_pad) pcv block is populated; the zero rows/columns contribute 0.
    w_rows = wbuf[slot]                                       # (mc_n_pad, V)
    pcv_blk = pcv_ref[0].astype(w_rows.dtype)                 # (8, mc_n_pad)
    s8 = jnp.dot(pcv_blk, w_rows, preferred_element_type=jnp.float32)
    s_row = s8[0:1, :] + corr_ref[0]                          # fold fill_diagonal_(1)

    # Wc = 1 - rowwise min/max normalization of s.
    # (A constant s row divides by zero -> NaN; the reference does the same.)
    smin = jnp.min(s_row, axis=1, keepdims=True)
    smax = jnp.max(s_row, axis=1, keepdims=True)
    wc = 1.0 - (s_row - smin) / (smax - smin)

    # Per-topic partial: sum(softmax(beta)^2 * md_weight * Wc).  The constants
    # 100, 2 and lambda_a are applied once in the wrapper.
    out_ref[t, 0] = jnp.sum(q_ref[0] * wc)


def coherence_loss(beta, coherence_weight, epoch, num_topics, num_epochs,
                   config=DEFAULT_CONFIG):
    assert 0.5 <= config["lambda_d"] <= 1.0

    beta = jnp.asarray(beta, jnp.float32)
    num_t, vocab = beta.shape
    mc_n = min(int(config["Mc_n"]), vocab)
    md_n = min(int(config["Md_n"]), vocab)
    mc_n_pad = ((mc_n + 7) // 8) * 8            # sublane-aligned gather slot
    lambda_d = float(config["lambda_d"])
    use_diversity = lambda_d > 0.5

    # W stays in HBM in its native dtype; pass bf16 to halve both the gather
    # HBM traffic and the VMEM gather buffer (recommended on v7x).
    w = jnp.asarray(coherence_weight)
    if w.dtype not in (jnp.float32, jnp.bfloat16):
        w = w.astype(jnp.float32)

    # Top-k per row.  softmax over the top-k values equals the dense
    # softmax(beta + Mc) at those positions because the -99999-masked entries
    # underflow to exactly 0 in f32.  (Ties in beta may break differently than
    # torch.topk.)
    top_vals, top_idx = jax.lax.top_k(beta, mc_n)
    pcv = jax.nn.softmax(top_vals, axis=1).astype(jnp.float32)     # (T, mc_n)
    idx_flat = top_idx.astype(jnp.int32).reshape(-1)               # (T*mc_n,)

    # pcv as a sublane-aligned (8, mc_n_pad) MXU LHS per topic (row 0 live).
    pcv_pad = jnp.zeros((num_t, 8, mc_n_pad), jnp.float32)
    pcv_pad = pcv_pad.at[:, 0, :mc_n].set(pcv)

    # fill_diagonal_(1) folded into a dense per-topic correction row:
    #   s_fixed = s_raw + corr,  corr[t, idx[t,k]] = pcv[t,k] * (1 - W[idx,idx]).
    rows = jnp.arange(num_t)[:, None]
    diag_w = w[top_idx, top_idx].astype(jnp.float32)               # (T, mc_n)
    corr = jnp.zeros((num_t, vocab), jnp.float32)
    corr = corr.at[rows, top_idx].add(pcv * (1.0 - diag_w))

    # Diversity weights (lambda_d where the word is in the top-Md_n of some
    # OTHER topic, 1 - lambda_d elsewhere), fused with softmax(beta)^2 into a
    # single per-topic input q so the kernel never re-does the softmax.
    p = jax.nn.softmax(beta, axis=1)
    if use_diversity:
        md_idx = top_idx if md_n == mc_n else jax.lax.top_k(beta, md_n)[1]
        md_mask = jnp.zeros((num_t, vocab), jnp.float32).at[rows, md_idx].set(1.0)
        col_cnt = jnp.sum(md_mask, axis=0, keepdims=True)
        md = (col_cnt - md_mask) > 0.0
        md_w = jnp.where(md, lambda_d, 1.0 - lambda_d)
    else:
        md_w = jnp.ones((num_t, vocab), jnp.float32)
    q = (p * p * md_w).astype(jnp.float32)

    # (T, 1, V) so the per-topic block (1, 1, V) satisfies the (8, 128) tiling
    # rule on its last two dims (second-to-last equals the full dim).
    q3 = q.reshape(num_t, 1, vocab)
    corr3 = corr.reshape(num_t, 1, vocab)

    # Warmup schedule for lambda_a (epoch must be a static Python int here).
    warmup_epochs = math.floor(config["warmup_ratio"] * num_epochs)
    if warmup_epochs > 0 and epoch < warmup_epochs:
        lambda_a = epoch * (config["lambda_a"] / warmup_epochs)
    else:
        lambda_a = config["lambda_a"]
    final_scale = float(lambda_a) * 100.0 * (2.0 if use_diversity else 1.0)

    kernel = functools.partial(
        _coherence_kernel, mc_n=mc_n, mc_n_pad=mc_n_pad, vocab=vocab)

    itemsize = jnp.dtype(w.dtype).itemsize
    wbuf_bytes = 2 * mc_n_pad * vocab * itemsize
    pipe_bytes = 2 * (2 * vocab * 4 + 8 * mc_n_pad * 4)  # q/corr/pcv double buffers
    vmem_limit = min(wbuf_bytes + pipe_bytes + (2 << 20), 100 << 20)

    gather_bytes = num_t * mc_n * vocab * itemsize
    cost = pl.CostEstimate(
        flops=int(2 * num_t * mc_n_pad * vocab + 8 * num_t * vocab),
        transcendentals=int(num_t * vocab),
        bytes_accessed=int(gather_bytes + 2 * num_t * vocab * 4),
    )

    partials = pl.pallas_call(
        kernel,
        out_shape=jax.ShapeDtypeStruct((num_t, 1), jnp.float32),
        grid=(num_t,),
        in_specs=[
            pl.BlockSpec(memory_space=pltpu.MemorySpace.SMEM),         # top-k idx
            pl.BlockSpec((1, 8, mc_n_pad), lambda t: (t, 0, 0)),       # pcv (MXU LHS)
            pl.BlockSpec((1, 1, vocab), lambda t: (t, 0, 0)),          # q
            pl.BlockSpec((1, 1, vocab), lambda t: (t, 0, 0)),          # corr
            pl.BlockSpec(memory_space=pl.ANY),                         # W stays in HBM
        ],
        out_specs=pl.BlockSpec(memory_space=pltpu.MemorySpace.SMEM),   # (T, 1) partials
        scratch_shapes=[
            pltpu.VMEM((2, mc_n_pad, vocab), w.dtype),                 # 2-slot gather buffer
            pltpu.SemaphoreType.DMA((2,)),                             # one sem per slot
        ],
        compiler_params=pltpu.CompilerParams(
            # The cross-step double-buffered W gather (prologue at t == 0)
            # requires sequential grid execution, hence "arbitrary".
            dimension_semantics=("arbitrary",),
            vmem_limit_bytes=int(vmem_limit),
        ),
        cost_estimate=cost,
    )(idx_flat, pcv_pad, q3, corr3, w)

    return final_scale * jnp.sum(partials)


def coherence_loss_ref(beta, coherence_weight, epoch, num_topics, num_epochs,
                       config=DEFAULT_CONFIG):
    """Pure-JAX reference mirroring the PyTorch forward (for verification)."""
    beta = jnp.asarray(beta, jnp.float32)
    num_t, vocab = beta.shape
    w = jnp.where(jnp.eye(vocab, dtype=bool), 1.0,
                  jnp.asarray(coherence_weight, jnp.float32))

    def topk_mask(x, k):
        _, idx = jax.lax.top_k(x, k)
        rows = jnp.arange(x.shape[0])[:, None]
        return jnp.zeros_like(x).at[rows, idx].set(1.0)

    mc = (1.0 - topk_mask(beta, min(int(config["Mc_n"]), vocab))) * -99999.0
    s = jax.nn.softmax(beta + mc, axis=1) @ w
    smin = jnp.min(s, axis=1, keepdims=True)
    smax = jnp.max(s, axis=1, keepdims=True)
    wc = 1.0 - (s - smin) / (smax - smin)
    loss = 100.0 * jax.nn.softmax(beta, axis=1) ** 2 * wc

    lambda_d = float(config["lambda_d"])
    if lambda_d > 0.5:
        md_mask = topk_mask(beta, min(int(config["Md_n"]), vocab))
        col = jnp.sum(md_mask, axis=0, keepdims=True)
        md = (col - md_mask) > 0.0
        loss = (jnp.sum(jnp.where(md, loss, 0.0)) * lambda_d
                + jnp.sum(jnp.where(md, 0.0, loss)) * (1.0 - lambda_d)) * 2.0

    warmup_epochs = math.floor(config["warmup_ratio"] * num_epochs)
    if warmup_epochs > 0 and epoch < warmup_epochs:
        lambda_a = epoch * (config["lambda_a"] / warmup_epochs)
    else:
        lambda_a = config["lambda_a"]
    return lambda_a * jnp.sum(loss)


if __name__ == "__main__":
    num_topics = 8
    vocab = 128
    num_epochs = 10
    epoch = 3

    key = jax.random.PRNGKey(0)
    k_beta, k_w = jax.random.split(key)

    # beta: unnormalized topic-word logits (num_topics, vocab)
    beta = jax.random.normal(k_beta, (num_topics, vocab), dtype=jnp.float32)

    # deterministic synthetic symmetric coherence weights in [0, 1]
    cw = jax.random.uniform(k_w, (vocab, vocab), dtype=jnp.float32)
    coherence_weight = 0.5 * (cw + cw.T)

    out = coherence_loss(beta, coherence_weight, epoch, num_topics, num_epochs)
    out = jax.block_until_ready(out)

    ref = coherence_loss_ref(beta, coherence_weight, epoch, num_topics, num_epochs)
    ref = jax.block_until_ready(ref)

    assert jnp.allclose(out, ref, rtol=1e-3, atol=1e-3), (out, ref)
    print("KERNEL_OK")
</pallas_src>

<mosaic_0001>
module attributes {stable_mosaic.version = 11 : i64} {
  func.func @_coherence_kernel(%arg0: i32, %arg1: memref<160xi32, #tpu.memory_space<smem>>, %arg2: memref<1x8x24xf32, #tpu.memory_space<vmem>>, %arg3: memref<1x1x128xf32, #tpu.memory_space<vmem>>, %arg4: memref<1x1x128xf32, #tpu.memory_space<vmem>>, %arg5: memref<128x128xf32, #tpu.memory_space<any>>, %arg6: memref<8x1xf32, #tpu.memory_space<smem>>, %arg7: memref<2x24x128xf32, #tpu.memory_space<vmem>>, %arg8: memref<2x!tpu.dma_semaphore, #tpu.memory_space<semaphore_mem>>) attributes {dimension_semantics = [#tpu.dimension_semantics<arbitrary>], iteration_bounds = array<i64: 8>, scalar_prefetch = 0 : i64, scratch_operands = 2 : i64, tpu.core_type = #tpu.core_type<tc>, window_params = [{transform_indices = @transform_0, window_bounds = array<i64: 160>}, {transform_indices = @transform_1, window_bounds = array<i64: 1, 8, 24>}, {transform_indices = @transform_2, window_bounds = array<i64: 1, 1, 128>}, {transform_indices = @transform_3, window_bounds = array<i64: 1, 1, 128>}, {}, {transform_indices = @transform_5, window_bounds = array<i64: 8, 1>}]} {
    %c2_i32 = arith.constant 2 : i32
    %c0_i32 = arith.constant 0 : i32
    %0 = arith.cmpi eq, %c2_i32, %c0_i32 : i32
    %c1_i32 = arith.constant 1 : i32
    %1 = arith.select %0, %c1_i32, %c2_i32 : i32
    %2 = arith.remsi %arg0, %1 : i32
    %c0_i32_0 = arith.constant 0 : i32
    %3 = arith.cmpi ne, %2, %c0_i32_0 : i32
    %c0_i32_1 = arith.constant 0 : i32
    %4 = arith.cmpi slt, %2, %c0_i32_1 : i32
    %c0_i32_2 = arith.constant 0 : i32
    %5 = arith.cmpi slt, %1, %c0_i32_2 : i32
    %6 = arith.xori %4, %5 : i1
    %7 = arith.andi %6, %3 : i1
    %8 = arith.addi %2, %1 : i32
    %9 = arith.select %7, %8, %2 : i32
    %c0_i32_3 = arith.constant 0 : i32
    %10 = arith.cmpi eq, %arg0, %c0_i32_3 : i32
    %11 = arith.extui %10 : i1 to i32
    %c0_i32_4 = arith.constant 0 : i32
    %12 = arith.cmpi ne, %11, %c0_i32_4 : i32
    scf.if %12 {
      %cst_26 = arith.constant 0.000000e+00 : f32
      %52 = vector.broadcast %cst_26 : f32 to vector<4x128xf32>
      %c0_27 = arith.constant 0 : index
      %c20 = arith.constant 20 : index
      %c0_28 = arith.constant 0 : index
      %53 = vector.load %arg7[%c0_27, %c20, %c0_28] : memref<2x24x128xf32, #tpu.memory_space<vmem>>, vector<1x4x128xf32>
      %54 = vector.shape_cast %53 : vector<1x4x128xf32> to vector<4x128xf32>
      %55 = vector.shape_cast %52 : vector<4x128xf32> to vector<1x4x128xf32>
      tpu.vector_store %arg7[%c0_27, %c20, %c0_28], %55 {strides = array<i32>} : memref<2x24x128xf32, #tpu.memory_space<vmem>>, vector<1x4x128xf32>,
      %cst_29 = arith.constant 0.000000e+00 : f32
      %56 = vector.broadcast %cst_29 : f32 to vector<4x128xf32>
      %c1 = arith.constant 1 : index
      %c20_30 = arith.constant 20 : index
      %c0_31 = arith.constant 0 : index
      %57 = vector.load %arg7[%c1, %c20_30, %c0_31] : memref<2x24x128xf32, #tpu.memory_space<vmem>>, vector<1x4x128xf32>
      %58 = vector.shape_cast %57 : vector<1x4x128xf32> to vector<4x128xf32>
      %59 = vector.shape_cast %56 : vector<4x128xf32> to vector<1x4x128xf32>
      tpu.vector_store %arg7[%c1, %c20_30, %c0_31], %59 {strides = array<i32>} : memref<2x24x128xf32, #tpu.memory_space<vmem>>, vector<1x4x128xf32>,
      %c0_32 = arith.constant 0 : index
      %60 = memref.load %arg1[%c0_32] : memref<160xi32, #tpu.memory_space<smem>>
      %c0_i32_33 = arith.constant 0 : i32
      %c0_i32_34 = arith.constant 0 : i32
      %c0_i32_35 = arith.constant 0 : i32
      %61 = tpu.memref_slice %arg5[%60, %c0_i32_35] : memref<128x128xf32, #tpu.memory_space<any>> -> memref<1x128xf32, #tpu.memory_space<any>>
      %c0_i32_36 = arith.constant 0 : i32
      %c0_i32_37 = arith.constant 0 : i32
      %62 = tpu.memref_slice %arg7[%c0_i32_33, %c0_i32_36, %c0_i32_37] : memref<2x24x128xf32, #tpu.memory_space<vmem>> -> memref<1x1x128xf32, #tpu.memory_space<vmem>>
      %63 = tpu.memref_squeeze %62 : memref<1x1x128xf32, #tpu.memory_space<vmem>> -> memref<1x128xf32, #tpu.memory_space<vmem>>
      %64 = tpu.memref_slice %arg8[%c0_i32_34] : memref<2x!tpu.dma_semaphore, #tpu.memory_space<semaphore_mem>> -> memref<1x!tpu.dma_semaphore, #tpu.memory_space<semaphore_mem>>
      %65 = tpu.memref_squeeze %64 : memref<1x!tpu.dma_semaphore, #tpu.memory_space<semaphore_mem>> -> memref<!tpu.dma_semaphore, #tpu.memory_space<semaphore_mem>>
      tpu.enqueue_dma source(%61 : memref<1x128xf32, #tpu.memory_space<any>>) target(%63 : memref<1x128xf32, #tpu.memory_space<vmem>>) target_semaphore(%65 : memref<!tpu.dma_semaphore, #tpu.memory_space<semaphore_mem>>)
      %c1_38 = arith.constant 1 : index
      %66 = memref.load %arg1[%c1_38] : memref<160xi32, #tpu.memory_space<smem>>
      %c0_i32_39 = arith.constant 0 : i32
      %c0_i32_40 = arith.constant 0 : i32
      %c0_i32_41 = arith.constant 0 : i32
      %67 = tpu.memref_slice %arg5[%66, %c0_i32_41] : memref<128x128xf32, #tpu.memory_space<any>> -> memref<1x128xf32, #tpu.memory_space<any>>
      %c1_i32_42 = arith.constant 1 : i32
      %c0_i32_43 = arith.constant 0 : i32
      %68 = tpu.memref_slice %arg7[%c0_i32_39, %c1_i32_42, %c0_i32_43] : memref<2x24x128xf32, #tpu.memory_space<vmem>> -> memref<1x1x128xf32, #tpu.memory_space<vmem>>
      %69 = tpu.memref_squeeze %68 : memref<1x1x128xf32, #tpu.memory_space<vmem>> -> memref<1x128xf32, #tpu.memory_space<vmem>>
      %70 = tpu.memref_slice %arg8[%c0_i32_40] : memref<2x!tpu.dma_semaphore, #tpu.memory_space<semaphore_mem>> -> memref<1x!tpu.dma_semaphore, #tpu.memory_space<semaphore_mem>>
      %71 = tpu.memref_squeeze %70 : memref<1x!tpu.dma_semaphore, #tpu.memory_space<semaphore_mem>> -> memref<!tpu.dma_semaphore, #tpu.memory_space<semaphore_mem>>
      tpu.enqueue_dma source(%67 : memref<1x128xf32, #tpu.memory_space<any>>) target(%69 : memref<1x128xf32, #tpu.memory_space<vmem>>) target_semaphore(%71 : memref<!tpu.dma_semaphore, #tpu.memory_space<semaphore_mem>>)
      %c2 = arith.constant 2 : index
      %72 = memref.load %arg1[%c2] : memref<160xi32, #tpu.memory_space<smem>>
      %c0_i32_44 = arith.constant 0 : i32
      %c0_i32_45 = arith.constant 0 : i32
      %c0_i32_46 = arith.constant 0 : i32
      %73 = tpu.memref_slice %arg5[%72, %c0_i32_46] : memref<128x128xf32, #tpu.memory_space<any>> -> memref<1x128xf32, #tpu.memory_space<any>>
      %c2_i32_47 = arith.constant 2 : i32
      %c0_i32_48 = arith.constant 0 : i32
      %74 = tpu.memref_slice %arg7[%c0_i32_44, %c2_i32_47, %c0_i32_48] : memref<2x24x128xf32, #tpu.memory_space<vmem>> -> memref<1x1x128xf32, #tpu.memory_space<vmem>>
      %75 = tpu.memref_squeeze %74 : memref<1x1x128xf32, #tpu.memory_space<vmem>> -> memref<1x128xf32, #tpu.memory_space<vmem>>
      %76 = tpu.memref_slice %arg8[%c0_i32_45] : memref<2x!tpu.dma_semaphore, #tpu.memory_space<semaphore_mem>> -> memref<1x!tpu.dma_semaphore, #tpu.memory_space<semaphore_mem>>
      %77 = tpu.memref_squeeze %76 : memref<1x!tpu.dma_semaphore, #tpu.memory_space<semaphore_mem>> -> memref<!tpu.dma_semaphore, #tpu.memory_space<semaphore_mem>>
      tpu.enqueue_dma source(%73 : memref<1x128xf32, #tpu.memory_space<any>>) target(%75 : memref<1x128xf32, #tpu.memory_space<vmem>>) target_semaphore(%77 : memref<!tpu.dma_semaphore, #tpu.memory_space<semaphore_mem>>)
      %c3 = arith.constant 3 : index
      %78 = memref.load %arg1[%c3] : memref<160xi32, #tpu.memory_space<smem>>
      %c0_i32_49 = arith.constant 0 : i32
      %c0_i32_50 = arith.constant 0 : i32
      %c0_i32_51 = arith.constant 0 : i32
      %79 = tpu.memref_slice %arg5[%78, %c0_i32_51] : memref<128x128xf32, #tpu.memory_space<any>> -> memref<1x128xf32, #tpu.memory_space<any>>
      %c3_i32 = arith.constant 3 : i32
      %c0_i32_52 = arith.constant 0 : i32
      %80 = tpu.memref_slice %arg7[%c0_i32_49, %c3_i32, %c0_i32_52] : memref<2x24x128xf32, #tpu.memory_space<vmem>> -> memref<1x1x128xf32, #tpu.memory_space<vmem>>
      %81 = tpu.memref_squeeze %80 : memref<1x1x128xf32, #tpu.memory_space<vmem>> -> memref<1x128xf32, #tpu.memory_space<vmem>>
      %82 = tpu.memref_slice %arg8[%c0_i32_50] : memref<2x!tpu.dma_semaphore, #tpu.memory_space<semaphore_mem>> -> memref<1x!tpu.dma_semaphore, #tpu.memory_space<semaphore_mem>>
      %83 = tpu.memref_squeeze %82 : memref<1x!tpu.dma_semaphore, #tpu.memory_space<semaphore_mem>> -> memref<!tpu.dma_semaphore, #tpu.memory_space<semaphore_mem>>
      tpu.enqueue_dma source(%79 : memref<1x128xf32, #tpu.memory_space<any>>) target(%81 : memref<1x128xf32, #tpu.memory_space<vmem>>) target_semaphore(%83 : memref<!tpu.dma_semaphore, #tpu.memory_space<semaphore_mem>>)
      %c4 = arith.constant 4 : index
      %84 = memref.load %arg1[%c4] : memref<160xi32, #tpu.memory_space<smem>>
      %c0_i32_53 = arith.constant 0 : i32
      %c0_i32_54 = arith.constant 0 : i32
      %c0_i32_55 = arith.constant 0 : i32
      %85 = tpu.memref_slice %arg5[%84, %c0_i32_55] : memref<128x128xf32, #tpu.memory_space<any>> -> memref<1x128xf32, #tpu.memory_space<any>>
      %c4_i32 = arith.constant 4 : i32
      %c0_i32_56 = arith.constant 0 : i32
      %86 = tpu.memref_slice %arg7[%c0_i32_53, %c4_i32, %c0_i32_56] : memref<2x24x128xf32, #tpu.memory_space<vmem>> -> memref<1x1x128xf32, #tpu.memory_space<vmem>>
      %87 = tpu.memref_squeeze %86 : memref<1x1x128xf32, #tpu.memory_space<vmem>> -> memref<1x128xf32, #tpu.memory_space<vmem>>
      %88 = tpu.memref_slice %arg8[%c0_i32_54] : memref<2x!tpu.dma_semaphore, #tpu.memory_space<semaphore_mem>> -> memref<1x!tpu.dma_semaphore, #tpu.memory_space<semaphore_mem>>
      %89 = tpu.memref_squeeze %88 : memref<1x!tpu.dma_semaphore, #tpu.memory_space<semaphore_mem>> -> memref<!tpu.dma_semaphore, #tpu.memory_space<semaphore_mem>>
      tpu.enqueue_dma source(%85 : memref<1x128xf32, #tpu.memory_space<any>>) target(%87 : memref<1x128xf32, #tpu.memory_space<vmem>>) target_semaphore(%89 : memref<!tpu.dma_semaphore, #tpu.memory_space<semaphore_mem>>)
      %c5 = arith.constant 5 : index
      %90 = memref.load %arg1[%c5] : memref<160xi32, #tpu.memory_space<smem>>
      %c0_i32_57 = arith.constant 0 : i32
      %c0_i32_58 = arith.constant 0 : i32
      %c0_i32_59 = arith.constant 0 : i32
      %91 = tpu.memref_slice %arg5[%90, %c0_i32_59] : memref<128x128xf32, #tpu.memory_space<any>> -> memref<1x128xf32, #tpu.memory_space<any>>
      %c5_i32 = arith.constant 5 : i32
      %c0_i32_60 = arith.constant 0 : i32
      %92 = tpu.memref_slice %arg7[%c0_i32_57, %c5_i32, %c0_i32_60] : memref<2x24x128xf32, #tpu.memory_space<vmem>> -> memref<1x1x128xf32, #tpu.memory_space<vmem>>
      %93 = tpu.memref_squeeze %92 : memref<1x1x128xf32, #tpu.memory_space<vmem>> -> memref<1x128xf32, #tpu.memory_space<vmem>>
      %94 = tpu.memref_slice %arg8[%c0_i32_58] : memref<2x!tpu.dma_semaphore, #tpu.memory_space<semaphore_mem>> -> memref<1x!tpu.dma_semaphore, #tpu.memory_space<semaphore_mem>>
      %95 = tpu.memref_squeeze %94 : memref<1x!tpu.dma_semaphore, #tpu.memory_space<semaphore_mem>> -> memref<!tpu.dma_semaphore, #tpu.memory_space<semaphore_mem>>
      tpu.enqueue_dma source(%91 : memref<1x128xf32, #tpu.memory_space<any>>) target(%93 : memref<1x128xf32, #tpu.memory_space<vmem>>) target_semaphore(%95 : memref<!tpu.dma_semaphore, #tpu.memory_space<semaphore_mem>>)
      %c6 = arith.constant 6 : index
      %96 = memref.load %arg1[%c6] : memref<160xi32, #tpu.memory_space<smem>>
      %c0_i32_61 = arith.constant 0 : i32
      %c0_i32_62 = arith.constant 0 : i32
      %c0_i32_63 = arith.constant 0 : i32
      %97 = tpu.memref_slice %arg5[%96, %c0_i32_63] : memref<128x128xf32, #tpu.memory_space<any>> -> memref<1x128xf32, #tpu.memory_space<any>>
      %c6_i32 = arith.constant 6 : i32
      %c0_i32_64 = arith.constant 0 : i32
      %98 = tpu.memref_slice %arg7[%c0_i32_61, %c6_i32, %c0_i32_64] : memref<2x24x128xf32, #tpu.memory_space<vmem>> -> memref<1x1x128xf32, #tpu.memory_space<vmem>>
      %99 = tpu.memref_squeeze %98 : memref<1x1x128xf32, #tpu.memory_space<vmem>> -> memref<1x128xf32, #tpu.memory_space<vmem>>
      %100 = tpu.memref_slice %arg8[%c0_i32_62] : memref<2x!tpu.dma_semaphore, #tpu.memory_space<semaphore_mem>> -> memref<1x!tpu.dma_semaphore, #tpu.memory_space<semaphore_mem>>
      %101 = tpu.memref_squeeze %100 : memref<1x!tpu.dma_semaphore, #tpu.memory_space<semaphore_mem>> -> memref<!tpu.dma_semaphore, #tpu.memory_space<semaphore_mem>>
      tpu.enqueue_dma source(%97 : memref<1x128xf32, #tpu.memory_space<any>>) target(%99 : memref<1x128xf32, #tpu.memory_space<vmem>>) target_semaphore(%101 : memref<!tpu.dma_semaphore, #tpu.memory_space<semaphore_mem>>)
      %c7 = arith.constant 7 : index
      %102 = memref.load %arg1[%c7] : memref<160xi32, #tpu.memory_space<smem>>
      %c0_i32_65 = arith.constant 0 : i32
      %c0_i32_66 = arith.constant 0 : i32
      %c0_i32_67 = arith.constant 0 : i32
      %103 = tpu.memref_slice %arg5[%102, %c0_i32_67] : memref<128x128xf32, #tpu.memory_space<any>> -> memref<1x128xf32, #tpu.memory_space<any>>
      %c7_i32 = arith.constant 7 : i32
      %c0_i32_68 = arith.constant 0 : i32
      %104 = tpu.memref_slice %arg7[%c0_i32_65, %c7_i32, %c0_i32_68] : memref<2x24x128xf32, #tpu.memory_space<vmem>> -> memref<1x1x128xf32, #tpu.memory_space<vmem>>
      %105 = tpu.memref_squeeze %104 : memref<1x1x128xf32, #tpu.memory_space<vmem>> -> memref<1x128xf32, #tpu.memory_space<vmem>>
      %106 = tpu.memref_slice %arg8[%c0_i32_66] : memref<2x!tpu.dma_semaphore, #tpu.memory_space<semaphore_mem>> -> memref<1x!tpu.dma_semaphore, #tpu.memory_space<semaphore_mem>>
      %107 = tpu.memref_squeeze %106 : memref<1x!tpu.dma_semaphore, #tpu.memory_space<semaphore_mem>> -> memref<!tpu.dma_semaphore, #tpu.memory_space<semaphore_mem>>
      tpu.enqueue_dma source(%103 : memref<1x128xf32, #tpu.memory_space<any>>) target(%105 : memref<1x128xf32, #tpu.memory_space<vmem>>) target_semaphore(%107 : memref<!tpu.dma_semaphore, #tpu.memory_space<semaphore_mem>>)
      %c8 = arith.constant 8 : index
      %108 = memref.load %arg1[%c8] : memref<160xi32, #tpu.memory_space<smem>>
      %c0_i32_69 = arith.constant 0 : i32
      %c0_i32_70 = arith.constant 0 : i32
      %c0_i32_71 = arith.constant 0 : i32
      %109 = tpu.memref_slice %arg5[%108, %c0_i32_71] : memref<128x128xf32, #tpu.memory_space<any>> -> memref<1x128xf32, #tpu.memory_space<any>>
      %c8_i32_72 = arith.constant 8 : i32
      %c0_i32_73 = arith.constant 0 : i32
      %110 = tpu.memref_slice %arg7[%c0_i32_69, %c8_i32_72, %c0_i32_73] : memref<2x24x128xf32, #tpu.memory_space<vmem>> -> memref<1x1x128xf32, #tpu.memory_space<vmem>>
      %111 = tpu.memref_squeeze %110 : memref<1x1x128xf32, #tpu.memory_space<vmem>> -> memref<1x128xf32, #tpu.memory_space<vmem>>
      %112 = tpu.memref_slice %arg8[%c0_i32_70] : memref<2x!tpu.dma_semaphore, #tpu.memory_space<semaphore_mem>> -> memref<1x!tpu.dma_semaphore, #tpu.memory_space<semaphore_mem>>
      %113 = tpu.memref_squeeze %112 : memref<1x!tpu.dma_semaphore, #tpu.memory_space<semaphore_mem>> -> memref<!tpu.dma_semaphore, #tpu.memory_space<semaphore_mem>>
      tpu.enqueue_dma source(%109 : memref<1x128xf32, #tpu.memory_space<any>>) target(%111 : memref<1x128xf32, #tpu.memory_space<vmem>>) target_semaphore(%113 : memref<!tpu.dma_semaphore, #tpu.memory_space<semaphore_mem>>)
      %c9 = arith.constant 9 : index
      %114 = memref.load %arg1[%c9] : memref<160xi32, #tpu.memory_space<smem>>
      %c0_i32_74 = arith.constant 0 : i32
      %c0_i32_75 = arith.constant 0 : i32
      %c0_i32_76 = arith.constant 0 : i32
      %115 = tpu.memref_slice %arg5[%114, %c0_i32_76] : memref<128x128xf32, #tpu.memory_space<any>> -> memref<1x128xf32, #tpu.memory_space<any>>
      %c9_i32 = arith.constant 9 : i32
      %c0_i32_77 = arith.constant 0 : i32
      %116 = tpu.memref_slice %arg7[%c0_i32_74, %c9_i32, %c0_i32_77] : memref<2x24x128xf32, #tpu.memory_space<vmem>> -> memref<1x1x128xf32, #tpu.memory_space<vmem>>
      %117 = tpu.memref_squeeze %116 : memref<1x1x128xf32, #tpu.memory_space<vmem>> -> memref<1x128xf32, #tpu.memory_space<vmem>>
      %118 = tpu.memref_slice %arg8[%c0_i32_75] : memref<2x!tpu.dma_semaphore, #tpu.memory_space<semaphore_mem>> -> memref<1x!tpu.dma_semaphore, #tpu.memory_space<semaphore_mem>>
      %119 = tpu.memref_squeeze %118 : memref<1x!tpu.dma_semaphore, #tpu.memory_space<semaphore_mem>> -> memref<!tpu.dma_semaphore, #tpu.memory_space<semaphore_mem>>
      tpu.enqueue_dma source(%115 : memref<1x128xf32, #tpu.memory_space<any>>) target(%117 : memref<1x128xf32, #tpu.memory_space<vmem>>) target_semaphore(%119 : memref<!tpu.dma_semaphore, #tpu.memory_space<semaphore_mem>>)
      %c10 = arith.constant 10 : index
      %120 = memref.load %arg1[%c10] : memref<160xi32, #tpu.memory_space<smem>>
      %c0_i32_78 = arith.constant 0 : i32
      %c0_i32_79 = arith.constant 0 : i32
      %c0_i32_80 = arith.constant 0 : i32
      %121 = tpu.memref_slice %arg5[%120, %c0_i32_80] : memref<128x128xf32, #tpu.memory_space<any>> -> memref<1x128xf32, #tpu.memory_space<any>>
      %c10_i32 = arith.constant 10 : i32
      %c0_i32_81 = arith.constant 0 : i32
      %122 = tpu.memref_slice %arg7[%c0_i32_78, %c10_i32, %c0_i32_81] : memref<2x24x128xf32, #tpu.memory_space<vmem>> -> memref<1x1x128xf32, #tpu.memory_space<vmem>>
      %123 = tpu.memref_squeeze %122 : memref<1x1x128xf32, #tpu.memory_space<vmem>> -> memref<1x128xf32, #tpu.memory_space<vmem>>
      %124 = tpu.memref_slice %arg8[%c0_i32_79] : memref<2x!tpu.dma_semaphore, #tpu.memory_space<semaphore_mem>> -> memref<1x!tpu.dma_semaphore, #tpu.memory_space<semaphore_mem>>
      %125 = tpu.memref_squeeze %124 : memref<1x!tpu.dma_semaphore, #tpu.memory_space<semaphore_mem>> -> memref<!tpu.dma_semaphore, #tpu.memory_space<semaphore_mem>>
      tpu.enqueue_dma source(%121 : memref<1x128xf32, #tpu.memory_space<any>>) target(%123 : memref<1x128xf32, #tpu.memory_space<vmem>>) target_semaphore(%125 : memref<!tpu.dma_semaphore, #tpu.memory_space<semaphore_mem>>)
      %c11 = arith.constant 11 : index
      %126 = memref.load %arg1[%c11] : memref<160xi32, #tpu.memory_space<smem>>
      %c0_i32_82 = arith.constant 0 : i32
      %c0_i32_83 = arith.constant 0 : i32
      %c0_i32_84 = arith.constant 0 : i32
      %127 = tpu.memref_slice %arg5[%126, %c0_i32_84] : memref<128x128xf32, #tpu.memory_space<any>> -> memref<1x128xf32, #tpu.memory_space<any>>
      %c11_i32 = arith.constant 11 : i32
      %c0_i32_85 = arith.constant 0 : i32
      %128 = tpu.memref_slice %arg7[%c0_i32_82, %c11_i32, %c0_i32_85] : memref<2x24x128xf32, #tpu.memory_space<vmem>> -> memref<1x1x128xf32, #tpu.memory_space<vmem>>
      %129 = tpu.memref_squeeze %128 : memref<1x1x128xf32, #tpu.memory_space<vmem>> -> memref<1x128xf32, #tpu.memory_space<vmem>>
      %130 = tpu.memref_slice %arg8[%c0_i32_83] : memref<2x!tpu.dma_semaphore, #tpu.memory_space<semaphore_mem>> -> memref<1x!tpu.dma_semaphore, #tpu.memory_space<semaphore_mem>>
      %131 = tpu.memref_squeeze %130 : memref<1x!tpu.dma_semaphore, #tpu.memory_space<semaphore_mem>> -> memref<!tpu.dma_semaphore, #tpu.memory_space<semaphore_mem>>
      tpu.enqueue_dma source(%127 : memref<1x128xf32, #tpu.memory_space<any>>) target(%129 : memref<1x128xf32, #tpu.memory_space<vmem>>) target_semaphore(%131 : memref<!tpu.dma_semaphore, #tpu.memory_space<semaphore_mem>>)
      %c12 = arith.constant 12 : index
      %132 = memref.load %arg1[%c12] : memref<160xi32, #tpu.memory_space<smem>>
      %c0_i32_86 = arith.constant 0 : i32
      %c0_i32_87 = arith.constant 0 : i32
      %c0_i32_88 = arith.constant 0 : i32
      %133 = tpu.memref_slice %arg5[%132, %c0_i32_88] : memref<128x128xf32, #tpu.memory_space<any>> -> memref<1x128xf32, #tpu.memory_space<any>>
      %c12_i32 = arith.constant 12 : i32
      %c0_i32_89 = arith.constant 0 : i32
      %134 = tpu.memref_slice %arg7[%c0_i32_86, %c12_i32, %c0_i32_89] : memref<2x24x128xf32, #tpu.memory_space<vmem>> -> memref<1x1x128xf32, #tpu.memory_space<vmem>>
      %135 = tpu.memref_squeeze %134 : memref<1x1x128xf32, #tpu.memory_space<vmem>> -> memref<1x128xf32, #tpu.memory_space<vmem>>
      %136 = tpu.memref_slice %arg8[%c0_i32_87] : memref<2x!tpu.dma_semaphore, #tpu.memory_space<semaphore_mem>> -> memref<1x!tpu.dma_semaphore, #tpu.memory_space<semaphore_mem>>
      %137 = tpu.memref_squeeze %136 : memref<1x!tpu.dma_semaphore, #tpu.memory_space<semaphore_mem>> -> memref<!tpu.dma_semaphore, #tpu.memory_space<semaphore_mem>>
      tpu.enqueue_dma source(%133 : memref<1x128xf32, #tpu.memory_space<any>>) target(%135 : memref<1x128xf32, #tpu.memory_space<vmem>>) target_semaphore(%137 : memref<!tpu.dma_semaphore, #tpu.memory_space<semaphore_mem>>)
      %c13 = arith.constant 13 : index
      %138 = memref.load %arg1[%c13] : memref<160xi32, #tpu.memory_space<smem>>
      %c0_i32_90 = arith.constant 0 : i32
      %c0_i32_91 = arith.constant 0 : i32
      %c0_i32_92 = arith.constant 0 : i32
      %139 = tpu.memref_slice %arg5[%138, %c0_i32_92] : memref<128x128xf32, #tpu.memory_space<any>> -> memref<1x128xf32, #tpu.memory_space<any>>
      %c13_i32 = arith.constant 13 : i32
      %c0_i32_93 = arith.constant 0 : i32
      %140 = tpu.memref_slice %arg7[%c0_i32_90, %c13_i32, %c0_i32_93] : memref<2x24x128xf32, #tpu.memory_space<vmem>> -> memref<1x1x128xf32, #tpu.memory_space<vmem>>
      %141 = tpu.memref_squeeze %140 : memref<1x1x128xf32, #tpu.memory_space<vmem>> -> memref<1x128xf32, #tpu.memory_space<vmem>>
      %142 = tpu.memref_slice %arg8[%c0_i32_91] : memref<2x!tpu.dma_semaphore, #tpu.memory_space<semaphore_mem>> -> memref<1x!tpu.dma_semaphore, #tpu.memory_space<semaphore_mem>>
      %143 = tpu.memref_squeeze %142 : memref<1x!tpu.dma_semaphore, #tpu.memory_space<semaphore_mem>> -> memref<!tpu.dma_semaphore, #tpu.memory_space<semaphore_mem>>
      tpu.enqueue_dma source(%139 : memref<1x128xf32, #tpu.memory_space<any>>) target(%141 : memref<1x128xf32, #tpu.memory_space<vmem>>) target_semaphore(%143 : memref<!tpu.dma_semaphore, #tpu.memory_space<semaphore_mem>>)
      %c14 = arith.constant 14 : index
      %144 = memref.load %arg1[%c14] : memref<160xi32, #tpu.memory_space<smem>>
      %c0_i32_94 = arith.constant 0 : i32
      %c0_i32_95 = arith.constant 0 : i32
      %c0_i32_96 = arith.constant 0 : i32
      %145 = tpu.memref_slice %arg5[%144, %c0_i32_96] : memref<128x128xf32, #tpu.memory_space<any>> -> memref<1x128xf32, #tpu.memory_space<any>>
      %c14_i32 = arith.constant 14 : i32
      %c0_i32_97 = arith.constant 0 : i32
      %146 = tpu.memref_slice %arg7[%c0_i32_94, %c14_i32, %c0_i32_97] : memref<2x24x128xf32, #tpu.memory_space<vmem>> -> memref<1x1x128xf32, #tpu.memory_space<vmem>>
      %147 = tpu.memref_squeeze %146 : memref<1x1x128xf32, #tpu.memory_space<vmem>> -> memref<1x128xf32, #tpu.memory_space<vmem>>
      %148 = tpu.memref_slice %arg8[%c0_i32_95] : memref<2x!tpu.dma_semaphore, #tpu.memory_space<semaphore_mem>> -> memref<1x!tpu.dma_semaphore, #tpu.memory_space<semaphore_mem>>
      %149 = tpu.memref_squeeze %148 : memref<1x!tpu.dma_semaphore, #tpu.memory_space<semaphore_mem>> -> memref<!tpu.dma_semaphore, #tpu.memory_space<semaphore_mem>>
      tpu.enqueue_dma source(%145 : memref<1x128xf32, #tpu.memory_space<any>>) target(%147 : memref<1x128xf32, #tpu.memory_space<vmem>>) target_semaphore(%149 : memref<!tpu.dma_semaphore, #tpu.memory_space<semaphore_mem>>)
      %c15 = arith.constant 15 : index
      %150 = memref.load %arg1[%c15] : memref<160xi32, #tpu.memory_space<smem>>
      %c0_i32_98 = arith.constant 0 : i32
      %c0_i32_99 = arith.constant 0 : i32
      %c0_i32_100 = arith.constant 0 : i32
      %151 = tpu.memref_slice %arg5[%150, %c0_i32_100] : memref<128x128xf32, #tpu.memory_space<any>> -> memref<1x128xf32, #tpu.memory_space<any>>
      %c15_i32 = arith.constant 15 : i32
      %c0_i32_101 = arith.constant 0 : i32
      %152 = tpu.memref_slice %arg7[%c0_i32_98, %c15_i32, %c0_i32_101] : memref<2x24x128xf32, #tpu.memory_space<vmem>> -> memref<1x1x128xf32, #tpu.memory_space<vmem>>
      %153 = tpu.memref_squeeze %152 : memref<1x1x128xf32, #tpu.memory_space<vmem>> -> memref<1x128xf32, #tpu.memory_space<vmem>>
      %154 = tpu.memref_slice %arg8[%c0_i32_99] : memref<2x!tpu.dma_semaphore, #tpu.memory_space<semaphore_mem>> -> memref<1x!tpu.dma_semaphore, #tpu.memory_space<semaphore_mem>>
      %155 = tpu.memref_squeeze %154 : memref<1x!tpu.dma_semaphore, #tpu.memory_space<semaphore_mem>> -> memref<!tpu.dma_semaphore, #tpu.memory_space<semaphore_mem>>
      tpu.enqueue_dma source(%151 : memref<1x128xf32, #tpu.memory_space<any>>) target(%153 : memref<1x128xf32, #tpu.memory_space<vmem>>) target_semaphore(%155 : memref<!tpu.dma_semaphore, #tpu.memory_space<semaphore_mem>>)
      %c16 = arith.constant 16 : index
      %156 = memref.load %arg1[%c16] : memref<160xi32, #tpu.memory_space<smem>>
      %c0_i32_102 = arith.constant 0 : i32
      %c0_i32_103 = arith.constant 0 : i32
      %c0_i32_104 = arith.constant 0 : i32
      %157 = tpu.memref_slice %arg5[%156, %c0_i32_104] : memref<128x128xf32, #tpu.memory_space<any>> -> memref<1x128xf32, #tpu.memory_space<any>>
      %c16_i32 = arith.constant 16 : i32
      %c0_i32_105 = arith.constant 0 : i32
      %158 = tpu.memref_slice %arg7[%c0_i32_102, %c16_i32, %c0_i32_105] : memref<2x24x128xf32, #tpu.memory_space<vmem>> -> memref<1x1x128xf32, #tpu.memory_space<vmem>>
      %159 = tpu.memref_squeeze %158 : memref<1x1x128xf32, #tpu.memory_space<vmem>> -> memref<1x128xf32, #tpu.memory_space<vmem>>
      %160 = tpu.memref_slice %arg8[%c0_i32_103] : memref<2x!tpu.dma_semaphore, #tpu.memory_space<semaphore_mem>> -> memref<1x!tpu.dma_semaphore, #tpu.memory_space<semaphore_mem>>
      %161 = tpu.memref_squeeze %160 : memref<1x!tpu.dma_semaphore, #tpu.memory_space<semaphore_mem>> -> memref<!tpu.dma_semaphore, #tpu.memory_space<semaphore_mem>>
      tpu.enqueue_dma source(%157 : memref<1x128xf32, #tpu.memory_space<any>>) target(%159 : memref<1x128xf32, #tpu.memory_space<vmem>>) target_semaphore(%161 : memref<!tpu.dma_semaphore, #tpu.memory_space<semaphore_mem>>)
      %c17 = arith.constant 17 : index
      %162 = memref.load %arg1[%c17] : memref<160xi32, #tpu.memory_space<smem>>
      %c0_i32_106 = arith.constant 0 : i32
      %c0_i32_107 = arith.constant 0 : i32
      %c0_i32_108 = arith.constant 0 : i32
      %163 = tpu.memref_slice %arg5[%162, %c0_i32_108] : memref<128x128xf32, #tpu.memory_space<any>> -> memref<1x128xf32, #tpu.memory_space<any>>
      %c17_i32 = arith.constant 17 : i32
      %c0_i32_109 = arith.constant 0 : i32
      %164 = tpu.memref_slice %arg7[%c0_i32_106, %c17_i32, %c0_i32_109] : memref<2x24x128xf32, #tpu.memory_space<vmem>> -> memref<1x1x128xf32, #tpu.memory_space<vmem>>
      %165 = tpu.memref_squeeze %164 : memref<1x1x128xf32, #tpu.memory_space<vmem>> -> memref<1x128xf32, #tpu.memory_space<vmem>>
      %166 = tpu.memref_slice %arg8[%c0_i32_107] : memref<2x!tpu.dma_semaphore, #tpu.memory_space<semaphore_mem>> -> memref<1x!tpu.dma_semaphore, #tpu.memory_space<semaphore_mem>>
      %167 = tpu.memref_squeeze %166 : memref<1x!tpu.dma_semaphore, #tpu.memory_space<semaphore_mem>> -> memref<!tpu.dma_semaphore, #tpu.memory_space<semaphore_mem>>
      tpu.enqueue_dma source(%163 : memref<1x128xf32, #tpu.memory_space<any>>) target(%165 : memref<1x128xf32, #tpu.memory_space<vmem>>) target_semaphore(%167 : memref<!tpu.dma_semaphore, #tpu.memory_space<semaphore_mem>>)
      %c18 = arith.constant 18 : index
      %168 = memref.load %arg1[%c18] : memref<160xi32, #tpu.memory_space<smem>>
      %c0_i32_110 = arith.constant 0 : i32
      %c0_i32_111 = arith.constant 0 : i32
      %c0_i32_112 = arith.constant 0 : i32
      %169 = tpu.memref_slice %arg5[%168, %c0_i32_112] : memref<128x128xf32, #tpu.memory_space<any>> -> memref<1x128xf32, #tpu.memory_space<any>>
      %c18_i32 = arith.constant 18 : i32
      %c0_i32_113 = arith.constant 0 : i32
      %170 = tpu.memref_slice %arg7[%c0_i32_110, %c18_i32, %c0_i32_113] : memref<2x24x128xf32, #tpu.memory_space<vmem>> -> memref<1x1x128xf32, #tpu.memory_space<vmem>>
      %171 = tpu.memref_squeeze %170 : memref<1x1x128xf32, #tpu.memory_space<vmem>> -> memref<1x128xf32, #tpu.memory_space<vmem>>
      %172 = tpu.memref_slice %arg8[%c0_i32_111] : memref<2x!tpu.dma_semaphore, #tpu.memory_space<semaphore_mem>> -> memref<1x!tpu.dma_semaphore, #tpu.memory_space<semaphore_mem>>
      %173 = tpu.memref_squeeze %172 : memref<1x!tpu.dma_semaphore, #tpu.memory_space<semaphore_mem>> -> memref<!tpu.dma_semaphore, #tpu.memory_space<semaphore_mem>>
      tpu.enqueue_dma source(%169 : memref<1x128xf32, #tpu.memory_space<any>>) target(%171 : memref<1x128xf32, #tpu.memory_space<vmem>>) target_semaphore(%173 : memref<!tpu.dma_semaphore, #tpu.memory_space<semaphore_mem>>)
      %c19 = arith.constant 19 : index
      %174 = memref.load %arg1[%c19] : memref<160xi32, #tpu.memory_space<smem>>
      %c0_i32_114 = arith.constant 0 : i32
      %c0_i32_115 = arith.constant 0 : i32
      %c0_i32_116 = arith.constant 0 : i32
      %175 = tpu.memref_slice %arg5[%174, %c0_i32_116] : memref<128x128xf32, #tpu.memory_space<any>> -> memref<1x128xf32, #tpu.memory_space<any>>
      %c19_i32 = arith.constant 19 : i32
      %c0_i32_117 = arith.constant 0 : i32
      %176 = tpu.memref_slice %arg7[%c0_i32_114, %c19_i32, %c0_i32_117] : memref<2x24x128xf32, #tpu.memory_space<vmem>> -> memref<1x1x128xf32, #tpu.memory_space<vmem>>
      %177 = tpu.memref_squeeze %176 : memref<1x1x128xf32, #tpu.memory_space<vmem>> -> memref<1x128xf32, #tpu.memory_space<vmem>>
      %178 = tpu.memref_slice %arg8[%c0_i32_115] : memref<2x!tpu.dma_semaphore, #tpu.memory_space<semaphore_mem>> -> memref<1x!tpu.dma_semaphore, #tpu.memory_space<semaphore_mem>>
      %179 = tpu.memref_squeeze %178 : memref<1x!tpu.dma_semaphore, #tpu.memory_space<semaphore_mem>> -> memref<!tpu.dma_semaphore, #tpu.memory_space<semaphore_mem>>
      tpu.enqueue_dma source(%175 : memref<1x128xf32, #tpu.memory_space<any>>) target(%177 : memref<1x128xf32, #tpu.memory_space<vmem>>) target_semaphore(%179 : memref<!tpu.dma_semaphore, #tpu.memory_space<semaphore_mem>>)
    } else {
    }
    %c1_i32_5 = arith.constant 1 : i32
    %13 = arith.addi %arg0, %c1_i32_5 : i32
    %c8_i32 = arith.constant 8 : i32
    %14 = arith.cmpi slt, %13, %c8_i32 : i32
    %15 = arith.extui %14 : i1 to i32
    %c0_i32_6 = arith.constant 0 : i32
    %16 = arith.cmpi ne, %15, %c0_i32_6 : i32
    scf.if %16 {
      %c1_i32_26 = arith.constant 1 : i32
      %52 = arith.addi %arg0, %c1_i32_26 : i32
      %c1_i32_27 = arith.constant 1 : i32
      %53 = arith.subi %c1_i32_27, %9 : i32
      %c20_i32 = arith.constant 20 : i32
      %54 = arith.muli %52, %c20_i32 : i32
      %c0_i32_28 = arith.constant 0 : i32
      %55 = arith.addi %54, %c0_i32_28 : i32
      %56 = arith.index_cast %55 : i32 to index
      %57 = memref.load %arg1[%56] : memref<160xi32, #tpu.memory_space<smem>>
      %c0_i32_29 = arith.constant 0 : i32
      %58 = tpu.memref_slice %arg5[%57, %c0_i32_29] : memref<128x128xf32, #tpu.memory_space<any>> -> memref<1x128xf32, #tpu.memory_space<any>>
      %c0_i32_30 = arith.constant 0 : i32
      %c0_i32_31 = arith.constant 0 : i32
      %59 = tpu.memref_slice %arg7[%53, %c0_i32_30, %c0_i32_31] : memref<2x24x128xf32, #tpu.memory_space<vmem>> -> memref<1x1x128xf32, #tpu.memory_space<vmem>>
      %60 = tpu.memref_squeeze %59 : memref<1x1x128xf32, #tpu.memory_space<vmem>> -> memref<1x128xf32, #tpu.memory_space<vmem>>
      %61 = tpu.memref_slice %arg8[%53] : memref<2x!tpu.dma_semaphore, #tpu.memory_space<semaphore_mem>> -> memref<1x!tpu.dma_semaphore, #tpu.memory_space<semaphore_mem>>
      %62 = tpu.memref_squeeze %61 : memref<1x!tpu.dma_semaphore, #tpu.memory_space<semaphore_mem>> -> memref<!tpu.dma_semaphore, #tpu.memory_space<semaphore_mem>>
      tpu.enqueue_dma source(%58 : memref<1x128xf32, #tpu.memory_space<any>>) target(%60 : memref<1x128xf32, #tpu.memory_space<vmem>>) target_semaphore(%62 : memref<!tpu.dma_semaphore, #tpu.memory_space<semaphore_mem>>)
      %c1_i32_32 = arith.constant 1 : i32
      %63 = arith.addi %54, %c1_i32_32 : i32
      %64 = arith.index_cast %63 : i32 to index
      %65 = memref.load %arg1[%64] : memref<160xi32, #tpu.memory_space<smem>>
      %c0_i32_33 = arith.constant 0 : i32
      %66 = tpu.memref_slice %arg5[%65, %c0_i32_33] : memref<128x128xf32, #tpu.memory_space<any>> -> memref<1x128xf32, #tpu.memory_space<any>>
      %c1_i32_34 = arith.constant 1 : i32
      %c0_i32_35 = arith.constant 0 : i32
      %67 = tpu.memref_slice %arg7[%53, %c1_i32_34, %c0_i32_35] : memref<2x24x128xf32, #tpu.memory_space<vmem>> -> memref<1x1x128xf32, #tpu.memory_space<vmem>>
      %68 = tpu.memref_squeeze %67 : memref<1x1x128xf32, #tpu.memory_space<vmem>> -> memref<1x128xf32, #tpu.memory_space<vmem>>
      %69 = tpu.memref_slice %arg8[%53] : memref<2x!tpu.dma_semaphore, #tpu.memory_space<semaphore_mem>> -> memref<1x!tpu.dma_semaphore, #tpu.memory_space<semaphore_mem>>
      %70 = tpu.memref_squeeze %69 : memref<1x!tpu.dma_semaphore, #tpu.memory_space<semaphore_mem>> -> memref<!tpu.dma_semaphore, #tpu.memory_space<semaphore_mem>>
      tpu.enqueue_dma source(%66 : memref<1x128xf32, #tpu.memory_space<any>>) target(%68 : memref<1x128xf32, #tpu.memory_space<vmem>>) target_semaphore(%70 : memref<!tpu.dma_semaphore, #tpu.memory_space<semaphore_mem>>)
      %c2_i32_36 = arith.constant 2 : i32
      %71 = arith.addi %54, %c2_i32_36 : i32
      %72 = arith.index_cast %71 : i32 to index
      %73 = memref.load %arg1[%72] : memref<160xi32, #tpu.memory_space<smem>>
      %c0_i32_37 = arith.constant 0 : i32
      %74 = tpu.memref_slice %arg5[%73, %c0_i32_37] : memref<128x128xf32, #tpu.memory_space<any>> -> memref<1x128xf32, #tpu.memory_space<any>>
      %c2_i32_38 = arith.constant 2 : i32
      %c0_i32_39 = arith.constant 0 : i32
      %75 = tpu.memref_slice %arg7[%53, %c2_i32_38, %c0_i32_39] : memref<2x24x128xf32, #tpu.memory_space<vmem>> -> memref<1x1x128xf32, #tpu.memory_space<vmem>>
      %76 = tpu.memref_squeeze %75 : memref<1x1x128xf32, #tpu.memory_space<vmem>> -> memref<1x128xf32, #tpu.memory_space<vmem>>
      %77 = tpu.memref_slice %arg8[%53] : memref<2x!tpu.dma_semaphore, #tpu.memory_space<semaphore_mem>> -> memref<1x!tpu.dma_semaphore, #tpu.memory_space<semaphore_mem>>
      %78 = tpu.memref_squeeze %77 : memref<1x!tpu.dma_semaphore, #tpu.memory_space<semaphore_mem>> -> memref<!tpu.dma_semaphore, #tpu.memory_space<semaphore_mem>>
      tpu.enqueue_dma source(%74 : memref<1x128xf32, #tpu.memory_space<any>>) target(%76 : memref<1x128xf32, #tpu.memory_space<vmem>>) target_semaphore(%78 : memref<!tpu.dma_semaphore, #tpu.memory_space<semaphore_mem>>)
      %c3_i32 = arith.constant 3 : i32
      %79 = arith.addi %54, %c3_i32 : i32
      %80 = arith.index_cast %79 : i32 to index
      %81 = memref.load %arg1[%80] : memref<160xi32, #tpu.memory_space<smem>>
      %c0_i32_40 = arith.constant 0 : i32
      %82 = tpu.memref_slice %arg5[%81, %c0_i32_40] : memref<128x128xf32, #tpu.memory_space<any>> -> memref<1x128xf32, #tpu.memory_space<any>>
      %c3_i32_41 = arith.constant 3 : i32
      %c0_i32_42 = arith.constant 0 : i32
      %83 = tpu.memref_slice %arg7[%53, %c3_i32_41, %c0_i32_42] : memref<2x24x128xf32, #tpu.memory_space<vmem>> -> memref<1x1x128xf32, #tpu.memory_space<vmem>>
      %84 = tpu.memref_squeeze %83 : memref<1x1x128xf32, #tpu.memory_space<vmem>> -> memref<1x128xf32, #tpu.memory_space<vmem>>
      %85 = tpu.memref_slice %arg8[%53] : memref<2x!tpu.dma_semaphore, #tpu.memory_space<semaphore_mem>> -> memref<1x!tpu.dma_semaphore, #tpu.memory_space<semaphore_mem>>
      %86 = tpu.memref_squeeze %85 : memref<1x!tpu.dma_semaphore, #tpu.memory_space<semaphore_mem>> -> memref<!tpu.dma_semaphore, #tpu.memory_space<semaphore_mem>>
      tpu.enqueue_dma source(%82 : memref<1x128xf32, #tpu.memory_space<any>>) target(%84 : memref<1x128xf32, #tpu.memory_space<vmem>>) target_semaphore(%86 : memref<!tpu.dma_semaphore, #tpu.memory_space<semaphore_mem>>)
      %c4_i32 = arith.constant 4 : i32
      %87 = arith.addi %54, %c4_i32 : i32
      %88 = arith.index_cast %87 : i32 to index
      %89 = memref.load %arg1[%88] : memref<160xi32, #tpu.memory_space<smem>>
      %c0_i32_43 = arith.constant 0 : i32
      %90 = tpu.memref_slice %arg5[%89, %c0_i32_43] : memref<128x128xf32, #tpu.memory_space<any>> -> memref<1x128xf32, #tpu.memory_space<any>>
      %c4_i32_44 = arith.constant 4 : i32
      %c0_i32_45 = arith.constant 0 : i32
      %91 = tpu.memref_slice %arg7[%53, %c4_i32_44, %c0_i32_45] : memref<2x24x128xf32, #tpu.memory_space<vmem>> -> memref<1x1x128xf32, #tpu.memory_space<vmem>>
      %92 = tpu.memref_squeeze %91 : memref<1x1x128xf32, #tpu.memory_space<vmem>> -> memref<1x128xf32, #tpu.memory_space<vmem>>
      %93 = tpu.memref_slice %arg8[%53] : memref<2x!tpu.dma_semaphore, #tpu.memory_space<semaphore_mem>> -> memref<1x!tpu.dma_semaphore, #tpu.memory_space<semaphore_mem>>
      %94 = tpu.memref_squeeze %93 : memref<1x!tpu.dma_semaphore, #tpu.memory_space<semaphore_mem>> -> memref<!tpu.dma_semaphore, #tpu.memory_space<semaphore_mem>>
      tpu.enqueue_dma source(%90 : memref<1x128xf32, #tpu.memory_space<any>>) target(%92 : memref<1x128xf32, #tpu.memory_space<vmem>>) target_semaphore(%94 : memref<!tpu.dma_semaphore, #tpu.memory_space<semaphore_mem>>)
      %c5_i32 = arith.constant 5 : i32
      %95 = arith.addi %54, %c5_i32 : i32
      %96 = arith.index_cast %95 : i32 to index
      %97 = memref.load %arg1[%96] : memref<160xi32, #tpu.memory_space<smem>>
      %c0_i32_46 = arith.constant 0 : i32
      %98 = tpu.memref_slice %arg5[%97, %c0_i32_46] : memref<128x128xf32, #tpu.memory_space<any>> -> memref<1x128xf32, #tpu.memory_space<any>>
      %c5_i32_47 = arith.constant 5 : i32
      %c0_i32_48 = arith.constant 0 : i32
      %99 = tpu.memref_slice %arg7[%53, %c5_i32_47, %c0_i32_48] : memref<2x24x128xf32, #tpu.memory_space<vmem>> -> memref<1x1x128xf32, #tpu.memory_space<vmem>>
      %100 = tpu.memref_squeeze %99 : memref<1x1x128xf32, #tpu.memory_space<vmem>> -> memref<1x128xf32, #tpu.memory_space<vmem>>
      %101 = tpu.memref_slice %arg8[%53] : memref<2x!tpu.dma_semaphore, #tpu.memory_space<semaphore_mem>> -> memref<1x!tpu.dma_semaphore, #tpu.memory_space<semaphore_mem>>
      %102 = tpu.memref_squeeze %101 : memref<1x!tpu.dma_semaphore, #tpu.memory_space<semaphore_mem>> -> memref<!tpu.dma_semaphore, #tpu.memory_space<semaphore_mem>>
      tpu.enqueue_dma source(%98 : memref<1x128xf32, #tpu.memory_space<any>>) target(%100 : memref<1x128xf32, #tpu.memory_space<vmem>>) target_semaphore(%102 : memref<!tpu.dma_semaphore, #tpu.memory_space<semaphore_mem>>)
      %c6_i32 = arith.constant 6 : i32
      %103 = arith.addi %54, %c6_i32 : i32
      %104 = arith.index_cast %103 : i32 to index
      %105 = memref.load %arg1[%104] : memref<160xi32, #tpu.memory_space<smem>>
      %c0_i32_49 = arith.constant 0 : i32
      %106 = tpu.memref_slice %arg5[%105, %c0_i32_49] : memref<128x128xf32, #tpu.memory_space<any>> -> memref<1x128xf32, #tpu.memory_space<any>>
      %c6_i32_50 = arith.constant 6 : i32
      %c0_i32_51 = arith.constant 0 : i32
      %107 = tpu.memref_slice %arg7[%53, %c6_i32_50, %c0_i32_51] : memref<2x24x128xf32, #tpu.memory_space<vmem>> -> memref<1x1x128xf32, #tpu.memory_space<vmem>>
      %108 = tpu.memref_squeeze %107 : memref<1x1x128xf32, #tpu.memory_space<vmem>> -> memref<1x128xf32, #tpu.memory_space<vmem>>
      %109 = tpu.memref_slice %arg8[%53] : memref<2x!tpu.dma_semaphore, #tpu.memory_space<semaphore_mem>> -> memref<1x!tpu.dma_semaphore, #tpu.memory_space<semaphore_mem>>
      %110 = tpu.memref_squeeze %109 : memref<1x!tpu.dma_semaphore, #tpu.memory_space<semaphore_mem>> -> memref<!tpu.dma_semaphore, #tpu.memory_space<semaphore_mem>>
      tpu.enqueue_dma source(%106 : memref<1x128xf32, #tpu.memory_space<any>>) target(%108 : memref<1x128xf32, #tpu.memory_space<vmem>>) target_semaphore(%110 : memref<!tpu.dma_semaphore, #tpu.memory_space<semaphore_mem>>)
      %c7_i32 = arith.constant 7 : i32
      %111 = arith.addi %54, %c7_i32 : i32
      %112 = arith.index_cast %111 : i32 to index
      %113 = memref.load %arg1[%112] : memref<160xi32, #tpu.memory_space<smem>>
      %c0_i32_52 = arith.constant 0 : i32
      %114 = tpu.memref_slice %arg5[%113, %c0_i32_52] : memref<128x128xf32, #tpu.memory_space<any>> -> memref<1x128xf32, #tpu.memory_space<any>>
      %c7_i32_53 = arith.constant 7 : i32
      %c0_i32_54 = arith.constant 0 : i32
      %115 = tpu.memref_slice %arg7[%53, %c7_i32_53, %c0_i32_54] : memref<2x24x128xf32, #tpu.memory_space<vmem>> -> memref<1x1x128xf32, #tpu.memory_space<vmem>>
      %116 = tpu.memref_squeeze %115 : memref<1x1x128xf32, #tpu.memory_space<vmem>> -> memref<1x128xf32, #tpu.memory_space<vmem>>
      %117 = tpu.memref_slice %arg8[%53] : memref<2x!tpu.dma_semaphore, #tpu.memory_space<semaphore_mem>> -> memref<1x!tpu.dma_semaphore, #tpu.memory_space<semaphore_mem>>
      %118 = tpu.memref_squeeze %117 : memref<1x!tpu.dma_semaphore, #tpu.memory_space<semaphore_mem>> -> memref<!tpu.dma_semaphore, #tpu.memory_space<semaphore_mem>>
      tpu.enqueue_dma source(%114 : memref<1x128xf32, #tpu.memory_space<any>>) target(%116 : memref<1x128xf32, #tpu.memory_space<vmem>>) target_semaphore(%118 : memref<!tpu.dma_semaphore, #tpu.memory_space<semaphore_mem>>)
      %c8_i32_55 = arith.constant 8 : i32
      %119 = arith.addi %54, %c8_i32_55 : i32
      %120 = arith.index_cast %119 : i32 to index
      %121 = memref.load %arg1[%120] : memref<160xi32, #tpu.memory_space<smem>>
      %c0_i32_56 = arith.constant 0 : i32
      %122 = tpu.memref_slice %arg5[%121, %c0_i32_56] : memref<128x128xf32, #tpu.memory_space<any>> -> memref<1x128xf32, #tpu.memory_space<any>>
      %c8_i32_57 = arith.constant 8 : i32
      %c0_i32_58 = arith.constant 0 : i32
      %123 = tpu.memref_slice %arg7[%53, %c8_i32_57, %c0_i32_58] : memref<2x24x128xf32, #tpu.memory_space<vmem>> -> memref<1x1x128xf32, #tpu.memory_space<vmem>>
      %124 = tpu.memref_squeeze %123 : memref<1x1x128xf32, #tpu.memory_space<vmem>> -> memref<1x128xf32, #tpu.memory_space<vmem>>
      %125 = tpu.memref_slice %arg8[%53] : memref<2x!tpu.dma_semaphore, #tpu.memory_space<semaphore_mem>> -> memref<1x!tpu.dma_semaphore, #tpu.memory_space<semaphore_mem>>
      %126 = tpu.memref_squeeze %125 : memref<1x!tpu.dma_semaphore, #tpu.memory_space<semaphore_mem>> -> memref<!tpu.dma_semaphore, #tpu.memory_space<semaphore_mem>>
      tpu.enqueue_dma source(%122 : memref<1x128xf32, #tpu.memory_space<any>>) target(%124 : memref<1x128xf32, #tpu.memory_space<vmem>>) target_semaphore(%126 : memref<!tpu.dma_semaphore, #tpu.memory_space<semaphore_mem>>)
      %c9_i32 = arith.constant 9 : i32
      %127 = arith.addi %54, %c9_i32 : i32
      %128 = arith.index_cast %127 : i32 to index
      %129 = memref.load %arg1[%128] : memref<160xi32, #tpu.memory_space<smem>>
      %c0_i32_59 = arith.constant 0 : i32
      %130 = tpu.memref_slice %arg5[%129, %c0_i32_59] : memref<128x128xf32, #tpu.memory_space<any>> -> memref<1x128xf32, #tpu.memory_space<any>>
      %c9_i32_60 = arith.constant 9 : i32
      %c0_i32_61 = arith.constant 0 : i32
      %131 = tpu.memref_slice %arg7[%53, %c9_i32_60, %c0_i32_61] : memref<2x24x128xf32, #tpu.memory_space<vmem>> -> memref<1x1x128xf32, #tpu.memory_space<vmem>>
      %132 = tpu.memref_squeeze %131 : memref<1x1x128xf32, #tpu.memory_space<vmem>> -> memref<1x128xf32, #tpu.memory_space<vmem>>
      %133 = tpu.memref_slice %arg8[%53] : memref<2x!tpu.dma_semaphore, #tpu.memory_space<semaphore_mem>> -> memref<1x!tpu.dma_semaphore, #tpu.memory_space<semaphore_mem>>
      %134 = tpu.memref_squeeze %133 : memref<1x!tpu.dma_semaphore, #tpu.memory_space<semaphore_mem>> -> memref<!tpu.dma_semaphore, #tpu.memory_space<semaphore_mem>>
      tpu.enqueue_dma source(%130 : memref<1x128xf32, #tpu.memory_space<any>>) target(%132 : memref<1x128xf32, #tpu.memory_space<vmem>>) target_semaphore(%134 : memref<!tpu.dma_semaphore, #tpu.memory_space<semaphore_mem>>)
      %c10_i32 = arith.constant 10 : i32
      %135 = arith.addi %54, %c10_i32 : i32
      %136 = arith.index_cast %135 : i32 to index
      %137 = memref.load %arg1[%136] : memref<160xi32, #tpu.memory_space<smem>>
      %c0_i32_62 = arith.constant 0 : i32
      %138 = tpu.memref_slice %arg5[%137, %c0_i32_62] : memref<128x128xf32, #tpu.memory_space<any>> -> memref<1x128xf32, #tpu.memory_space<any>>
      %c10_i32_63 = arith.constant 10 : i32
      %c0_i32_64 = arith.constant 0 : i32
      %139 = tpu.memref_slice %arg7[%53, %c10_i32_63, %c0_i32_64] : memref<2x24x128xf32, #tpu.memory_space<vmem>> -> memref<1x1x128xf32, #tpu.memory_space<vmem>>
      %140 = tpu.memref_squeeze %139 : memref<1x1x128xf32, #tpu.memory_space<vmem>> -> memref<1x128xf32, #tpu.memory_space<vmem>>
      %141 = tpu.memref_slice %arg8[%53] : memref<2x!tpu.dma_semaphore, #tpu.memory_space<semaphore_mem>> -> memref<1x!tpu.dma_semaphore, #tpu.memory_space<semaphore_mem>>
      %142 = tpu.memref_squeeze %141 : memref<1x!tpu.dma_semaphore, #tpu.memory_space<semaphore_mem>> -> memref<!tpu.dma_semaphore, #tpu.memory_space<semaphore_mem>>
      tpu.enqueue_dma source(%138 : memref<1x128xf32, #tpu.memory_space<any>>) target(%140 : memref<1x128xf32, #tpu.memory_space<vmem>>) target_semaphore(%142 : memref<!tpu.dma_semaphore, #tpu.memory_space<semaphore_mem>>)
      %c11_i32 = arith.constant 11 : i32
      %143 = arith.addi %54, %c11_i32 : i32
      %144 = arith.index_cast %143 : i32 to index
      %145 = memref.load %arg1[%144] : memref<160xi32, #tpu.memory_space<smem>>
      %c0_i32_65 = arith.constant 0 : i32
      %146 = tpu.memref_slice %arg5[%145, %c0_i32_65] : memref<128x128xf32, #tpu.memory_space<any>> -> memref<1x128xf32, #tpu.memory_space<any>>
      %c11_i32_66 = arith.constant 11 : i32
      %c0_i32_67 = arith.constant 0 : i32
      %147 = tpu.memref_slice %arg7[%53, %c11_i32_66, %c0_i32_67] : memref<2x24x128xf32, #tpu.memory_space<vmem>> -> memref<1x1x128xf32, #tpu.memory_space<vmem>>
      %148 = tpu.memref_squeeze %147 : memref<1x1x128xf32, #tpu.memory_space<vmem>> -> memref<1x128xf32, #tpu.memory_space<vmem>>
      %149 = tpu.memref_slice %arg8[%53] : memref<2x!tpu.dma_semaphore, #tpu.memory_space<semaphore_mem>> -> memref<1x!tpu.dma_semaphore, #tpu.memory_space<semaphore_mem>>
      %150 = tpu.memref_squeeze %149 : memref<1x!tpu.dma_semaphore, #tpu.memory_space<semaphore_mem>> -> memref<!tpu.dma_semaphore, #tpu.memory_space<semaphore_mem>>
      tpu.enqueue_dma source(%146 : memref<1x128xf32, #tpu.memory_space<any>>) target(%148 : memref<1x128xf32, #tpu.memory_space<vmem>>) target_semaphore(%150 : memref<!tpu.dma_semaphore, #tpu.memory_space<semaphore_mem>>)
      %c12_i32 = arith.constant 12 : i32
      %151 = arith.addi %54, %c12_i32 : i32
      %152 = arith.index_cast %151 : i32 to index
      %153 = memref.load %arg1[%152] : memref<160xi32, #tpu.memory_space<smem>>
      %c0_i32_68 = arith.constant 0 : i32
      %154 = tpu.memref_slice %arg5[%153, %c0_i32_68] : memref<128x128xf32, #tpu.memory_space<any>> -> memref<1x128xf32, #tpu.memory_space<any>>
      %c12_i32_69 = arith.constant 12 : i32
      %c0_i32_70 = arith.constant 0 : i32
      %155 = tpu.memref_slice %arg7[%53, %c12_i32_69, %c0_i32_70] : memref<2x24x128xf32, #tpu.memory_space<vmem>> -> memref<1x1x128xf32, #tpu.memory_space<vmem>>
      %156 = tpu.memref_squeeze %155 : memref<1x1x128xf32, #tpu.memory_space<vmem>> -> memref<1x128xf32, #tpu.memory_space<vmem>>
      %157 = tpu.memref_slice %arg8[%53] : memref<2x!tpu.dma_semaphore, #tpu.memory_space<semaphore_mem>> -> memref<1x!tpu.dma_semaphore, #tpu.memory_space<semaphore_mem>>
      %158 = tpu.memref_squeeze %157 : memref<1x!tpu.dma_semaphore, #tpu.memory_space<semaphore_mem>> -> memref<!tpu.dma_semaphore, #tpu.memory_space<semaphore_mem>>
      tpu.enqueue_dma source(%154 : memref<1x128xf32, #tpu.memory_space<any>>) target(%156 : memref<1x128xf32, #tpu.memory_space<vmem>>) target_semaphore(%158 : memref<!tpu.dma_semaphore, #tpu.memory_space<semaphore_mem>>)
      %c13_i32 = arith.constant 13 : i32
      %159 = arith.addi %54, %c13_i32 : i32
      %160 = arith.index_cast %159 : i32 to index
      %161 = memref.load %arg1[%160] : memref<160xi32, #tpu.memory_space<smem>>
      %c0_i32_71 = arith.constant 0 : i32
      %162 = tpu.memref_slice %arg5[%161, %c0_i32_71] : memref<128x128xf32, #tpu.memory_space<any>> -> memref<1x128xf32, #tpu.memory_space<any>>
      %c13_i32_72 = arith.constant 13 : i32
      %c0_i32_73 = arith.constant 0 : i32
      %163 = tpu.memref_slice %arg7[%53, %c13_i32_72, %c0_i32_73] : memref<2x24x128xf32, #tpu.memory_space<vmem>> -> memref<1x1x128xf32, #tpu.memory_space<vmem>>
      %164 = tpu.memref_squeeze %163 : memref<1x1x128xf32, #tpu.memory_space<vmem>> -> memref<1x128xf32, #tpu.memory_space<vmem>>
      %165 = tpu.memref_slice %arg8[%53] : memref<2x!tpu.dma_semaphore, #tpu.memory_space<semaphore_mem>> -> memref<1x!tpu.dma_semaphore, #tpu.memory_space<semaphore_mem>>
      %166 = tpu.memref_squeeze %165 : memref<1x!tpu.dma_semaphore, #tpu.memory_space<semaphore_mem>> -> memref<!tpu.dma_semaphore, #tpu.memory_space<semaphore_mem>>
      tpu.enqueue_dma source(%162 : memref<1x128xf32, #tpu.memory_space<any>>) target(%164 : memref<1x128xf32, #tpu.memory_space<vmem>>) target_semaphore(%166 : memref<!tpu.dma_semaphore, #tpu.memory_space<semaphore_mem>>)
      %c14_i32 = arith.constant 14 : i32
      %167 = arith.addi %54, %c14_i32 : i32
      %168 = arith.index_cast %167 : i32 to index
      %169 = memref.load %arg1[%168] : memref<160xi32, #tpu.memory_space<smem>>
      %c0_i32_74 = arith.constant 0 : i32
      %170 = tpu.memref_slice %arg5[%169, %c0_i32_74] : memref<128x128xf32, #tpu.memory_space<any>> -> memref<1x128xf32, #tpu.memory_space<any>>
      %c14_i32_75 = arith.constant 14 : i32
      %c0_i32_76 = arith.constant 0 : i32
      %171 = tpu.memref_slice %arg7[%53, %c14_i32_75, %c0_i32_76] : memref<2x24x128xf32, #tpu.memory_space<vmem>> -> memref<1x1x128xf32, #tpu.memory_space<vmem>>
      %172 = tpu.memref_squeeze %171 : memref<1x1x128xf32, #tpu.memory_space<vmem>> -> memref<1x128xf32, #tpu.memory_space<vmem>>
      %173 = tpu.memref_slice %arg8[%53] : memref<2x!tpu.dma_semaphore, #tpu.memory_space<semaphore_mem>> -> memref<1x!tpu.dma_semaphore, #tpu.memory_space<semaphore_mem>>
      %174 = tpu.memref_squeeze %173 : memref<1x!tpu.dma_semaphore, #tpu.memory_space<semaphore_mem>> -> memref<!tpu.dma_semaphore, #tpu.memory_space<semaphore_mem>>
      tpu.enqueue_dma source(%170 : memref<1x128xf32, #tpu.memory_space<any>>) target(%172 : memref<1x128xf32, #tpu.memory_space<vmem>>) target_semaphore(%174 : memref<!tpu.dma_semaphore, #tpu.memory_space<semaphore_mem>>)
      %c15_i32 = arith.constant 15 : i32
      %175 = arith.addi %54, %c15_i32 : i32
      %176 = arith.index_cast %175 : i32 to index
      %177 = memref.load %arg1[%176] : memref<160xi32, #tpu.memory_space<smem>>
      %c0_i32_77 = arith.constant 0 : i32
      %178 = tpu.memref_slice %arg5[%177, %c0_i32_77] : memref<128x128xf32, #tpu.memory_space<any>> -> memref<1x128xf32, #tpu.memory_space<any>>
      %c15_i32_78 = arith.constant 15 : i32
      %c0_i32_79 = arith.constant 0 : i32
      %179 = tpu.memref_slice %arg7[%53, %c15_i32_78, %c0_i32_79] : memref<2x24x128xf32, #tpu.memory_space<vmem>> -> memref<1x1x128xf32, #tpu.memory_space<vmem>>
      %180 = tpu.memref_squeeze %179 : memref<1x1x128xf32, #tpu.memory_space<vmem>> -> memref<1x128xf32, #tpu.memory_space<vmem>>
      %181 = tpu.memref_slice %arg8[%53] : memref<2x!tpu.dma_semaphore, #tpu.memory_space<semaphore_mem>> -> memref<1x!tpu.dma_semaphore, #tpu.memory_space<semaphore_mem>>
      %182 = tpu.memref_squeeze %181 : memref<1x!tpu.dma_semaphore, #tpu.memory_space<semaphore_mem>> -> memref<!tpu.dma_semaphore, #tpu.memory_space<semaphore_mem>>
      tpu.enqueue_dma source(%178 : memref<1x128xf32, #tpu.memory_space<any>>) target(%180 : memref<1x128xf32, #tpu.memory_space<vmem>>) target_semaphore(%182 : memref<!tpu.dma_semaphore, #tpu.memory_space<semaphore_mem>>)
      %c16_i32 = arith.constant 16 : i32
      %183 = arith.addi %54, %c16_i32 : i32
      %184 = arith.index_cast %183 : i32 to index
      %185 = memref.load %arg1[%184] : memref<160xi32, #tpu.memory_space<smem>>
      %c0_i32_80 = arith.constant 0 : i32
      %186 = tpu.memref_slice %arg5[%185, %c0_i32_80] : memref<128x128xf32, #tpu.memory_space<any>> -> memref<1x128xf32, #tpu.memory_space<any>>
      %c16_i32_81 = arith.constant 16 : i32
      %c0_i32_82 = arith.constant 0 : i32
      %187 = tpu.memref_slice %arg7[%53, %c16_i32_81, %c0_i32_82] : memref<2x24x128xf32, #tpu.memory_space<vmem>> -> memref<1x1x128xf32, #tpu.memory_space<vmem>>
      %188 = tpu.memref_squeeze %187 : memref<1x1x128xf32, #tpu.memory_space<vmem>> -> memref<1x128xf32, #tpu.memory_space<vmem>>
      %189 = tpu.memref_slice %arg8[%53] : memref<2x!tpu.dma_semaphore, #tpu.memory_space<semaphore_mem>> -> memref<1x!tpu.dma_semaphore, #tpu.memory_space<semaphore_mem>>
      %190 = tpu.memref_squeeze %189 : memref<1x!tpu.dma_semaphore, #tpu.memory_space<semaphore_mem>> -> memref<!tpu.dma_semaphore, #tpu.memory_space<semaphore_mem>>
      tpu.enqueue_dma source(%186 : memref<1x128xf32, #tpu.memory_space<any>>) target(%188 : memref<1x128xf32, #tpu.memory_space<vmem>>) target_semaphore(%190 : memref<!tpu.dma_semaphore, #tpu.memory_space<semaphore_mem>>)
      %c17_i32 = arith.constant 17 : i32
      %191 = arith.addi %54, %c17_i32 : i32
      %192 = arith.index_cast %191 : i32 to index
      %193 = memref.load %arg1[%192] : memref<160xi32, #tpu.memory_space<smem>>
      %c0_i32_83 = arith.constant 0 : i32
      %194 = tpu.memref_slice %arg5[%193, %c0_i32_83] : memref<128x128xf32, #tpu.memory_space<any>> -> memref<1x128xf32, #tpu.memory_space<any>>
      %c17_i32_84 = arith.constant 17 : i32
      %c0_i32_85 = arith.constant 0 : i32
      %195 = tpu.memref_slice %arg7[%53, %c17_i32_84, %c0_i32_85] : memref<2x24x128xf32, #tpu.memory_space<vmem>> -> memref<1x1x128xf32, #tpu.memory_space<vmem>>
      %196 = tpu.memref_squeeze %195 : memref<1x1x128xf32, #tpu.memory_space<vmem>> -> memref<1x128xf32, #tpu.memory_space<vmem>>
      %197 = tpu.memref_slice %arg8[%53] : memref<2x!tpu.dma_semaphore, #tpu.memory_space<semaphore_mem>> -> memref<1x!tpu.dma_semaphore, #tpu.memory_space<semaphore_mem>>
      %198 = tpu.memref_squeeze %197 : memref<1x!tpu.dma_semaphore, #tpu.memory_space<semaphore_mem>> -> memref<!tpu.dma_semaphore, #tpu.memory_space<semaphore_mem>>
      tpu.enqueue_dma source(%194 : memref<1x128xf32, #tpu.memory_space<any>>) target(%196 : memref<1x128xf32, #tpu.memory_space<vmem>>) target_semaphore(%198 : memref<!tpu.dma_semaphore, #tpu.memory_space<semaphore_mem>>)
      %c18_i32 = arith.constant 18 : i32
      %199 = arith.addi %54, %c18_i32 : i32
      %200 = arith.index_cast %199 : i32 to index
      %201 = memref.load %arg1[%200] : memref<160xi32, #tpu.memory_space<smem>>
      %c0_i32_86 = arith.constant 0 : i32
      %202 = tpu.memref_slice %arg5[%201, %c0_i32_86] : memref<128x128xf32, #tpu.memory_space<any>> -> memref<1x128xf32, #tpu.memory_space<any>>
      %c18_i32_87 = arith.constant 18 : i32
      %c0_i32_88 = arith.constant 0 : i32
      %203 = tpu.memref_slice %arg7[%53, %c18_i32_87, %c0_i32_88] : memref<2x24x128xf32, #tpu.memory_space<vmem>> -> memref<1x1x128xf32, #tpu.memory_space<vmem>>
      %204 = tpu.memref_squeeze %203 : memref<1x1x128xf32, #tpu.memory_space<vmem>> -> memref<1x128xf32, #tpu.memory_space<vmem>>
      %205 = tpu.memref_slice %arg8[%53] : memref<2x!tpu.dma_semaphore, #tpu.memory_space<semaphore_mem>> -> memref<1x!tpu.dma_semaphore, #tpu.memory_space<semaphore_mem>>
      %206 = tpu.memref_squeeze %205 : memref<1x!tpu.dma_semaphore, #tpu.memory_space<semaphore_mem>> -> memref<!tpu.dma_semaphore, #tpu.memory_space<semaphore_mem>>
      tpu.enqueue_dma source(%202 : memref<1x128xf32, #tpu.memory_space<any>>) target(%204 : memref<1x128xf32, #tpu.memory_space<vmem>>) target_semaphore(%206 : memref<!tpu.dma_semaphore, #tpu.memory_space<semaphore_mem>>)
      %c19_i32 = arith.constant 19 : i32
      %207 = arith.addi %54, %c19_i32 : i32
      %208 = arith.index_cast %207 : i32 to index
      %209 = memref.load %arg1[%208] : memref<160xi32, #tpu.memory_space<smem>>
      %c0_i32_89 = arith.constant 0 : i32
      %210 = tpu.memref_slice %arg5[%209, %c0_i32_89] : memref<128x128xf32, #tpu.memory_space<any>> -> memref<1x128xf32, #tpu.memory_space<any>>
      %c19_i32_90 = arith.constant 19 : i32
      %c0_i32_91 = arith.constant 0 : i32
      %211 = tpu.memref_slice %arg7[%53, %c19_i32_90, %c0_i32_91] : memref<2x24x128xf32, #tpu.memory_space<vmem>> -> memref<1x1x128xf32, #tpu.memory_space<vmem>>
      %212 = tpu.memref_squeeze %211 : memref<1x1x128xf32, #tpu.memory_space<vmem>> -> memref<1x128xf32, #tpu.memory_space<vmem>>
      %213 = tpu.memref_slice %arg8[%53] : memref<2x!tpu.dma_semaphore, #tpu.memory_space<semaphore_mem>> -> memref<1x!tpu.dma_semaphore, #tpu.memory_space<semaphore_mem>>
      %214 = tpu.memref_squeeze %213 : memref<1x!tpu.dma_semaphore, #tpu.memory_space<semaphore_mem>> -> memref<!tpu.dma_semaphore, #tpu.memory_space<semaphore_mem>>
      tpu.enqueue_dma source(%210 : memref<1x128xf32, #tpu.memory_space<any>>) target(%212 : memref<1x128xf32, #tpu.memory_space<vmem>>) target_semaphore(%214 : memref<!tpu.dma_semaphore, #tpu.memory_space<semaphore_mem>>)
    } else {
    }
    %c0_i32_7 = arith.constant 0 : i32
    %c0_i32_8 = arith.constant 0 : i32
    %17 = tpu.memref_slice %arg5[%c0_i32_7, %c0_i32_8] : memref<128x128xf32, #tpu.memory_space<any>> -> memref<20x128xf32, #tpu.memory_space<any>>
    %c0_i32_9 = arith.constant 0 : i32
    %c0_i32_10 = arith.constant 0 : i32
    %18 = tpu.memref_slice %arg7[%9, %c0_i32_9, %c0_i32_10] : memref<2x24x128xf32, #tpu.memory_space<vmem>> -> memref<1x20x128xf32, #tpu.memory_space<vmem>>
    %19 = tpu.memref_squeeze %18 : memref<1x20x128xf32, #tpu.memory_space<vmem>> -> memref<20x128xf32, #tpu.memory_space<vmem>>
    %20 = tpu.memref_slice %arg8[%9] : memref<2x!tpu.dma_semaphore, #tpu.memory_space<semaphore_mem>> -> memref<1x!tpu.dma_semaphore, #tpu.memory_space<semaphore_mem>>
    %21 = tpu.memref_squeeze %20 : memref<1x!tpu.dma_semaphore, #tpu.memory_space<semaphore_mem>> -> memref<!tpu.dma_semaphore, #tpu.memory_space<semaphore_mem>>
    tpu.wait_dma2 semaphore(%21 : memref<!tpu.dma_semaphore, #tpu.memory_space<semaphore_mem>>) src(%17 : memref<20x128xf32, #tpu.memory_space<any>>) dst(%19 : memref<20x128xf32, #tpu.memory_space<vmem>>)
    %22 = arith.index_cast %9 : i32 to index
    %c0 = arith.constant 0 : index
    %c0_11 = arith.constant 0 : index
    %23 = vector.load %arg7[%22, %c0, %c0_11] : memref<2x24x128xf32, #tpu.memory_space<vmem>>, vector<1x24x128xf32>
    %24 = vector.shape_cast %23 : vector<1x24x128xf32> to vector<24x128xf32>
    %c0_12 = arith.constant 0 : index
    %c0_13 = arith.constant 0 : index
    %c0_14 = arith.constant 0 : index
    %25 = vector.load %arg2[%c0_12, %c0_13, %c0_14] : memref<1x8x24xf32, #tpu.memory_space<vmem>>, vector<1x8x24xf32>
    %26 = vector.shape_cast %25 : vector<1x8x24xf32> to vector<8x24xf32>
    %cst = arith.constant dense<0.000000e+00> : vector<8x128xf32>
    %27 = tpu.matmul %26, %24, %cst {dimension_numbers = #tpu.dot_dimension_numbers<[1], [0], [0], [1], [0, 0, 1, 1], [], []>} : vector<8x24xf32>, vector<24x128xf32>, vector<8x128xf32> -> vector<8x128xf32>
    %28 = vector.extract_strided_slice %27 {offsets = [0, 0], sizes = [1, 128], strides = [1, 1]} : vector<8x128xf32> to vector<1x128xf32>
    %c0_15 = arith.constant 0 : index
    %c0_16 = arith.constant 0 : index
    %c0_17 = arith.constant 0 : index
    %29 = vector.load %arg4[%c0_15, %c0_16, %c0_17] : memref<1x1x128xf32, #tpu.memory_space<vmem>>, vector<1x1x128xf32>
    %30 = vector.shape_cast %29 : vector<1x1x128xf32> to vector<1x128xf32>
    %31 = arith.addf %28, %30 : vector<1x128xf32>
    %cst_18 = arith.constant dense<0x7F800000> : vector<1xf32>
    %32 = vector.multi_reduction <minimumf>, %31, %cst_18 [1] : vector<1x128xf32> to vector<1xf32>
    %33 = vector.shape_cast %32 : vector<1xf32> to vector<1x1xf32>
    %cst_19 = arith.constant dense<0xFF800000> : vector<1xf32>
    %34 = vector.multi_reduction <maximumf>, %31, %cst_19 [1] : vector<1x128xf32> to vector<1xf32>
    %35 = vector.shape_cast %34 : vector<1xf32> to vector<1x1xf32>
    %36 = vector.broadcast %33 : vector<1x1xf32> to vector<1x128xf32>
    %37 = arith.subf %31, %36 : vector<1x128xf32>
    %38 = arith.subf %35, %33 : vector<1x1xf32>
    %39 = vector.broadcast %38 : vector<1x1xf32> to vector<1x128xf32>
    %40 = arith.divf %37, %39 : vector<1x128xf32>
    %cst_20 = arith.constant 1.000000e+00 : f32
    %41 = vector.broadcast %cst_20 : f32 to vector<1x128xf32>
    %42 = arith.subf %41, %40 : vector<1x128xf32>
    %c0_21 = arith.constant 0 : index
    %c0_22 = arith.constant 0 : index
    %c0_23 = arith.constant 0 : index
    %43 = vector.load %arg3[%c0_21, %c0_22, %c0_23] : memref<1x1x128xf32, #tpu.memory_space<vmem>>, vector<1x1x128xf32>
    %44 = vector.shape_cast %43 : vector<1x1x128xf32> to vector<1x128xf32>
    %45 = arith.mulf %44, %42 : vector<1x128xf32>
    %46 = vector.shape_cast %45 : vector<1x128xf32> to vector<1x1x128xf32>
    %cst_24 = arith.constant dense<0.000000e+00> : vector<1xf32>
    %47 = vector.multi_reduction <add>, %46, %cst_24 [1, 2] : vector<1x1x128xf32> to vector<1xf32>
    %48 = vector.shape_cast %47 : vector<1xf32> to vector<1x1x1xf32>
    %49 = vector.extract %48[0, 0, 0] : f32 from vector<1x1x1xf32>
    %50 = arith.index_cast %arg0 : i32 to index
    %c0_25 = arith.constant 0 : index
    %51 = memref.load %arg6[%50, %c0_25] : memref<8x1xf32, #tpu.memory_space<smem>>
    memref.store %49, %arg6[%50, %c0_25] : memref<8x1xf32, #tpu.memory_space<smem>>
    return
  }
  func.func @transform_0(%arg0: i32) -> i32 {
    %c0_i32 = arith.constant 0 : i32
    %c0_i32_0 = arith.constant 0 : i32
    return %c0_i32 : i32
  }
  func.func @transform_1(%arg0: i32) -> (i32, i32, i32) {
    %c0_i32 = arith.constant 0 : i32
    %c0_i32_0 = arith.constant 0 : i32
    %c0_i32_1 = arith.constant 0 : i32
    return %arg0, %c0_i32, %c0_i32_0 : i32, i32, i32
  }
  func.func @transform_2(%arg0: i32) -> (i32, i32, i32) {
    %c0_i32 = arith.constant 0 : i32
    %c0_i32_0 = arith.constant 0 : i32
    %c0_i32_1 = arith.constant 0 : i32
    return %arg0, %c0_i32, %c0_i32_0 : i32, i32, i32
  }
  func.func @transform_3(%arg0: i32) -> (i32, i32, i32) {
    %c0_i32 = arith.constant 0 : i32
    %c0_i32_0 = arith.constant 0 : i32
    %c0_i32_1 = arith.constant 0 : i32
    return %arg0, %c0_i32, %c0_i32_0 : i32, i32, i32
  }
  func.func @transform_5(%arg0: i32) -> (i32, i32) {
    %c0_i32 = arith.constant 0 : i32
    %c0_i32_0 = arith.constant 0 : i32
    %c0_i32_1 = arith.constant 0 : i32
    return %c0_i32, %c0_i32_0 : i32, i32
  }
}

</mosaic_0001>

<bundles_post_ra>
// kernel: tpu_custom_call.1
= control target key start
LH: loop header
LB: loop body
LE: loop exit
PB: predicated region body
PF: predicated region fallthrough
CT: control target
= control target key end

     0   :  { %s3408_s0 = inlined_call_operand.hbm [shape: s32[160], index: 0, kind: input, shape index: {}]   ;;  %s3409_s1 = inlined_call_operand.hbm [shape: f32[8,8,24], index: 1, kind: input, shape index: {}]   ;;  %s3410_s2 = inlined_call_operand.hbm [shape: f32[8,1,128], index: 2, kind: input, shape index: {}]   ;;  %s3411_s3 = inlined_call_operand.hbm [shape: f32[8,1,128], index: 3, kind: input, shape index: {}]   ;;  %s3412_s4 = inlined_call_operand.hbm [shape: f32[128,128], index: 4, kind: input, shape index: {}]   ;;  %s3413_s5 = inlined_call_operand.vmem [shape: f32[8,1], index: 5, kind: output, shape index: {}]  }
   0x1   :  { %3417 = sst [smem:[#allocation103_spill]] %s3408_s0 }
   0x2   :  { %3418 = sst [smem:[#allocation104_spill]] %s3409_s1 }
   0x3   :  { %3419 = sst [smem:[#allocation105_spill]] %s3410_s2 }
   0x4   :  { %3420 = sst [smem:[#allocation106_spill]] %s3411_s3 }
   0x5   :  { %10 = vsyncpa [#allocation6], 0 }
   0x6   :  { %11 = vsyncpa [#allocation5], 0 }
   0x7   :  { %13 = vsyncpa [#allocation5 + $0x1], 0 }
   0x8   :  { %14 = vsyncpa [#allocation10], 0 }
   0x9   :  { %16 = vsyncpa [#allocation10 + $0x1], 0 }
   0xa   :  { %17 = vsyncpa [#allocation7], 0  ;;  %s2605_s18 = smov 0   ;;  %s2607_s19 = smov 0  }
   0xb   :  { %s2609_s20 = smov 0   ;;  %s2611_s21 = smov 0  }
   0xc LB: > { %s2626_s22 = sadd.s32 1, %s2549_s21   ;;  %s51_s23 = sadd.s32 1, %s2545_s20  ;;  %s2549_s21 = sphi %s2611_s21, %s3442_s21   ;;  %s2545_s20 = sphi %s2609_s20, %s3441_s20   ;;  %s2541_s19 = sphi %s2607_s19, %s3440_s19   ;;  %s2537_s18 = sphi %s2605_s18, %s3439_s18  }
   0xd   : > { %s48_s24 = ssub.s32 %s2549_s21, %s2626_s22  ;;  %p58_p0 = scmp.ne.s32.totalorder %s2545_s20, %s2541_s19 }
   0xe   : > { %p49_p1 = scmp.eq.s32.totalorder %s48_s24, 0  ;;  %p59_p2 = scmp.eq.s32.totalorder %s2549_s21, 0 }
   0xf   : > { %p1361_p3 = scmp.lt.s32.totalorder %s2549_s21, 8  ;;  %s2639_s26 = sand.u32 1, %s2545_s20  }
  0x10   : > { %s2636_s25 = scalar_select %p49_p1, %s2545_s20, %s51_s23  }
  0x11   : > { %p60_p4 = por %p59_p2, %p58_p0  ;;  %s190_s27 = sand.u32 1, %s2549_s21  }
  0x12   : > { %3421 = sst [smem:[#allocation100_spill]] %s2636_s25  ;;  %s193_s7 = scalar_lea.vmem [#allocation9], %s2639_s26 }
  0x13   : > { %p2642_p5 = pnand %p1361_p3, %p60_p4  ;;  %s3423_s2 = sld [smem:[#allocation105_spill]] }
  0x14   : > { %s200_s8 = sshll.u32 %s193_s7, 4  ;;  %s2651_s10 = scalar_lea.sflag [#allocation10], %s190_s27  ;;  %s201_s8 = int_to_ptr.vmem [resolvable:$true] %s200_s8 }
  0x15   : > { %p1426_p7 = pneg %p2642_p5 }
  0x19   : > { %s196_s6 = scalar_lea.hbm %s3423_s2, %s2549_s21  ;;  %s1429_s15 = scalar_lea.hbm %s3423_s2, 8 }
  0x1a   : > { %s198_s9 = sshll.u32 %s196_s6, 4  ;;  %s199_s9 = int_to_ptr.hbm [resolvable:$true] %s198_s9 }
  0x1b   : > { %s1422_s11 = sshra.s32 %s199_s9, 4  ;;  %s1423_s11 = int_to_ptr.hbm [resolvable:$true] %s1422_s11 }
  0x1c   : > { %s1424_s12 = scalar_lea.hbm %s1423_s11, 1  ;;  %p1430_p10 = scmp.lt.s32.totalorder %s1423_s11, %s3423_s2 }
  0x1d   : > { %p1425_p6 = scmp.ne.s32.totalorder %s1423_s11, %s1424_s12  ;;  %p1431_p11 = scmp.lt.s32.totalorder %s1429_s15, %s1424_s12 }
  0x1f   : > { %p1427_p8 = pnand %p1426_p7, %p1425_p6  ;;  %p1432_p12 = por %p1431_p11, %p1430_p10 }
  0x21   : > { %p1428_p9 = pneg %p1427_p8 }
  0x23   : > { %p1433_p13 = pnand %p1432_p12, %p1428_p9 }
  0x25   : > { %1436 = shalt.err (!%p1433_p13)
}
  0x26   : > { %1356 = dma.hbm_to_vmem [thread:$0]  (!%p2642_p5), %s199_s9, 16, %s201_s8, %s2651_s10  }
  0x27   : > { %s2668_s23 = sadd.s32 4294967295, %s2549_s21   ;;  %p64_p1 = scmp.ne.s32.totalorder %s2541_s19, %s2537_s18 }
  0x28   : > { %p65_p0 = scmp.eq.s32.totalorder %s2668_s23, 0  ;;  %p1290_p2 = scmp.ge.s32.totalorder %s2549_s21, 1 }
  0x29   : > { %p148_p3 = scmp.lt.s32.totalorder %s2549_s21, 9  ;;  %p1291_p4 = scmp.ne.s32.totalorder %s2668_s23, 0 }
  0x2a   : > { %p2678_p6 = por %p65_p0, %p64_p1  ;;  %s3425_s0 = sld [smem:[#allocation103_spill]] }
  0x2b   : > { %p2685_p8 = pnand %p1290_p2, %p148_p3  ;;  %s1293_s18 = sshll.u32 %s2639_s26, 3 }
  0x2c   : > { %s1294_s7 = sshll.u32 %s2549_s21, 3  ;;  %s3427_s1 = sld [smem:[#allocation104_spill]] }
  0x2d   : > { %p1346_p9 = pneg %p2685_p8  ;;  %s175_s13 = scalar_lea.vmem [#allocation8], %s1293_s18 }
  0x2e   : > { %s183_s14 = sshll.u32 %s175_s13, 4  ;;  %s2551_s15 = smov [#allocation4]   ;;  %s184_s14 = int_to_ptr.vmem [resolvable:$true] %s183_s14 }
  0x2f   : > { %p1347_p10 = pnand %p1346_p9, %p65_p0  ;;  %s172_s16 = scalar_lea.sflag [#allocation5], %s2639_s26 }
  0x30   : > { %s160_s30 = sshll.u32 %s3425_s0, 4  ;;  %s161_s30 = int_to_ptr.hbm [resolvable:$true] %s160_s30 }
  0x31   : > { %1349 = dma.hbm_to_smem (!%p1347_p10), %s161_s30, 32, %s2551_s15, [#allocation6]  }
  0x32   : > { %s179_s11 = scalar_lea.hbm %s3427_s1, %s1294_s7  ;;  %s1474_s7 = scalar_lea.hbm %s3427_s1, 64 }
  0x33   : > { %s181_s12 = sshll.u32 %s179_s11, 4  ;;  %s182_s12 = int_to_ptr.hbm [resolvable:$true] %s181_s12 }
  0x34   : > { %s1467_s17 = sshra.s32 %s182_s12, 4  ;;  %s1468_s17 = int_to_ptr.hbm [resolvable:$true] %s1467_s17 }
  0x35   : > { %s1469_s27 = scalar_lea.hbm %s1468_s17, 8  ;;  %p1475_p1 = scmp.lt.s32.totalorder %s1468_s17, %s3427_s1 }
  0x36   : > { %p1470_p11 = scmp.ne.s32.totalorder %s1468_s17, %s1469_s27  ;;  %p1476_p2 = scmp.lt.s32.totalorder %s1474_s7, %s1469_s27 }
  0x38   : > { %p1472_p12 = pnand %p1470_p11, %p1426_p7  ;;  %p1477_p3 = por %p1476_p2, %p1475_p1 }
  0x3a   : > { %p1473_p13 = pneg %p1472_p12 }
  0x3c   : > { %p1478_p9 = pnand %p1477_p3, %p1473_p13 }
  0x3e   : > { %1481 = shalt.err (!%p1478_p9)
}
  0x3f   : > { %1353 = dma.hbm_to_vmem [thread:$0]  (!%p2642_p5), %s182_s12, 128, %s184_s14, %s172_s16  }
  0x40   : > { %s3428_s3 = sld [smem:[#allocation106_spill]]  ;;  %s210_s0 = scalar_lea.vmem [#allocation11], %s2639_s26 }
  0x41   : > { %s217_s13 = sshll.u32 %s210_s0, 4  ;;  %s218_s13 = int_to_ptr.vmem [resolvable:$true] %s217_s13 }
  0x46   : > { %s213_s11 = scalar_lea.hbm %s3428_s3, %s2549_s21  ;;  %s1504_s12 = scalar_lea.hbm %s3428_s3, 8 }
  0x47   : > { %s215_s15 = sshll.u32 %s213_s11, 4  ;;  %s216_s15 = int_to_ptr.hbm [resolvable:$true] %s215_s15 }
  0x48   : > { %s1497_s17 = sshra.s32 %s216_s15, 4  ;;  %s1498_s17 = int_to_ptr.hbm [resolvable:$true] %s1497_s17 }
  0x49   : > { %s1499_s27 = scalar_lea.hbm %s1498_s17, 1  ;;  %p1505_p13 = scmp.lt.s32.totalorder %s1498_s17, %s3428_s3 }
  0x4a   : > { %p1500_p10 = scmp.ne.s32.totalorder %s1498_s17, %s1499_s27  ;;  %p1506_p1 = scmp.lt.s32.totalorder %s1504_s12, %s1499_s27 }
  0x4c   : > { %p1502_p11 = pnand %p1500_p10, %p1426_p7  ;;  %p1507_p2 = por %p1506_p1, %p1505_p13 }
  0x4e   : > { %p1503_p12 = pneg %p1502_p11 }
  0x50   : > { %p1508_p3 = pnand %p1507_p2, %p1503_p12 }
  0x52   : > { %1511 = shalt.err (!%p1508_p3)
}
  0x53   : > { %1359 = dma.hbm_to_vmem [thread:$0]  (!%p2642_p5), %s216_s15, 16, %s218_s13, %s2651_s10  }
  0x54   : > { %226 = sbr.rel (%p2685_p8) target bundleno = 1285 (0x505), region = 36 }
  0x59   : > { %2518 = dma.done.wait (%p65_p0), [#allocation6], 32  }
  0x5a   : > { %2520 = vsyncadd (%p65_p0), [#allocation6], 4294967264  ;;  %s2734_s21 = sand.u32 1, %s2541_s19  }
  0x5b   : > { %s1297_s26 = sshll.u32 %s2734_s21, 3  ;;  %s234_s8 = scalar_lea.sflag [#allocation5], %s2734_s21 }
  0x5c   : > { %s2738_s28 = scalar_lea.vmem [#allocation8], %s1297_s26 }
  0x5d   : > { %2522 = dma.done.wait (%p2678_p6), %s234_s8, 128  }
  0x5e   : > { %2524 = vsyncadd (%p2678_p6), %s234_s8, 4294967168  ;;  %s243_s10 = sand.u32 1, %s2668_s23  }
  0x5f   : > { %s244_s6 = scalar_lea.sflag [#allocation10], %s243_s10 }
  0x60   : > { %2526 = dma.done.wait (%p2678_p6), %s244_s6, 32  }
  0x61   : > { %2528 = vsyncadd (%p2678_p6), %s244_s6, 4294967264 }
  0x62   : > { %261 = sfence }
  0x63   : > { %p285_p5 = scmp.lt.s32.totalorder %s2668_s23, 0  ;;  %s286_s9 = ssub.s32 0, %s2668_s23 }
  0x64   : > { %s1298_s11 = smin.u32 %s2668_s23, %s286_s9 }
  0x65   : > { %s288_s0 = sand.u32 1, %s1298_s11  }
  0x66   : > { %s289_s13 = ssub.s32 0, %s288_s0  ;;  %300 = sbr.rel (%p1291_p4) target bundleno = 356 (0x164), region = 56 }
  0x67   : > { %s3444_s13 = smov (!%p285_p5, %s289_s13), %s288_s0 }
  0x68   : > { %p1300_p7 = scmp.lt.s32.totalorder %s3444_s13, 0  ;;  %s295_s15 = sadd.s32 2, %s3444_s13 }
  0x6a   : > { %s3446_s15 = smov (!%p1300_p7, %s295_s15), %s3444_s13 }
  0x6b   : > { %s304_s24 = sld [smem:[#allocation4]]  ;;  %v2552_v0 = vmov 0.0   ;;  %s2553_s17 = smov [#allocation2]  }
  0x6c   : > { %301 = vst [vmem:[#allocation2 + $0x14] sm:$0xf] %v2552_v0  ;;  %s315_s27 = sshll.u32 %s2553_s17, 4  ;;  %s1302_s29 = sld [smem:[#allocation4 + $0x1]]  ;;  %s316_s27 = int_to_ptr.vmem [resolvable:$true] %s315_s27 }
  0x6d   : > { %303 = vst [vmem:[#allocation2 + $0x2c] sm:$0xf] %v2552_v0  ;;  %s2554_s7 = smov [#allocation2 + $0x1]   ;;  %s2760_s14 = sld [smem:[#allocation4 + $0x2]] }
  0x6e   : > { %s2758_s12 = sshll.u32 %s2554_s7, 4  ;;  %s2555_s16 = smov [#allocation2 + $0x2]  }
  0x6f   : > { %3429 = sst [smem:[#allocation101_spill]] %s2758_s12  ;;  %s2763_s26 = sshll.u32 %s2555_s16, 4  ;;  %s348_s26 = int_to_ptr.vmem [resolvable:$true] %s2763_s26 }
  0x70   : > { %s2765_s8 = sld [smem:[#allocation4 + $0x3]]  ;;  %s2777_s1 = scalar_lea.hbm %s3412_s4, 128 }
  0x71   : > { %s305_s9 = scalar_lea.hbm %s3412_s4, %s304_s24 }
  0x72   : > { %s313_s11 = sshll.u32 %s305_s9, 4  ;;  %s320_s17 = scalar_lea.hbm %s3412_s4, %s1302_s29  ;;  %s314_s11 = int_to_ptr.hbm [resolvable:$true] %s313_s11 }
  0x73   : > { %s329_s7 = sshll.u32 %s320_s17, 4  ;;  %s1527_s18 = sshra.s32 %s314_s11, 4  ;;  %s1528_s18 = int_to_ptr.hbm [resolvable:$true] %s1527_s18  ;;  %s330_s7 = int_to_ptr.hbm [resolvable:$true] %s329_s7 }
  0x74   : > { %s1529_s30 = scalar_lea.hbm %s1528_s18, 1  ;;  %p1532_p4 = scmp.lt.s32.totalorder %s1528_s18, %s3412_s4 }
  0x75   : > { %p1530_p0 = scmp.ne.s32.totalorder %s1528_s18, %s1529_s30  ;;  %p1533_p6 = scmp.lt.s32.totalorder %s2777_s1, %s1529_s30 }
  0x77   : > { %p1534_p8 = por %p1533_p6, %p1532_p4 }
  0x79   : > { %p1535_p9 = pnand %p1534_p8, %p1530_p0 }
  0x7b   : > { %1538 = shalt.err (!%p1535_p9)  }
  0x7c   : > { %318 = dma.hbm_to_vmem [thread:$0]  %s314_s11, 16, %s316_s27, [#allocation3] }
  0x7d   : > { %s336_s6 = scalar_lea.hbm %s3412_s4, %s2760_s14  ;;  %s1551_s12 = sshra.s32 %s330_s7, 4  ;;  %s1552_s12 = int_to_ptr.hbm [resolvable:$true] %s1551_s12 }
  0x7e   : > { %s1553_s9 = scalar_lea.hbm %s1552_s12, 1  ;;  %p1556_p11 = scmp.lt.s32.totalorder %s1552_s12, %s3412_s4 }
  0x7f   : > { %p1554_p10 = scmp.ne.s32.totalorder %s1552_s12, %s1553_s9  ;;  %p1557_p12 = scmp.lt.s32.totalorder %s2777_s1, %s1553_s9 }
  0x81   : > { %p1558_p13 = por %p1557_p12, %p1556_p11 }
  0x83   : > { %p1559_p1 = pnand %p1558_p13, %p1554_p10 }
  0x85   : > { %1562 = shalt.err (!%p1559_p1)  }
  0x86   : > { %s3430_s18 = sld [smem:[#allocation101_spill]]  ;;  %s345_s27 = sshll.u32 %s336_s6, 4  ;;  %s346_s27 = int_to_ptr.hbm [resolvable:$true] %s345_s27 }
  0x87   : > { %s352_s13 = scalar_lea.hbm %s3412_s4, %s2765_s8  ;;  %s1575_s16 = sshra.s32 %s346_s27, 4  ;;  %s1576_s16 = int_to_ptr.hbm [resolvable:$true] %s1575_s16 }
  0x88   : > { %s361_s17 = sshll.u32 %s352_s13, 4  ;;  %s1577_s10 = scalar_lea.hbm %s1576_s16, 1  ;;  %s362_s17 = int_to_ptr.hbm [resolvable:$true] %s361_s17 }
  0x89   : > { %p1578_p2 = scmp.ne.s32.totalorder %s1576_s16, %s1577_s10  ;;  %p1580_p3 = scmp.lt.s32.totalorder %s1576_s16, %s3412_s4 }
  0x8a   : > { %p1581_p5 = scmp.lt.s32.totalorder %s2777_s1, %s1577_s10 }
  0x8c   : > { %s3431_s30 = int_to_ptr.vmem [resolvable:$true] %s3430_s18  ;;  %p1582_p7 = por %p1581_p5, %p1580_p3 }
  0x8d   : > { %334 = dma.hbm_to_vmem [thread:$0]  %s330_s7, 16, %s3431_s30, [#allocation3] }
  0x8e   : > { %p1583_p0 = pnand %p1582_p7, %p1578_p2 }
  0x90   : > { %1586 = shalt.err (!%p1583_p0)  }
  0x91   : > { %350 = dma.hbm_to_vmem [thread:$0]  %s346_s27, 16, %s348_s26, [#allocation3] }
  0x92   : > { %s2556_s8 = smov [#allocation2 + $0x3]   ;;  %s1305_s6 = sld [smem:[#allocation4 + $0x4]] }
  0x93   : > { %s363_s7 = sshll.u32 %s2556_s8, 4  ;;  %s1599_s12 = sshra.s32 %s362_s17, 4  ;;  %s364_s7 = int_to_ptr.vmem [resolvable:$true] %s363_s7  ;;  %s1600_s12 = int_to_ptr.hbm [resolvable:$true] %s1599_s12 }
  0x94   : > { %s1601_s9 = scalar_lea.hbm %s1600_s12, 1  ;;  %p1604_p6 = scmp.lt.s32.totalorder %s1600_s12, %s3412_s4 }
  0x95   : > { %p1602_p4 = scmp.ne.s32.totalorder %s1600_s12, %s1601_s9  ;;  %p1605_p8 = scmp.lt.s32.totalorder %s2777_s1, %s1601_s9 }
  0x97   : > { %p1606_p9 = por %p1605_p8, %p1604_p6 }
  0x99   : > { %p1607_p10 = pnand %p1606_p9, %p1602_p4 }
  0x9b   : > { %1610 = shalt.err (!%p1607_p10)  }
  0x9c   : > { %366 = dma.hbm_to_vmem [thread:$0]  %s362_s17, 16, %s364_s7, [#allocation3] }
  0x9d   : > { %s2557_s18 = smov [#allocation2 + $0x4]   ;;  %s1306_s30 = sld [smem:[#allocation4 + $0x5]] }
  0x9e   : > { %s379_s26 = sshll.u32 %s2557_s18, 4  ;;  %s2558_s27 = smov [#allocation2 + $0x5]   ;;  %s380_s26 = int_to_ptr.vmem [resolvable:$true] %s379_s26 }
  0x9f   : > { %s2807_s11 = sshll.u32 %s2558_s27, 4  ;;  %s1307_s14 = sld [smem:[#allocation4 + $0x6]]  ;;  %s396_s11 = int_to_ptr.vmem [resolvable:$true] %s2807_s11 }
  0xa0   : > { %s368_s10 = scalar_lea.hbm %s3412_s4, %s1305_s6  ;;  %s2559_s29 = smov [#allocation2 + $0x6]  }
  0xa1   : > { %s377_s24 = sshll.u32 %s368_s10, 4  ;;  %s2813_s8 = sshll.u32 %s2559_s29, 4  ;;  %s378_s24 = int_to_ptr.hbm [resolvable:$true] %s377_s24  ;;  %s412_s8 = int_to_ptr.vmem [resolvable:$true] %s2813_s8 }
  0xa2   : > { %s1623_s17 = sshra.s32 %s378_s24, 4  ;;  %s1624_s17 = int_to_ptr.hbm [resolvable:$true] %s1623_s17 }
  0xa3   : > { %s1625_s7 = scalar_lea.hbm %s1624_s17, 1  ;;  %p1628_p12 = scmp.lt.s32.totalorder %s1624_s17, %s3412_s4 }
  0xa4   : > { %p1626_p11 = scmp.ne.s32.totalorder %s1624_s17, %s1625_s7  ;;  %p1629_p13 = scmp.lt.s32.totalorder %s2777_s1, %s1625_s7 }
  0xa6   : > { %p1630_p1 = por %p1629_p13, %p1628_p12 }
  0xa8   : > { %p1631_p2 = pnand %p1630_p1, %p1626_p11 }
  0xaa   : > { %1634 = shalt.err (!%p1631_p2)  }
  0xab   : > { %382 = dma.hbm_to_vmem [thread:$0]  %s378_s24, 16, %s380_s26, [#allocation3] }
  0xac   : > { %s384_s2 = scalar_lea.hbm %s3412_s4, %s1306_s30  ;;  %s400_s16 = scalar_lea.hbm %s3412_s4, %s1307_s14 }
  0xad   : > { %s393_s18 = sshll.u32 %s384_s2, 4  ;;  %s409_s10 = sshll.u32 %s400_s16, 4  ;;  %s394_s18 = int_to_ptr.hbm [resolvable:$true] %s393_s18  ;;  %s410_s10 = int_to_ptr.hbm [resolvable:$true] %s409_s10 }
  0xae   : > { %s1647_s29 = sshra.s32 %s394_s18, 4  ;;  %s1648_s29 = int_to_ptr.hbm [resolvable:$true] %s1647_s29 }
  0xaf   : > { %s1649_s17 = scalar_lea.hbm %s1648_s29, 1  ;;  %p1652_p5 = scmp.lt.s32.totalorder %s1648_s29, %s3412_s4 }
  0xb0   : > { %p1650_p3 = scmp.ne.s32.totalorder %s1648_s29, %s1649_s17  ;;  %p1653_p7 = scmp.lt.s32.totalorder %s2777_s1, %s1649_s17 }
  0xb2   : > { %p1654_p0 = por %p1653_p7, %p1652_p5 }
  0xb4   : > { %p1655_p4 = pnand %p1654_p0, %p1650_p3 }
  0xb6   : > { %1658 = shalt.err (!%p1655_p4)  }
  0xb7   : > { %398 = dma.hbm_to_vmem [thread:$0]  %s394_s18, 16, %s396_s11, [#allocation3] }
  0xb8   : > { %s1308_s30 = sld [smem:[#allocation4 + $0x7]]  ;;  %s1671_s14 = sshra.s32 %s410_s10, 4  ;;  %s1672_s14 = int_to_ptr.hbm [resolvable:$true] %s1671_s14 }
  0xb9   : > { %s1673_s24 = scalar_lea.hbm %s1672_s14, 1  ;;  %p1676_p8 = scmp.lt.s32.totalorder %s1672_s14, %s3412_s4 }
  0xba   : > { %p1674_p6 = scmp.ne.s32.totalorder %s1672_s14, %s1673_s24  ;;  %p1677_p9 = scmp.lt.s32.totalorder %s2777_s1, %s1673_s24 }
  0xbc   : > { %p1678_p10 = por %p1677_p9, %p1676_p8 }
  0xbe   : > { %p1679_p11 = pnand %p1678_p10, %p1674_p6 }
  0xc0   : > { %1682 = shalt.err (!%p1679_p11)  }
  0xc1   : > { %414 = dma.hbm_to_vmem [thread:$0]  %s410_s10, 16, %s412_s8, [#allocation3] }
  0xc2   : > { %s1309_s6 = sld [smem:[#allocation4 + $0x8]]  ;;  %s2560_s0 = smov [#allocation2 + $0x7]  }
  0xc3   : > { %s427_s2 = sshll.u32 %s2560_s0, 4  ;;  %s2561_s11 = smov [#allocation2 + $0x8]   ;;  %s428_s2 = int_to_ptr.vmem [resolvable:$true] %s427_s2 }
  0xc4   : > { %s2836_s18 = sshll.u32 %s2561_s11, 4  ;;  %s2839_s27 = sld [smem:[#allocation4 + $0x9]]  ;;  %s444_s18 = int_to_ptr.vmem [resolvable:$true] %s2836_s18 }
  0xc5   : > { %s416_s29 = scalar_lea.hbm %s3412_s4, %s1308_s30  ;;  %s2562_s7 = smov [#allocation2 + $0x9]  }
  0xc6   : > { %s425_s17 = sshll.u32 %s416_s29, 4  ;;  %s2844_s26 = sshll.u32 %s2562_s7, 4  ;;  %s426_s17 = int_to_ptr.hbm [resolvable:$true] %s425_s17  ;;  %s460_s26 = int_to_ptr.vmem [resolvable:$true] %s2844_s26 }
  0xc7   : > { %s1695_s24 = sshra.s32 %s426_s17, 4  ;;  %s1696_s24 = int_to_ptr.hbm [resolvable:$true] %s1695_s24 }
  0xc8   : > { %s432_s14 = scalar_lea.hbm %s3412_s4, %s1309_s6  ;;  %s1697_s12 = scalar_lea.hbm %s1696_s24, 1 }
  0xc9   : > { %p1698_p12 = scmp.ne.s32.totalorder %s1696_s24, %s1697_s12  ;;  %p1700_p13 = scmp.lt.s32.totalorder %s1696_s24, %s3412_s4 }
  0xca   : > { %p1701_p1 = scmp.lt.s32.totalorder %s2777_s1, %s1697_s12 }
  0xcc   : > { %p1702_p2 = por %p1701_p1, %p1700_p13 }
  0xce   : > { %p1703_p3 = pnand %p1702_p2, %p1698_p12 }
  0xd0   : > { %1706 = shalt.err (!%p1703_p3)  }
  0xd1   : > { %430 = dma.hbm_to_vmem [thread:$0]  %s426_s17, 16, %s428_s2, [#allocation3] }
  0xd2   : > { %s441_s30 = sshll.u32 %s432_s14, 4  ;;  %s448_s13 = scalar_lea.hbm %s3412_s4, %s2839_s27  ;;  %s442_s30 = int_to_ptr.hbm [resolvable:$true] %s441_s30 }
  0xd3   : > { %s1719_s16 = sshra.s32 %s442_s30, 4  ;;  %s1720_s16 = int_to_ptr.hbm [resolvable:$true] %s1719_s16 }
  0xd4   : > { %s1721_s29 = scalar_lea.hbm %s1720_s16, 1  ;;  %p1724_p7 = scmp.lt.s32.totalorder %s1720_s16, %s3412_s4 }
  0xd5   : > { %p1722_p5 = scmp.ne.s32.totalorder %s1720_s16, %s1721_s29  ;;  %p1725_p0 = scmp.lt.s32.totalorder %s2777_s1, %s1721_s29 }
  0xd7   : > { %p1726_p4 = por %p1725_p0, %p1724_p7 }
  0xd9   : > { %p1727_p6 = pnand %p1726_p4, %p1722_p5 }
  0xdb   : > { %1730 = shalt.err (!%p1727_p6)  }
  0xdc   : > { %446 = dma.hbm_to_vmem [thread:$0]  %s442_s30, 16, %s444_s18, [#allocation3] }
  0xdd   : > { %s457_s2 = sshll.u32 %s448_s13, 4  ;;  %s1311_s17 = sld [smem:[#allocation4 + $0xa]]  ;;  %s458_s2 = int_to_ptr.hbm [resolvable:$true] %s457_s2 }
  0xde   : > { %s1743_s27 = sshra.s32 %s458_s2, 4  ;;  %s1744_s27 = int_to_ptr.hbm [resolvable:$true] %s1743_s27 }
  0xdf   : > { %s1745_s10 = scalar_lea.hbm %s1744_s27, 1  ;;  %p1748_p9 = scmp.lt.s32.totalorder %s1744_s27, %s3412_s4 }
  0xe0   : > { %p1746_p8 = scmp.ne.s32.totalorder %s1744_s27, %s1745_s10  ;;  %p1749_p10 = scmp.lt.s32.totalorder %s2777_s1, %s1745_s10 }
  0xe2   : > { %p1750_p11 = por %p1749_p10, %p1748_p9 }
  0xe4   : > { %p1751_p12 = pnand %p1750_p11, %p1746_p8 }
  0xe6   : > { %1754 = shalt.err (!%p1751_p12)  }
  0xe7   : > { %462 = dma.hbm_to_vmem [thread:$0]  %s458_s2, 16, %s460_s26, [#allocation3] }
  0xe8   : > { %s2563_s12 = smov [#allocation2 + $0xa]   ;;  %s1312_s0 = sld [smem:[#allocation4 + $0xb]] }
  0xe9   : > { %s475_s9 = sshll.u32 %s2563_s12, 4  ;;  %s2564_s18 = smov [#allocation2 + $0xb]   ;;  %s476_s9 = int_to_ptr.vmem [resolvable:$true] %s475_s9 }
  0xea   : > { %s2868_s30 = sshll.u32 %s2564_s18, 4  ;;  %s1313_s6 = sld [smem:[#allocation4 + $0xc]]  ;;  %s492_s30 = int_to_ptr.vmem [resolvable:$true] %s2868_s30 }
  0xeb   : > { %s464_s16 = scalar_lea.hbm %s3412_s4, %s1311_s17  ;;  %s2565_s7 = smov [#allocation2 + $0xc]  }
  0xec   : > { %s473_s29 = sshll.u32 %s464_s16, 4  ;;  %s2874_s8 = sshll.u32 %s2565_s7, 4  ;;  %s474_s29 = int_to_ptr.hbm [resolvable:$true] %s473_s29  ;;  %s508_s8 = int_to_ptr.vmem [resolvable:$true] %s2874_s8 }
  0xed   : > { %s1767_s26 = sshra.s32 %s474_s29, 4  ;;  %s1768_s26 = int_to_ptr.hbm [resolvable:$true] %s1767_s26 }
  0xee   : > { %s1769_s2 = scalar_lea.hbm %s1768_s26, 1  ;;  %p1772_p1 = scmp.lt.s32.totalorder %s1768_s26, %s3412_s4 }
  0xef   : > { %p1770_p13 = scmp.ne.s32.totalorder %s1768_s26, %s1769_s2  ;;  %p1773_p2 = scmp.lt.s32.totalorder %s2777_s1, %s1769_s2 }
  0xf1   : > { %p1774_p3 = por %p1773_p2, %p1772_p1 }
  0xf3   : > { %p1775_p5 = pnand %p1774_p3, %p1770_p13 }
  0xf5   : > { %1778 = shalt.err (!%p1775_p5)  }
  0xf6   : > { %478 = dma.hbm_to_vmem [thread:$0]  %s474_s29, 16, %s476_s9, [#allocation3] }
  0xf7   : > { %s480_s24 = scalar_lea.hbm %s3412_s4, %s1312_s0  ;;  %s496_s13 = scalar_lea.hbm %s3412_s4, %s1313_s6 }
  0xf8   : > { %s489_s12 = sshll.u32 %s480_s24, 4  ;;  %s505_s16 = sshll.u32 %s496_s13, 4  ;;  %s490_s12 = int_to_ptr.hbm [resolvable:$true] %s489_s12  ;;  %s506_s16 = int_to_ptr.hbm [resolvable:$true] %s505_s16 }
  0xf9   : > { %s1791_s7 = sshra.s32 %s490_s12, 4  ;;  %s1792_s7 = int_to_ptr.hbm [resolvable:$true] %s1791_s7 }
  0xfa   : > { %s1793_s26 = scalar_lea.hbm %s1792_s7, 1  ;;  %p1796_p0 = scmp.lt.s32.totalorder %s1792_s7, %s3412_s4 }
  0xfb   : > { %p1794_p7 = scmp.ne.s32.totalorder %s1792_s7, %s1793_s26  ;;  %p1797_p4 = scmp.lt.s32.totalorder %s2777_s1, %s1793_s26 }
  0xfd   : > { %p1798_p6 = por %p1797_p4, %p1796_p0 }
  0xff   : > { %p1799_p8 = pnand %p1798_p6, %p1794_p7 }
 0x101   : > { %1802 = shalt.err (!%p1799_p8)  }
 0x102   : > { %494 = dma.hbm_to_vmem [thread:$0]  %s490_s12, 16, %s492_s30, [#allocation3] }
 0x103   : > { %s1314_s0 = sld [smem:[#allocation4 + $0xd]]  ;;  %s1815_s6 = sshra.s32 %s506_s16, 4  ;;  %s1816_s6 = int_to_ptr.hbm [resolvable:$true] %s1815_s6 }
 0x104   : > { %s1817_s29 = scalar_lea.hbm %s1816_s6, 1  ;;  %p1820_p10 = scmp.lt.s32.totalorder %s1816_s6, %s3412_s4 }
 0x105   : > { %p1818_p9 = scmp.ne.s32.totalorder %s1816_s6, %s1817_s29  ;;  %p1821_p11 = scmp.lt.s32.totalorder %s2777_s1, %s1817_s29 }
 0x107   : > { %p1822_p12 = por %p1821_p11, %p1820_p10 }
 0x109   : > { %p1823_p13 = pnand %p1822_p12, %p1818_p9 }
 0x10b   : > { %1826 = shalt.err (!%p1823_p13)  }
 0x10c   : > { %510 = dma.hbm_to_vmem [thread:$0]  %s506_s16, 16, %s508_s8, [#allocation3] }
 0x10d   : > { %s1315_s17 = sld [smem:[#allocation4 + $0xe]]  ;;  %s2566_s14 = smov [#allocation2 + $0xd]  }
 0x10e   : > { %s523_s24 = sshll.u32 %s2566_s14, 4  ;;  %s2567_s30 = smov [#allocation2 + $0xe]   ;;  %s524_s24 = int_to_ptr.vmem [resolvable:$true] %s523_s24 }
 0x10f   : > { %s2897_s12 = sshll.u32 %s2567_s30, 4  ;;  %s2900_s18 = sld [smem:[#allocation4 + $0xf]]  ;;  %s540_s12 = int_to_ptr.vmem [resolvable:$true] %s2897_s12 }
 0x110   : > { %s512_s7 = scalar_lea.hbm %s3412_s4, %s1314_s0  ;;  %s2568_s2 = smov [#allocation2 + $0xf]  }
 0x111   : > { %s521_s26 = sshll.u32 %s512_s7, 4  ;;  %s2905_s9 = sshll.u32 %s2568_s2, 4  ;;  %s522_s26 = int_to_ptr.hbm [resolvable:$true] %s521_s26  ;;  %s556_s9 = int_to_ptr.vmem [resolvable:$true] %s2905_s9 }
 0x112   : > { %s1839_s29 = sshra.s32 %s522_s26, 4  ;;  %s1840_s29 = int_to_ptr.hbm [resolvable:$true] %s1839_s29 }
 0x113   : > { %s528_s6 = scalar_lea.hbm %s3412_s4, %s1315_s17  ;;  %s1841_s27 = scalar_lea.hbm %s1840_s29, 1 }
 0x114   : > { %p1842_p1 = scmp.ne.s32.totalorder %s1840_s29, %s1841_s27  ;;  %p1844_p2 = scmp.lt.s32.totalorder %s1840_s29, %s3412_s4 }
 0x115   : > { %p1845_p3 = scmp.lt.s32.totalorder %s2777_s1, %s1841_s27 }
 0x117   : > { %p1846_p5 = por %p1845_p3, %p1844_p2 }
 0x119   : > { %p1847_p7 = pnand %p1846_p5, %p1842_p1 }
 0x11b   : > { %1850 = shalt.err (!%p1847_p7)  }
 0x11c   : > { %526 = dma.hbm_to_vmem [thread:$0]  %s522_s26, 16, %s524_s24, [#allocation3] }
 0x11d   : > { %s537_s0 = sshll.u32 %s528_s6, 4  ;;  %s544_s11 = scalar_lea.hbm %s3412_s4, %s2900_s18  ;;  %s538_s0 = int_to_ptr.hbm [resolvable:$true] %s537_s0 }
 0x11e   : > { %s1863_s13 = sshra.s32 %s538_s0, 4  ;;  %s1864_s13 = int_to_ptr.hbm [resolvable:$true] %s1863_s13 }
 0x11f   : > { %s1865_s7 = scalar_lea.hbm %s1864_s13, 1  ;;  %p1868_p4 = scmp.lt.s32.totalorder %s1864_s13, %s3412_s4 }
 0x120   : > { %p1866_p0 = scmp.ne.s32.totalorder %s1864_s13, %s1865_s7  ;;  %p1869_p6 = scmp.lt.s32.totalorder %s2777_s1, %s1865_s7 }
 0x122   : > { %p1870_p8 = por %p1869_p6, %p1868_p4 }
 0x124   : > { %p1871_p9 = pnand %p1870_p8, %p1866_p0 }
 0x126   : > { %1874 = shalt.err (!%p1871_p9)  }
 0x127   : > { %542 = dma.hbm_to_vmem [thread:$0]  %s538_s0, 16, %s540_s12, [#allocation3] }
 0x128   : > { %s553_s24 = sshll.u32 %s544_s11, 4  ;;  %s1317_s26 = sld [smem:[#allocation4 + $0x10]]  ;;  %s554_s24 = int_to_ptr.hbm [resolvable:$true] %s553_s24 }
 0x129   : > { %s1887_s18 = sshra.s32 %s554_s24, 4  ;;  %s1888_s18 = int_to_ptr.hbm [resolvable:$true] %s1887_s18 }
 0x12a   : > { %s1889_s16 = scalar_lea.hbm %s1888_s18, 1  ;;  %p1892_p11 = scmp.lt.s32.totalorder %s1888_s18, %s3412_s4 }
 0x12b   : > { %p1890_p10 = scmp.ne.s32.totalorder %s1888_s18, %s1889_s16  ;;  %p1893_p12 = scmp.lt.s32.totalorder %s2777_s1, %s1889_s16 }
 0x12d   : > { %p1894_p13 = por %p1893_p12, %p1892_p11 }
 0x12f   : > { %p1895_p1 = pnand %p1894_p13, %p1890_p10 }
 0x131   : > { %1898 = shalt.err (!%p1895_p1)  }
 0x132   : > { %558 = dma.hbm_to_vmem [thread:$0]  %s554_s24, 16, %s556_s9, [#allocation3] }
 0x133   : > { %s2569_s27 = smov [#allocation2 + $0x10]   ;;  %s1318_s14 = sld [smem:[#allocation4 + $0x11]] }
 0x134   : > { %s571_s10 = sshll.u32 %s2569_s27, 4  ;;  %s2570_s12 = smov [#allocation2 + $0x11]   ;;  %s572_s10 = int_to_ptr.vmem [resolvable:$true] %s571_s10 }
 0x135   : > { %s2929_s0 = sshll.u32 %s2570_s12, 4  ;;  %s1319_s17 = sld [smem:[#allocation4 + $0x12]]  ;;  %s588_s0 = int_to_ptr.vmem [resolvable:$true] %s2929_s0 }
 0x136   : > { %s560_s13 = scalar_lea.hbm %s3412_s4, %s1317_s26  ;;  %s2571_s2 = smov [#allocation2 + $0x12]  }
 0x137   : > { %s569_s7 = sshll.u32 %s560_s13, 4  ;;  %s2935_s8 = sshll.u32 %s2571_s2, 4  ;;  %s570_s7 = int_to_ptr.hbm [resolvable:$true] %s569_s7  ;;  %s604_s8 = int_to_ptr.vmem [resolvable:$true] %s2935_s8 }
 0x138   : > { %s1911_s9 = sshra.s32 %s570_s7, 4  ;;  %s1912_s9 = int_to_ptr.hbm [resolvable:$true] %s1911_s9 }
 0x139   : > { %s1913_s24 = scalar_lea.hbm %s1912_s9, 1  ;;  %p1916_p3 = scmp.lt.s32.totalorder %s1912_s9, %s3412_s4 }
 0x13a   : > { %p1914_p2 = scmp.ne.s32.totalorder %s1912_s9, %s1913_s24  ;;  %p1917_p5 = scmp.lt.s32.totalorder %s2777_s1, %s1913_s24 }
 0x13c   : > { %p1918_p7 = por %p1917_p5, %p1916_p3 }
 0x13e   : > { %p1919_p0 = pnand %p1918_p7, %p1914_p2 }
 0x140   : > { %1922 = shalt.err (!%p1919_p0)  }
 0x141   : > { %574 = dma.hbm_to_vmem [thread:$0]  %s570_s7, 16, %s572_s10, [#allocation3] }
 0x142   : > { %s576_s29 = scalar_lea.hbm %s3412_s4, %s1318_s14  ;;  %s592_s11 = scalar_lea.hbm %s3412_s4, %s1319_s17 }
 0x143   : > { %s585_s27 = sshll.u32 %s576_s29, 4  ;;  %s601_s13 = sshll.u32 %s592_s11, 4  ;;  %s586_s27 = int_to_ptr.hbm [resolvable:$true] %s585_s27  ;;  %s602_s13 = int_to_ptr.hbm [resolvable:$true] %s601_s13 }
 0x144   : > { %s1935_s2 = sshra.s32 %s586_s27, 4  ;;  %s1936_s2 = int_to_ptr.hbm [resolvable:$true] %s1935_s2 }
 0x145   : > { %s1937_s9 = scalar_lea.hbm %s1936_s2, 1  ;;  %p1940_p6 = scmp.lt.s32.totalorder %s1936_s2, %s3412_s4 }
 0x146   : > { %p1938_p4 = scmp.ne.s32.totalorder %s1936_s2, %s1937_s9  ;;  %p1941_p8 = scmp.lt.s32.totalorder %s2777_s1, %s1937_s9 }
 0x148   : > { %p1942_p9 = por %p1941_p8, %p1940_p6 }
 0x14a   : > { %p1943_p10 = pnand %p1942_p9, %p1938_p4 }
 0x14c   : > { %1946 = shalt.err (!%p1943_p10)  }
 0x14d   : > { %590 = dma.hbm_to_vmem [thread:$0]  %s586_s27, 16, %s588_s0, [#allocation3] }
 0x14e   : > { %s1320_s14 = sld [smem:[#allocation4 + $0x13]]  ;;  %s1959_s17 = sshra.s32 %s602_s13, 4  ;;  %s1960_s17 = int_to_ptr.hbm [resolvable:$true] %s1959_s17 }
 0x14f   : > { %s1961_s7 = scalar_lea.hbm %s1960_s17, 1  ;;  %p1964_p12 = scmp.lt.s32.totalorder %s1960_s17, %s3412_s4 }
 0x150   : > { %p1962_p11 = scmp.ne.s32.totalorder %s1960_s17, %s1961_s7  ;;  %p1965_p13 = scmp.lt.s32.totalorder %s2777_s1, %s1961_s7 }
 0x152   : > { %p1966_p1 = por %p1965_p13, %p1964_p12 }
 0x154   : > { %p1967_p2 = pnand %p1966_p1, %p1962_p11 }
 0x156   : > { %1970 = shalt.err (!%p1967_p2)  }
 0x157   : > { %606 = dma.hbm_to_vmem [thread:$0]  %s602_s13, 16, %s604_s8, [#allocation3] }
 0x158   : > { %s2572_s26 = smov [#allocation2 + $0x13]   ;;  %s608_s27 = scalar_lea.hbm %s3412_s4, %s1320_s14 }
 0x159   : > { %s619_s6 = sshll.u32 %s2572_s26, 4  ;;  %s617_s12 = sshll.u32 %s608_s27, 4  ;;  %s620_s6 = int_to_ptr.vmem [resolvable:$true] %s619_s6  ;;  %s618_s12 = int_to_ptr.hbm [resolvable:$true] %s617_s12 }
 0x15a   : > { %s1983_s30 = sshra.s32 %s618_s12, 4  ;;  %s1984_s30 = int_to_ptr.hbm [resolvable:$true] %s1983_s30 }
 0x15b   : > { %s1985_s11 = scalar_lea.hbm %s1984_s30, 1  ;;  %p1988_p5 = scmp.lt.s32.totalorder %s1984_s30, %s3412_s4 }
 0x15c   : > { %p1986_p3 = scmp.ne.s32.totalorder %s1984_s30, %s1985_s11  ;;  %p1989_p7 = scmp.lt.s32.totalorder %s2777_s1, %s1985_s11 }
 0x15e   : > { %p1990_p0 = por %p1989_p7, %p1988_p5 }
 0x160   : > { %p1991_p4 = pnand %p1990_p0, %p1986_p3 }
 0x162   : > { %1994 = shalt.err (!%p1991_p4)  }
 0x163   : > { %622 = dma.hbm_to_vmem [thread:$0]  %s618_s12, 16, %s620_s6, [#allocation3] }
 0x164 PF: > { %s623_s8 = sadd.s32 1, %s2668_s23 }
 0x165   : > { %p1321_p6 = scmp.ge.s32.totalorder %s623_s8, 8 }
 0x167   : > { %627 = sbr.rel (%p1321_p6) target bundleno = 812 (0x32c), region = 140 }
 0x16c   : > { %s628_s13 = ssub.s32 1, %s3446_s15  ;;  %s2967_s24 = smul.u32 20, %s623_s8 }
 0x16d   : > { %s632_s10 = smul.u32 24, %s628_s13 }
 0x16e   : > { %s630_s14 = sld [smem:[#allocation4 + %s2967_s24]]  ;;  %s648_s17 = sadd.s32 1, %s2967_s24 }
 0x16f   : > { %s649_s1 = sld [smem:[#allocation4 + %s648_s17]]  ;;  %s2971_s7 = scalar_lea.vmem [#allocation2], %s632_s10 }
 0x170   : > { %s644_s18 = sshll.u32 %s2971_s7, 4  ;;  %s1164_s16 = scalar_lea.vmem %s2971_s7, 1 [#allocation2]  ;;  %s2975_s18 = int_to_ptr.vmem [resolvable:$true] %s644_s18 }
 0x171   : > { %s2977_s26 = sshll.u32 %s1164_s16, 4  ;;  %s666_s6 = sadd.s32 2, %s2967_s24 }
 0x172   : > { %3432 = sst [smem:[#allocation102_spill]] %s2977_s26  ;;  %s1168_s0 = scalar_lea.vmem %s2971_s7, 2 [#allocation2] }
 0x173   : > { %s2981_s29 = sld [smem:[#allocation4 + %s666_s6]]  ;;  %s2987_s11 = sshll.u32 %s1168_s0, 4  ;;  %s681_s11 = int_to_ptr.vmem [resolvable:$true] %s2987_s11 }
 0x174   : > { %s631_s30 = scalar_lea.hbm %s3412_s4, %s630_s14  ;;  %s2994_s16 = scalar_lea.sflag [#allocation3], %s628_s13 }
 0x175   : > { %s642_s2 = sshll.u32 %s631_s30, 4  ;;  %s650_s10 = scalar_lea.hbm %s3412_s4, %s649_s1  ;;  %s643_s2 = int_to_ptr.hbm [resolvable:$true] %s642_s2 }
 0x176   : > { %s2992_s17 = sshll.u32 %s650_s10, 4  ;;  %s2007_s26 = sshra.s32 %s643_s2, 4  ;;  %s2008_s26 = int_to_ptr.hbm [resolvable:$true] %s2007_s26  ;;  %s661_s17 = int_to_ptr.hbm [resolvable:$true] %s2992_s17 }
 0x177   : > { %s2009_s6 = scalar_lea.hbm %s2008_s26, 1  ;;  %s2999_s14 = scalar_lea.hbm %s3412_s4, 128 }
 0x178   : > { %p2010_p8 = scmp.ne.s32.totalorder %s2008_s26, %s2009_s6  ;;  %p2012_p9 = scmp.lt.s32.totalorder %s2008_s26, %s3412_s4 }
 0x179   : > { %p2013_p10 = scmp.lt.s32.totalorder %s2999_s14, %s2009_s6 }
 0x17b   : > { %p2014_p11 = por %p2013_p10, %p2012_p9 }
 0x17d   : > { %p2015_p12 = pnand %p2014_p11, %p2010_p8 }
 0x17f   : > { %2018 = shalt.err (!%p2015_p12)  }
 0x180   : > { %s2019_s13 = sshra.s32 %s2975_s18, 4  ;;  %s2573_s12 = smov [#allocation2]   ;;  %s2020_s13 = int_to_ptr.vmem [resolvable:$true] %s2019_s13 }
 0x181   : > { %s2021_s1 = scalar_lea.vmem %s2020_s13, 1  ;;  %s3006_s30 = scalar_lea.vmem %s2573_s12, 48 }
 0x182   : > { %p2022_p13 = scmp.ne.s32.totalorder %s2020_s13, %s2021_s1  ;;  %p2024_p1 = scmp.lt.s32.totalorder %s2020_s13, [#allocation2] }
 0x183   : > { %p2025_p2 = scmp.lt.s32.totalorder %s3006_s30, %s2021_s1 }
 0x185   : > { %p2026_p3 = por %p2025_p2, %p2024_p1 }
 0x187   : > { %p2027_p5 = pnand %p2026_p3, %p2022_p13 }
 0x189   : > { %2030 = shalt.err (!%p2027_p5)  }
 0x18a   : > { %647 = dma.hbm_to_vmem [thread:$0]  %s643_s2, 16, %s2975_s18, %s2994_s16 }
 0x18b   : > { %s2031_s3 = sshra.s32 %s661_s17, 4  ;;  %s2032_s3 = int_to_ptr.hbm [resolvable:$true] %s2031_s3 }
 0x18c   : > { %s2033_s25 = scalar_lea.hbm %s2032_s3, 1  ;;  %p2036_p0 = scmp.lt.s32.totalorder %s2032_s3, %s3412_s4 }
 0x18d   : > { %p2034_p7 = scmp.ne.s32.totalorder %s2032_s3, %s2033_s25  ;;  %p2037_p4 = scmp.lt.s32.totalorder %s2999_s14, %s2033_s25 }
 0x18f   : > { %p2038_p6 = por %p2037_p4, %p2036_p0 }
 0x191   : > { %p2039_p8 = pnand %p2038_p6, %p2034_p7 }
 0x193   : > { %2042 = shalt.err (!%p2039_p8)  }
 0x194   : > { %s3433_s8 = sld [smem:[#allocation102_spill]] }
 0x19a   : > { %s3434_s10 = int_to_ptr.vmem [resolvable:$true] %s3433_s8 }
 0x19b   : > { %s2043_s6 = sshra.s32 %s3434_s10, 4  ;;  %s2044_s6 = int_to_ptr.vmem [resolvable:$true] %s2043_s6 }
 0x19c   : > { %s2045_s18 = scalar_lea.vmem %s2044_s6, 1  ;;  %p2048_p10 = scmp.lt.s32.totalorder %s2044_s6, [#allocation2] }
 0x19d   : > { %p2046_p9 = scmp.ne.s32.totalorder %s2044_s6, %s2045_s18  ;;  %p2049_p11 = scmp.lt.s32.totalorder %s3006_s30, %s2045_s18 }
 0x19f   : > { %p2050_p12 = por %p2049_p11, %p2048_p10 }
 0x1a1   : > { %p2051_p13 = pnand %p2050_p12, %p2046_p9 }
 0x1a3   : > { %2054 = shalt.err (!%p2051_p13)  }
 0x1a4   : > { %s3435_s2 = smov %s3434_s10  ;;  %s668_s13 = scalar_lea.hbm %s3412_s4, %s2981_s29 }
 0x1a5   : > { %665 = dma.hbm_to_vmem [thread:$0]  %s661_s17, 16, %s3435_s2, %s2994_s16 }
 0x1a6   : > { %s684_s1 = sadd.s32 3, %s2967_s24  ;;  %s678_s12 = sshll.u32 %s668_s13, 4  ;;  %s679_s12 = int_to_ptr.hbm [resolvable:$true] %s678_s12 }
 0x1a7   : > { %s3028_s3 = sld [smem:[#allocation4 + %s684_s1]]  ;;  %s1172_s25 = scalar_lea.vmem %s2971_s7, 3 [#allocation2] }
 0x1a8   : > { %s2055_s26 = sshra.s32 %s679_s12, 4  ;;  %s2056_s26 = int_to_ptr.hbm [resolvable:$true] %s2055_s26 }
 0x1a9   : > { %s2057_s9 = scalar_lea.hbm %s2056_s26, 1  ;;  %p2060_p2 = scmp.lt.s32.totalorder %s2056_s26, %s3412_s4 }
 0x1aa   : > { %p2058_p1 = scmp.ne.s32.totalorder %s2056_s26, %s2057_s9  ;;  %p2061_p3 = scmp.lt.s32.totalorder %s2999_s14, %s2057_s9 }
 0x1ac   : > { %p2062_p5 = por %p2061_p3, %p2060_p2 }
 0x1ae   : > { %p2063_p7 = pnand %p2062_p5, %p2058_p1 }
 0x1b0   : > { %2066 = shalt.err (!%p2063_p7)  }
 0x1b1   : > { %s2067_s29 = sshra.s32 %s681_s11, 4  ;;  %s2068_s29 = int_to_ptr.vmem [resolvable:$true] %s2067_s29 }
 0x1b2   : > { %s2069_s17 = scalar_lea.vmem %s2068_s29, 1  ;;  %p2072_p4 = scmp.lt.s32.totalorder %s2068_s29, [#allocation2] }
 0x1b3   : > { %p2070_p0 = scmp.ne.s32.totalorder %s2068_s29, %s2069_s17  ;;  %p2073_p6 = scmp.lt.s32.totalorder %s3006_s30, %s2069_s17 }
 0x1b5   : > { %p2074_p8 = por %p2073_p6, %p2072_p4 }
 0x1b7   : > { %p2075_p9 = pnand %p2074_p8, %p2070_p0 }
 0x1b9   : > { %2078 = shalt.err (!%p2075_p9)  }
 0x1ba   : > { %683 = dma.hbm_to_vmem [thread:$0]  %s679_s12, 16, %s681_s11, %s2994_s16 }
 0x1bb   : > { %s3041_s6 = sshll.u32 %s1172_s25, 4  ;;  %s702_s18 = sadd.s32 4, %s2967_s24  ;;  %s699_s6 = int_to_ptr.vmem [resolvable:$true] %s3041_s6 }
 0x1bc   : > { %s3045_s2 = sld [smem:[#allocation4 + %s702_s18]]  ;;  %s1176_s0 = scalar_lea.vmem %s2971_s7, 4 [#allocation2] }
 0x1bd   : > { %s720_s27 = sadd.s32 5, %s2967_s24  ;;  %s686_s26 = scalar_lea.hbm %s3412_s4, %s3028_s3 }
 0x1be   : > { %s3053_s9 = sshll.u32 %s1176_s0, 4  ;;  %s696_s8 = sshll.u32 %s686_s26, 4  ;;  %s717_s9 = int_to_ptr.vmem [resolvable:$true] %s3053_s9  ;;  %s697_s8 = int_to_ptr.hbm [resolvable:$true] %s696_s8 }
 0x1bf   : > { %s3056_s11 = sld [smem:[#allocation4 + %s720_s27]]  ;;  %s2079_s12 = sshra.s32 %s697_s8, 4  ;;  %s2080_s12 = int_to_ptr.hbm [resolvable:$true] %s2079_s12 }
 0x1c0   : > { %s2081_s25 = scalar_lea.hbm %s2080_s12, 1  ;;  %p2084_p11 = scmp.lt.s32.totalorder %s2080_s12, %s3412_s4 }
 0x1c1   : > { %p2082_p10 = scmp.ne.s32.totalorder %s2080_s12, %s2081_s25  ;;  %p2085_p12 = scmp.lt.s32.totalorder %s2999_s14, %s2081_s25 }
 0x1c3   : > { %p2086_p13 = por %p2085_p12, %p2084_p11 }
 0x1c5   : > { %p2087_p1 = pnand %p2086_p13, %p2082_p10 }
 0x1c7   : > { %2090 = shalt.err (!%p2087_p1)  }
 0x1c8   : > { %s2091_s3 = sshra.s32 %s699_s6, 4  ;;  %s2092_s3 = int_to_ptr.vmem [resolvable:$true] %s2091_s3 }
 0x1c9   : > { %s2093_s17 = scalar_lea.vmem %s2092_s3, 1  ;;  %p2096_p3 = scmp.lt.s32.totalorder %s2092_s3, [#allocation2] }
 0x1ca   : > { %p2094_p2 = scmp.ne.s32.totalorder %s2092_s3, %s2093_s17  ;;  %p2097_p5 = scmp.lt.s32.totalorder %s3006_s30, %s2093_s17 }
 0x1cc   : > { %p2098_p7 = por %p2097_p5, %p2096_p3 }
 0x1ce   : > { %p2099_p0 = pnand %p2098_p7, %p2094_p2 }
 0x1d0   : > { %2102 = shalt.err (!%p2099_p0)  }
 0x1d1   : > { %701 = dma.hbm_to_vmem [thread:$0]  %s697_s8, 16, %s699_s6, %s2994_s16 }
 0x1d2   : > { %s704_s27 = scalar_lea.hbm %s3412_s4, %s3045_s2  ;;  %s1180_s13 = scalar_lea.vmem %s2971_s7, 5 [#allocation2] }
 0x1d3   : > { %s714_s1 = sshll.u32 %s704_s27, 4  ;;  %s3073_s26 = sshll.u32 %s1180_s13, 4  ;;  %s715_s1 = int_to_ptr.hbm [resolvable:$true] %s714_s1  ;;  %s735_s26 = int_to_ptr.vmem [resolvable:$true] %s3073_s26 }
 0x1d4   : > { %s2103_s12 = sshra.s32 %s715_s1, 4  ;;  %s2104_s12 = int_to_ptr.hbm [resolvable:$true] %s2103_s12 }
 0x1d5   : > { %s2105_s25 = scalar_lea.hbm %s2104_s12, 1  ;;  %p2108_p6 = scmp.lt.s32.totalorder %s2104_s12, %s3412_s4 }
 0x1d6   : > { %p2106_p4 = scmp.ne.s32.totalorder %s2104_s12, %s2105_s25  ;;  %p2109_p8 = scmp.lt.s32.totalorder %s2999_s14, %s2105_s25 }
 0x1d8   : > { %p2110_p9 = por %p2109_p8, %p2108_p6 }
 0x1da   : > { %p2111_p10 = pnand %p2110_p9, %p2106_p4 }
 0x1dc   : > { %2114 = shalt.err (!%p2111_p10)  }
 0x1dd   : > { %s2115_s6 = sshra.s32 %s717_s9, 4  ;;  %s2116_s6 = int_to_ptr.vmem [resolvable:$true] %s2115_s6 }
 0x1de   : > { %s2117_s2 = scalar_lea.vmem %s2116_s6, 1  ;;  %p2120_p12 = scmp.lt.s32.totalorder %s2116_s6, [#allocation2] }
 0x1df   : > { %p2118_p11 = scmp.ne.s32.totalorder %s2116_s6, %s2117_s2  ;;  %p2121_p13 = scmp.lt.s32.totalorder %s3006_s30, %s2117_s2 }
 0x1e1   : > { %p2122_p1 = por %p2121_p13, %p2120_p12 }
 0x1e3   : > { %p2123_p2 = pnand %p2122_p1, %p2118_p11 }
 0x1e5   : > { %2126 = shalt.err (!%p2123_p2)  }
 0x1e6   : > { %719 = dma.hbm_to_vmem [thread:$0]  %s715_s1, 16, %s717_s9, %s2994_s16 }
 0x1e7   : > { %s722_s17 = scalar_lea.hbm %s3412_s4, %s3056_s11  ;;  %s738_s18 = sadd.s32 6, %s2967_s24 }
 0x1e8   : > { %s732_s0 = sshll.u32 %s722_s17, 4  ;;  %s3091_s27 = sld [smem:[#allocation4 + %s738_s18]]  ;;  %s733_s0 = int_to_ptr.hbm [resolvable:$true] %s732_s0 }
 0x1e9   : > { %s1184_s13 = scalar_lea.vmem %s2971_s7, 6 [#allocation2]  ;;  %s2127_s12 = sshra.s32 %s733_s0, 4  ;;  %s2128_s12 = int_to_ptr.hbm [resolvable:$true] %s2127_s12 }
 0x1ea   : > { %s2129_s25 = scalar_lea.hbm %s2128_s12, 1  ;;  %p2132_p5 = scmp.lt.s32.totalorder %s2128_s12, %s3412_s4 }
 0x1eb   : > { %p2130_p3 = scmp.ne.s32.totalorder %s2128_s12, %s2129_s25  ;;  %p2133_p7 = scmp.lt.s32.totalorder %s2999_s14, %s2129_s25 }
 0x1ed   : > { %p2134_p0 = por %p2133_p7, %p2132_p5 }
 0x1ef   : > { %p2135_p4 = pnand %p2134_p0, %p2130_p3 }
 0x1f1   : > { %2138 = shalt.err (!%p2135_p4)  }
 0x1f2   : > { %s2139_s9 = sshra.s32 %s735_s26, 4  ;;  %s2140_s9 = int_to_ptr.vmem [resolvable:$true] %s2139_s9 }
 0x1f3   : > { %s2141_s11 = scalar_lea.vmem %s2140_s9, 1  ;;  %p2144_p8 = scmp.lt.s32.totalorder %s2140_s9, [#allocation2] }
 0x1f4   : > { %p2142_p6 = scmp.ne.s32.totalorder %s2140_s9, %s2141_s11  ;;  %p2145_p9 = scmp.lt.s32.totalorder %s3006_s30, %s2141_s11 }
 0x1f6   : > { %p2146_p10 = por %p2145_p9, %p2144_p8 }
 0x1f8   : > { %p2147_p11 = pnand %p2146_p10, %p2142_p6 }
 0x1fa   : > { %2150 = shalt.err (!%p2147_p11)  }
 0x1fb   : > { %737 = dma.hbm_to_vmem [thread:$0]  %s733_s0, 16, %s735_s26, %s2994_s16 }
 0x1fc   : > { %s3104_s1 = sshll.u32 %s1184_s13, 4  ;;  %s756_s6 = sadd.s32 7, %s2967_s24  ;;  %s753_s1 = int_to_ptr.vmem [resolvable:$true] %s3104_s1 }
 0x1fd   : > { %s3108_s2 = sld [smem:[#allocation4 + %s756_s6]]  ;;  %s1188_s8 = scalar_lea.vmem %s2971_s7, 7 [#allocation2] }
 0x1fe   : > { %s774_s3 = sadd.s32 8, %s2967_s24  ;;  %s740_s12 = scalar_lea.hbm %s3412_s4, %s3091_s27 }
 0x1ff   : > { %s3116_s25 = sshll.u32 %s1188_s8, 4  ;;  %s750_s10 = sshll.u32 %s740_s12, 4  ;;  %s771_s25 = int_to_ptr.vmem [resolvable:$true] %s3116_s25  ;;  %s751_s10 = int_to_ptr.hbm [resolvable:$true] %s750_s10 }
 0x200   : > { %s3119_s26 = sld [smem:[#allocation4 + %s774_s3]]  ;;  %s2151_s0 = sshra.s32 %s751_s10, 4  ;;  %s2152_s0 = int_to_ptr.hbm [resolvable:$true] %s2151_s0 }
 0x201   : > { %s2153_s13 = scalar_lea.hbm %s2152_s0, 1  ;;  %p2156_p13 = scmp.lt.s32.totalorder %s2152_s0, %s3412_s4 }
 0x202   : > { %p2154_p12 = scmp.ne.s32.totalorder %s2152_s0, %s2153_s13  ;;  %p2157_p1 = scmp.lt.s32.totalorder %s2999_s14, %s2153_s13 }
 0x204   : > { %p2158_p2 = por %p2157_p1, %p2156_p13 }
 0x206   : > { %p2159_p3 = pnand %p2158_p2, %p2154_p12 }
 0x208   : > { %2162 = shalt.err (!%p2159_p3)  }
 0x209   : > { %s2163_s27 = sshra.s32 %s753_s1, 4  ;;  %s2164_s27 = int_to_ptr.vmem [resolvable:$true] %s2163_s27 }
 0x20a   : > { %s2165_s11 = scalar_lea.vmem %s2164_s27, 1  ;;  %p2168_p7 = scmp.lt.s32.totalorder %s2164_s27, [#allocation2] }
 0x20b   : > { %p2166_p5 = scmp.ne.s32.totalorder %s2164_s27, %s2165_s11  ;;  %p2169_p0 = scmp.lt.s32.totalorder %s3006_s30, %s2165_s11 }
 0x20d   : > { %p2170_p4 = por %p2169_p0, %p2168_p7 }
 0x20f   : > { %p2171_p6 = pnand %p2170_p4, %p2166_p5 }
 0x211   : > { %2174 = shalt.err (!%p2171_p6)  }
 0x212   : > { %755 = dma.hbm_to_vmem [thread:$0]  %s751_s10, 16, %s753_s1, %s2994_s16 }
 0x213   : > { %s758_s3 = scalar_lea.hbm %s3412_s4, %s3108_s2  ;;  %s1192_s17 = scalar_lea.vmem %s2971_s7, 8 [#allocation2] }
 0x214   : > { %s768_s18 = sshll.u32 %s758_s3, 4  ;;  %s3136_s12 = sshll.u32 %s1192_s17, 4  ;;  %s769_s18 = int_to_ptr.hbm [resolvable:$true] %s768_s18  ;;  %s789_s12 = int_to_ptr.vmem [resolvable:$true] %s3136_s12 }
 0x215   : > { %s2175_s0 = sshra.s32 %s769_s18, 4  ;;  %s2176_s0 = int_to_ptr.hbm [resolvable:$true] %s2175_s0 }
 0x216   : > { %s2177_s13 = scalar_lea.hbm %s2176_s0, 1  ;;  %p2180_p9 = scmp.lt.s32.totalorder %s2176_s0, %s3412_s4 }
 0x217   : > { %p2178_p8 = scmp.ne.s32.totalorder %s2176_s0, %s2177_s13  ;;  %p2181_p10 = scmp.lt.s32.totalorder %s2999_s14, %s2177_s13 }
 0x219   : > { %p2182_p11 = por %p2181_p10, %p2180_p9 }
 0x21b   : > { %p2183_p12 = pnand %p2182_p11, %p2178_p8 }
 0x21d   : > { %2186 = shalt.err (!%p2183_p12)  }
 0x21e   : > { %s2187_s1 = sshra.s32 %s771_s25, 4  ;;  %s2188_s1 = int_to_ptr.vmem [resolvable:$true] %s2187_s1 }
 0x21f   : > { %s2189_s2 = scalar_lea.vmem %s2188_s1, 1  ;;  %p2192_p1 = scmp.lt.s32.totalorder %s2188_s1, [#allocation2] }
 0x220   : > { %p2190_p13 = scmp.ne.s32.totalorder %s2188_s1, %s2189_s2  ;;  %p2193_p2 = scmp.lt.s32.totalorder %s3006_s30, %s2189_s2 }
 0x222   : > { %p2194_p3 = por %p2193_p2, %p2192_p1 }
 0x224   : > { %p2195_p5 = pnand %p2194_p3, %p2190_p13 }
 0x226   : > { %2198 = shalt.err (!%p2195_p5)  }
 0x227   : > { %773 = dma.hbm_to_vmem [thread:$0]  %s769_s18, 16, %s771_s25, %s2994_s16 }
 0x228   : > { %s776_s11 = scalar_lea.hbm %s3412_s4, %s3119_s26  ;;  %s792_s6 = sadd.s32 9, %s2967_s24 }
 0x229   : > { %s786_s8 = sshll.u32 %s776_s11, 4  ;;  %s3154_s3 = sld [smem:[#allocation4 + %s792_s6]]  ;;  %s787_s8 = int_to_ptr.hbm [resolvable:$true] %s786_s8 }
 0x22a   : > { %s1196_s17 = scalar_lea.vmem %s2971_s7, 9 [#allocation2]  ;;  %s2199_s0 = sshra.s32 %s787_s8, 4  ;;  %s2200_s0 = int_to_ptr.hbm [resolvable:$true] %s2199_s0 }
 0x22b   : > { %s2201_s13 = scalar_lea.hbm %s2200_s0, 1  ;;  %p2204_p0 = scmp.lt.s32.totalorder %s2200_s0, %s3412_s4 }
 0x22c   : > { %p2202_p7 = scmp.ne.s32.totalorder %s2200_s0, %s2201_s13  ;;  %p2205_p4 = scmp.lt.s32.totalorder %s2999_s14, %s2201_s13 }
 0x22e   : > { %p2206_p6 = por %p2205_p4, %p2204_p0 }
 0x230   : > { %p2207_p8 = pnand %p2206_p6, %p2202_p7 }
 0x232   : > { %2210 = shalt.err (!%p2207_p8)  }
 0x233   : > { %s2211_s25 = sshra.s32 %s789_s12, 4  ;;  %s2212_s25 = int_to_ptr.vmem [resolvable:$true] %s2211_s25 }
 0x234   : > { %s2213_s26 = scalar_lea.vmem %s2212_s25, 1  ;;  %p2216_p10 = scmp.lt.s32.totalorder %s2212_s25, [#allocation2] }
 0x235   : > { %p2214_p9 = scmp.ne.s32.totalorder %s2212_s25, %s2213_s26  ;;  %p2217_p11 = scmp.lt.s32.totalorder %s3006_s30, %s2213_s26 }
 0x237   : > { %p2218_p12 = por %p2217_p11, %p2216_p10 }
 0x239   : > { %p2219_p13 = pnand %p2218_p12, %p2214_p9 }
 0x23b   : > { %2222 = shalt.err (!%p2219_p13)  }
 0x23c   : > { %791 = dma.hbm_to_vmem [thread:$0]  %s787_s8, 16, %s789_s12, %s2994_s16 }
 0x23d   : > { %s3167_s18 = sshll.u32 %s1196_s17, 4  ;;  %s810_s1 = sadd.s32 10, %s2967_s24  ;;  %s807_s18 = int_to_ptr.vmem [resolvable:$true] %s3167_s18 }
 0x23e   : > { %s3171_s2 = sld [smem:[#allocation4 + %s810_s1]]  ;;  %s1200_s10 = scalar_lea.vmem %s2971_s7, 10 [#allocation2] }
 0x23f   : > { %s828_s27 = sadd.s32 11, %s2967_s24  ;;  %s794_s0 = scalar_lea.hbm %s3412_s4, %s3154_s3 }
 0x240   : > { %s3179_s13 = sshll.u32 %s1200_s10, 4  ;;  %s804_s29 = sshll.u32 %s794_s0, 4  ;;  %s825_s13 = int_to_ptr.vmem [resolvable:$true] %s3179_s13  ;;  %s805_s29 = int_to_ptr.hbm [resolvable:$true] %s804_s29 }
 0x241   : > { %s3182_s12 = sld [smem:[#allocation4 + %s828_s27]]  ;;  %s2223_s8 = sshra.s32 %s805_s29, 4  ;;  %s2224_s8 = int_to_ptr.hbm [resolvable:$true] %s2223_s8 }
 0x242   : > { %s2225_s17 = scalar_lea.hbm %s2224_s8, 1  ;;  %p2228_p2 = scmp.lt.s32.totalorder %s2224_s8, %s3412_s4 }
 0x243   : > { %p2226_p1 = scmp.ne.s32.totalorder %s2224_s8, %s2225_s17  ;;  %p2229_p3 = scmp.lt.s32.totalorder %s2999_s14, %s2225_s17 }
 0x245   : > { %p2230_p5 = por %p2229_p3, %p2228_p2 }
 0x247   : > { %p2231_p7 = pnand %p2230_p5, %p2226_p1 }
 0x249   : > { %2234 = shalt.err (!%p2231_p7)  }
 0x24a   : > { %s2235_s3 = sshra.s32 %s807_s18, 4  ;;  %s2236_s3 = int_to_ptr.vmem [resolvable:$true] %s2235_s3 }
 0x24b   : > { %s2237_s26 = scalar_lea.vmem %s2236_s3, 1  ;;  %p2240_p4 = scmp.lt.s32.totalorder %s2236_s3, [#allocation2] }
 0x24c   : > { %p2238_p0 = scmp.ne.s32.totalorder %s2236_s3, %s2237_s26  ;;  %p2241_p6 = scmp.lt.s32.totalorder %s3006_s30, %s2237_s26 }
 0x24e   : > { %p2242_p8 = por %p2241_p6, %p2240_p4 }
 0x250   : > { %p2243_p9 = pnand %p2242_p8, %p2238_p0 }
 0x252   : > { %2246 = shalt.err (!%p2243_p9)  }
 0x253   : > { %809 = dma.hbm_to_vmem [thread:$0]  %s805_s29, 16, %s807_s18, %s2994_s16 }
 0x254   : > { %s812_s27 = scalar_lea.hbm %s3412_s4, %s3171_s2  ;;  %s1204_s11 = scalar_lea.vmem %s2971_s7, 11 [#allocation2] }
 0x255   : > { %s822_s6 = sshll.u32 %s812_s27, 4  ;;  %s3199_s0 = sshll.u32 %s1204_s11, 4  ;;  %s823_s6 = int_to_ptr.hbm [resolvable:$true] %s822_s6  ;;  %s843_s0 = int_to_ptr.vmem [resolvable:$true] %s3199_s0 }
 0x256   : > { %s2247_s8 = sshra.s32 %s823_s6, 4  ;;  %s2248_s8 = int_to_ptr.hbm [resolvable:$true] %s2247_s8 }
 0x257   : > { %s2249_s17 = scalar_lea.hbm %s2248_s8, 1  ;;  %p2252_p11 = scmp.lt.s32.totalorder %s2248_s8, %s3412_s4 }
 0x258   : > { %p2250_p10 = scmp.ne.s32.totalorder %s2248_s8, %s2249_s17  ;;  %p2253_p12 = scmp.lt.s32.totalorder %s2999_s14, %s2249_s17 }
 0x25a   : > { %p2254_p13 = por %p2253_p12, %p2252_p11 }
 0x25c   : > { %p2255_p1 = pnand %p2254_p13, %p2250_p10 }
 0x25e   : > { %2258 = shalt.err (!%p2255_p1)  }
 0x25f   : > { %s2259_s18 = sshra.s32 %s825_s13, 4  ;;  %s2260_s18 = int_to_ptr.vmem [resolvable:$true] %s2259_s18 }
 0x260   : > { %s2261_s2 = scalar_lea.vmem %s2260_s18, 1  ;;  %p2264_p3 = scmp.lt.s32.totalorder %s2260_s18, [#allocation2] }
 0x261   : > { %p2262_p2 = scmp.ne.s32.totalorder %s2260_s18, %s2261_s2  ;;  %p2265_p5 = scmp.lt.s32.totalorder %s3006_s30, %s2261_s2 }
 0x263   : > { %p2266_p7 = por %p2265_p5, %p2264_p3 }
 0x265   : > { %p2267_p0 = pnand %p2266_p7, %p2262_p2 }
 0x267   : > { %2270 = shalt.err (!%p2267_p0)  }
 0x268   : > { %827 = dma.hbm_to_vmem [thread:$0]  %s823_s6, 16, %s825_s13, %s2994_s16 }
 0x269   : > { %s830_s26 = scalar_lea.hbm %s3412_s4, %s3182_s12  ;;  %s846_s1 = sadd.s32 12, %s2967_s24 }
 0x26a   : > { %s840_s10 = sshll.u32 %s830_s26, 4  ;;  %s3217_s27 = sld [smem:[#allocation4 + %s846_s1]]  ;;  %s841_s10 = int_to_ptr.hbm [resolvable:$true] %s840_s10 }
 0x26b   : > { %s1208_s11 = scalar_lea.vmem %s2971_s7, 12 [#allocation2]  ;;  %s2271_s8 = sshra.s32 %s841_s10, 4  ;;  %s2272_s8 = int_to_ptr.hbm [resolvable:$true] %s2271_s8 }
 0x26c   : > { %s2273_s17 = scalar_lea.hbm %s2272_s8, 1  ;;  %p2276_p6 = scmp.lt.s32.totalorder %s2272_s8, %s3412_s4 }
 0x26d   : > { %p2274_p4 = scmp.ne.s32.totalorder %s2272_s8, %s2273_s17  ;;  %p2277_p8 = scmp.lt.s32.totalorder %s2999_s14, %s2273_s17 }
 0x26f   : > { %p2278_p9 = por %p2277_p8, %p2276_p6 }
 0x271   : > { %p2279_p10 = pnand %p2278_p9, %p2274_p4 }
 0x273   : > { %2282 = shalt.err (!%p2279_p10)  }
 0x274   : > { %s2283_s13 = sshra.s32 %s843_s0, 4  ;;  %s2284_s13 = int_to_ptr.vmem [resolvable:$true] %s2283_s13 }
 0x275   : > { %s2285_s12 = scalar_lea.vmem %s2284_s13, 1  ;;  %p2288_p12 = scmp.lt.s32.totalorder %s2284_s13, [#allocation2] }
 0x276   : > { %p2286_p11 = scmp.ne.s32.totalorder %s2284_s13, %s2285_s12  ;;  %p2289_p13 = scmp.lt.s32.totalorder %s3006_s30, %s2285_s12 }
 0x278   : > { %p2290_p1 = por %p2289_p13, %p2288_p12 }
 0x27a   : > { %p2291_p2 = pnand %p2290_p1, %p2286_p11 }
 0x27c   : > { %2294 = shalt.err (!%p2291_p2)  }
 0x27d   : > { %845 = dma.hbm_to_vmem [thread:$0]  %s841_s10, 16, %s843_s0, %s2994_s16 }
 0x27e   : > { %s3230_s6 = sshll.u32 %s1208_s11, 4  ;;  %s864_s18 = sadd.s32 13, %s2967_s24  ;;  %s861_s6 = int_to_ptr.vmem [resolvable:$true] %s3230_s6 }
 0x27f   : > { %s3234_s2 = sld [smem:[#allocation4 + %s864_s18]]  ;;  %s1212_s29 = scalar_lea.vmem %s2971_s7, 13 [#allocation2] }
 0x280   : > { %s882_s3 = sadd.s32 14, %s2967_s24  ;;  %s848_s8 = scalar_lea.hbm %s3412_s4, %s3217_s27 }
 0x281   : > { %s3242_s17 = sshll.u32 %s1212_s29, 4  ;;  %s858_s9 = sshll.u32 %s848_s8, 4  ;;  %s879_s17 = int_to_ptr.vmem [resolvable:$true] %s3242_s17  ;;  %s859_s9 = int_to_ptr.hbm [resolvable:$true] %s858_s9 }
 0x282   : > { %s3245_s0 = sld [smem:[#allocation4 + %s882_s3]]  ;;  %s2295_s10 = sshra.s32 %s859_s9, 4  ;;  %s2296_s10 = int_to_ptr.hbm [resolvable:$true] %s2295_s10 }
 0x283   : > { %s2297_s11 = scalar_lea.hbm %s2296_s10, 1  ;;  %p2300_p5 = scmp.lt.s32.totalorder %s2296_s10, %s3412_s4 }
 0x284   : > { %p2298_p3 = scmp.ne.s32.totalorder %s2296_s10, %s2297_s11  ;;  %p2301_p7 = scmp.lt.s32.totalorder %s2999_s14, %s2297_s11 }
 0x286   : > { %p2302_p0 = por %p2301_p7, %p2300_p5 }
 0x288   : > { %p2303_p4 = pnand %p2302_p0, %p2298_p3 }
 0x28a   : > { %2306 = shalt.err (!%p2303_p4)  }
 0x28b   : > { %s2307_s27 = sshra.s32 %s861_s6, 4  ;;  %s2308_s27 = int_to_ptr.vmem [resolvable:$true] %s2307_s27 }
 0x28c   : > { %s2309_s12 = scalar_lea.vmem %s2308_s27, 1  ;;  %p2312_p8 = scmp.lt.s32.totalorder %s2308_s27, [#allocation2] }
 0x28d   : > { %p2310_p6 = scmp.ne.s32.totalorder %s2308_s27, %s2309_s12  ;;  %p2313_p9 = scmp.lt.s32.totalorder %s3006_s30, %s2309_s12 }
 0x28f   : > { %p2314_p10 = por %p2313_p9, %p2312_p8 }
 0x291   : > { %p2315_p11 = pnand %p2314_p10, %p2310_p6 }
 0x293   : > { %2318 = shalt.err (!%p2315_p11)  }
 0x294   : > { %863 = dma.hbm_to_vmem [thread:$0]  %s859_s9, 16, %s861_s6, %s2994_s16 }
 0x295   : > { %s866_s3 = scalar_lea.hbm %s3412_s4, %s3234_s2  ;;  %s1216_s26 = scalar_lea.vmem %s2971_s7, 14 [#allocation2] }
 0x296   : > { %s876_s1 = sshll.u32 %s866_s3, 4  ;;  %s3262_s8 = sshll.u32 %s1216_s26, 4  ;;  %s877_s1 = int_to_ptr.hbm [resolvable:$true] %s876_s1  ;;  %s897_s8 = int_to_ptr.vmem [resolvable:$true] %s3262_s8 }
 0x297   : > { %s2319_s10 = sshra.s32 %s877_s1, 4  ;;  %s2320_s10 = int_to_ptr.hbm [resolvable:$true] %s2319_s10 }
 0x298   : > { %s2321_s11 = scalar_lea.hbm %s2320_s10, 1  ;;  %p2324_p13 = scmp.lt.s32.totalorder %s2320_s10, %s3412_s4 }
 0x299   : > { %p2322_p12 = scmp.ne.s32.totalorder %s2320_s10, %s2321_s11  ;;  %p2325_p1 = scmp.lt.s32.totalorder %s2999_s14, %s2321_s11 }
 0x29b   : > { %p2326_p2 = por %p2325_p1, %p2324_p13 }
 0x29d   : > { %p2327_p3 = pnand %p2326_p2, %p2322_p12 }
 0x29f   : > { %2330 = shalt.err (!%p2327_p3)  }
 0x2a0   : > { %s2331_s6 = sshra.s32 %s879_s17, 4  ;;  %s2332_s6 = int_to_ptr.vmem [resolvable:$true] %s2331_s6 }
 0x2a1   : > { %s2333_s2 = scalar_lea.vmem %s2332_s6, 1  ;;  %p2336_p7 = scmp.lt.s32.totalorder %s2332_s6, [#allocation2] }
 0x2a2   : > { %p2334_p5 = scmp.ne.s32.totalorder %s2332_s6, %s2333_s2  ;;  %p2337_p0 = scmp.lt.s32.totalorder %s3006_s30, %s2333_s2 }
 0x2a4   : > { %p2338_p4 = por %p2337_p0, %p2336_p7 }
 0x2a6   : > { %p2339_p6 = pnand %p2338_p4, %p2334_p5 }
 0x2a8   : > { %2342 = shalt.err (!%p2339_p6)  }
 0x2a9   : > { %881 = dma.hbm_to_vmem [thread:$0]  %s877_s1, 16, %s879_s17, %s2994_s16 }
 0x2aa   : > { %s884_s12 = scalar_lea.hbm %s3412_s4, %s3245_s0  ;;  %s900_s18 = sadd.s32 15, %s2967_s24 }
 0x2ab   : > { %s894_s29 = sshll.u32 %s884_s12, 4  ;;  %s3280_s3 = sld [smem:[#allocation4 + %s900_s18]]  ;;  %s895_s29 = int_to_ptr.hbm [resolvable:$true] %s894_s29 }
 0x2ac   : > { %s1220_s26 = scalar_lea.vmem %s2971_s7, 15 [#allocation2]  ;;  %s2343_s10 = sshra.s32 %s895_s29, 4  ;;  %s2344_s10 = int_to_ptr.hbm [resolvable:$true] %s2343_s10 }
 0x2ad   : > { %s2345_s11 = scalar_lea.hbm %s2344_s10, 1  ;;  %p2348_p9 = scmp.lt.s32.totalorder %s2344_s10, %s3412_s4 }
 0x2ae   : > { %p2346_p8 = scmp.ne.s32.totalorder %s2344_s10, %s2345_s11  ;;  %p2349_p10 = scmp.lt.s32.totalorder %s2999_s14, %s2345_s11 }
 0x2b0   : > { %p2350_p11 = por %p2349_p10, %p2348_p9 }
 0x2b2   : > { %p2351_p12 = pnand %p2350_p11, %p2346_p8 }
 0x2b4   : > { %2354 = shalt.err (!%p2351_p12)  }
 0x2b5   : > { %s2355_s17 = sshra.s32 %s897_s8, 4  ;;  %s2356_s17 = int_to_ptr.vmem [resolvable:$true] %s2355_s17 }
 0x2b6   : > { %s2357_s0 = scalar_lea.vmem %s2356_s17, 1  ;;  %p2360_p1 = scmp.lt.s32.totalorder %s2356_s17, [#allocation2] }
 0x2b7   : > { %p2358_p13 = scmp.ne.s32.totalorder %s2356_s17, %s2357_s0  ;;  %p2361_p2 = scmp.lt.s32.totalorder %s3006_s30, %s2357_s0 }
 0x2b9   : > { %p2362_p3 = por %p2361_p2, %p2360_p1 }
 0x2bb   : > { %p2363_p5 = pnand %p2362_p3, %p2358_p13 }
 0x2bd   : > { %2366 = shalt.err (!%p2363_p5)  }
 0x2be   : > { %899 = dma.hbm_to_vmem [thread:$0]  %s895_s29, 16, %s897_s8, %s2994_s16 }
 0x2bf   : > { %s3293_s1 = sshll.u32 %s1220_s26, 4  ;;  %s918_s6 = sadd.s32 16, %s2967_s24  ;;  %s915_s1 = int_to_ptr.vmem [resolvable:$true] %s3293_s1 }
 0x2c0   : > { %s3297_s2 = sld [smem:[#allocation4 + %s918_s6]]  ;;  %s1224_s9 = scalar_lea.vmem %s2971_s7, 16 [#allocation2] }
 0x2c1   : > { %s936_s27 = sadd.s32 17, %s2967_s24  ;;  %s902_s10 = scalar_lea.hbm %s3412_s4, %s3280_s3 }
 0x2c2   : > { %s3305_s11 = sshll.u32 %s1224_s9, 4  ;;  %s912_s25 = sshll.u32 %s902_s10, 4  ;;  %s933_s11 = int_to_ptr.vmem [resolvable:$true] %s3305_s11  ;;  %s913_s25 = int_to_ptr.hbm [resolvable:$true] %s912_s25 }
 0x2c3   : > { %s3308_s8 = sld [smem:[#allocation4 + %s936_s27]]  ;;  %s2367_s29 = sshra.s32 %s913_s25, 4  ;;  %s2368_s29 = int_to_ptr.hbm [resolvable:$true] %s2367_s29 }
 0x2c4   : > { %s2369_s26 = scalar_lea.hbm %s2368_s29, 1  ;;  %p2372_p0 = scmp.lt.s32.totalorder %s2368_s29, %s3412_s4 }
 0x2c5   : > { %p2370_p7 = scmp.ne.s32.totalorder %s2368_s29, %s2369_s26  ;;  %p2373_p4 = scmp.lt.s32.totalorder %s2999_s14, %s2369_s26 }
 0x2c7   : > { %p2374_p6 = por %p2373_p4, %p2372_p0 }
 0x2c9   : > { %p2375_p8 = pnand %p2374_p6, %p2370_p7 }
 0x2cb   : > { %2378 = shalt.err (!%p2375_p8)  }
 0x2cc   : > { %s2379_s3 = sshra.s32 %s915_s1, 4  ;;  %s2380_s3 = int_to_ptr.vmem [resolvable:$true] %s2379_s3 }
 0x2cd   : > { %s2381_s0 = scalar_lea.vmem %s2380_s3, 1  ;;  %p2384_p10 = scmp.lt.s32.totalorder %s2380_s3, [#allocation2] }
 0x2ce   : > { %p2382_p9 = scmp.ne.s32.totalorder %s2380_s3, %s2381_s0  ;;  %p2385_p11 = scmp.lt.s32.totalorder %s3006_s30, %s2381_s0 }
 0x2d0   : > { %p2386_p12 = por %p2385_p11, %p2384_p10 }
 0x2d2   : > { %p2387_p13 = pnand %p2386_p12, %p2382_p9 }
 0x2d4   : > { %2390 = shalt.err (!%p2387_p13)  }
 0x2d5   : > { %917 = dma.hbm_to_vmem [thread:$0]  %s913_s25, 16, %s915_s1, %s2994_s16 }
 0x2d6   : > { %s920_s27 = scalar_lea.hbm %s3412_s4, %s3297_s2  ;;  %s1228_s12 = scalar_lea.vmem %s2971_s7, 17 [#allocation2] }
 0x2d7   : > { %s930_s18 = sshll.u32 %s920_s27, 4  ;;  %s3325_s10 = sshll.u32 %s1228_s12, 4  ;;  %s931_s18 = int_to_ptr.hbm [resolvable:$true] %s930_s18  ;;  %s951_s10 = int_to_ptr.vmem [resolvable:$true] %s3325_s10 }
 0x2d8   : > { %s2391_s29 = sshra.s32 %s931_s18, 4  ;;  %s2392_s29 = int_to_ptr.hbm [resolvable:$true] %s2391_s29 }
 0x2d9   : > { %s2393_s26 = scalar_lea.hbm %s2392_s29, 1  ;;  %p2396_p2 = scmp.lt.s32.totalorder %s2392_s29, %s3412_s4 }
 0x2da   : > { %p2394_p1 = scmp.ne.s32.totalorder %s2392_s29, %s2393_s26  ;;  %p2397_p3 = scmp.lt.s32.totalorder %s2999_s14, %s2393_s26 }
 0x2dc   : > { %p2398_p5 = por %p2397_p3, %p2396_p2 }
 0x2de   : > { %p2399_p7 = pnand %p2398_p5, %p2394_p1 }
 0x2e0   : > { %2402 = shalt.err (!%p2399_p7)  }
 0x2e1   : > { %s2403_s1 = sshra.s32 %s933_s11, 4  ;;  %s2404_s1 = int_to_ptr.vmem [resolvable:$true] %s2403_s1 }
 0x2e2   : > { %s2405_s2 = scalar_lea.vmem %s2404_s1, 1  ;;  %p2408_p4 = scmp.lt.s32.totalorder %s2404_s1, [#allocation2] }
 0x2e3   : > { %p2406_p0 = scmp.ne.s32.totalorder %s2404_s1, %s2405_s2  ;;  %p2409_p6 = scmp.lt.s32.totalorder %s3006_s30, %s2405_s2 }
 0x2e5   : > { %p2410_p8 = por %p2409_p6, %p2408_p4 }
 0x2e7   : > { %p2411_p9 = pnand %p2410_p8, %p2406_p0 }
 0x2e9   : > { %2414 = shalt.err (!%p2411_p9)  }
 0x2ea   : > { %935 = dma.hbm_to_vmem [thread:$0]  %s931_s18, 16, %s933_s11, %s2994_s16 }
 0x2eb   : > { %s938_s0 = scalar_lea.hbm %s3412_s4, %s3308_s8  ;;  %s954_s6 = sadd.s32 18, %s2967_s24 }
 0x2ec   : > { %s948_s9 = sshll.u32 %s938_s0, 4  ;;  %s955_s27 = sld [smem:[#allocation4 + %s954_s6]]  ;;  %s949_s9 = int_to_ptr.hbm [resolvable:$true] %s948_s9 }
 0x2ed   : > { %s1232_s12 = scalar_lea.vmem %s2971_s7, 18 [#allocation2]  ;;  %s2415_s29 = sshra.s32 %s949_s9, 4  ;;  %s2416_s29 = int_to_ptr.hbm [resolvable:$true] %s2415_s29 }
 0x2ee   : > { %s2417_s26 = scalar_lea.hbm %s2416_s29, 1  ;;  %p2420_p11 = scmp.lt.s32.totalorder %s2416_s29, %s3412_s4 }
 0x2ef   : > { %p2418_p10 = scmp.ne.s32.totalorder %s2416_s29, %s2417_s26  ;;  %p2421_p12 = scmp.lt.s32.totalorder %s2999_s14, %s2417_s26 }
 0x2f1   : > { %p2422_p13 = por %p2421_p12, %p2420_p11 }
 0x2f3   : > { %p2423_p1 = pnand %p2422_p13, %p2418_p10 }
 0x2f5   : > { %2426 = shalt.err (!%p2423_p1)  }
 0x2f6   : > { %s2427_s11 = sshra.s32 %s951_s10, 4  ;;  %s2428_s11 = int_to_ptr.vmem [resolvable:$true] %s2427_s11 }
 0x2f7   : > { %s2429_s8 = scalar_lea.vmem %s2428_s11, 1  ;;  %p2432_p3 = scmp.lt.s32.totalorder %s2428_s11, [#allocation2] }
 0x2f8   : > { %p2430_p2 = scmp.ne.s32.totalorder %s2428_s11, %s2429_s8  ;;  %p2433_p5 = scmp.lt.s32.totalorder %s3006_s30, %s2429_s8 }
 0x2fa   : > { %p2434_p7 = por %p2433_p5, %p2432_p3 }
 0x2fc   : > { %p2435_p0 = pnand %p2434_p7, %p2430_p2 }
 0x2fe   : > { %2438 = shalt.err (!%p2435_p0)  }
 0x2ff   : > { %953 = dma.hbm_to_vmem [thread:$0]  %s949_s9, 16, %s951_s10, %s2994_s16 }
 0x300   : > { %s3354_s18 = sshll.u32 %s1232_s12, 4  ;;  %s972_s1 = sadd.s32 19, %s2967_s24  ;;  %s969_s18 = int_to_ptr.vmem [resolvable:$true] %s3354_s18 }
 0x301   : > { %s973_s2 = sld [smem:[#allocation4 + %s972_s1]]  ;;  %s1236_s25 = scalar_lea.vmem %s2971_s7, 19 [#allocation2] }
 0x302   : > { %s956_s6 = scalar_lea.hbm %s3412_s4, %s955_s27  ;;  %s3362_s26 = sshll.u32 %s1236_s25, 4  ;;  %s987_s26 = int_to_ptr.vmem [resolvable:$true] %s3362_s26 }
 0x303   : > { %s966_s29 = sshll.u32 %s956_s6, 4  ;;  %s967_s29 = int_to_ptr.hbm [resolvable:$true] %s966_s29 }
 0x304   : > { %s2439_s13 = sshra.s32 %s967_s29, 4  ;;  %s2440_s13 = int_to_ptr.hbm [resolvable:$true] %s2439_s13 }
 0x305   : > { %s2441_s17 = scalar_lea.hbm %s2440_s13, 1  ;;  %p2444_p6 = scmp.lt.s32.totalorder %s2440_s13, %s3412_s4 }
 0x306   : > { %p2442_p4 = scmp.ne.s32.totalorder %s2440_s13, %s2441_s17  ;;  %p2445_p8 = scmp.lt.s32.totalorder %s2999_s14, %s2441_s17 }
 0x308   : > { %p2446_p9 = por %p2445_p8, %p2444_p6 }
 0x30a   : > { %p2447_p10 = pnand %p2446_p9, %p2442_p4 }
 0x30c   : > { %2450 = shalt.err (!%p2447_p10)  }
 0x30d   : > { %s2451_s24 = sshra.s32 %s969_s18, 4  ;;  %s2452_s24 = int_to_ptr.vmem [resolvable:$true] %s2451_s24 }
 0x30e   : > { %s2453_s7 = scalar_lea.vmem %s2452_s24, 1  ;;  %p2456_p12 = scmp.lt.s32.totalorder %s2452_s24, [#allocation2] }
 0x30f   : > { %p2454_p11 = scmp.ne.s32.totalorder %s2452_s24, %s2453_s7  ;;  %p2457_p13 = scmp.lt.s32.totalorder %s3006_s30, %s2453_s7 }
 0x311   : > { %p2458_p1 = por %p2457_p13, %p2456_p12 }
 0x313   : > { %p2459_p2 = pnand %p2458_p1, %p2454_p11 }
 0x315   : > { %2462 = shalt.err (!%p2459_p2)  }
 0x316   : > { %971 = dma.hbm_to_vmem [thread:$0]  %s967_s29, 16, %s969_s18, %s2994_s16 }
 0x317   : > { %s974_s11 = scalar_lea.hbm %s3412_s4, %s973_s2 }
 0x318   : > { %s984_s8 = sshll.u32 %s974_s11, 4  ;;  %s985_s8 = int_to_ptr.hbm [resolvable:$true] %s984_s8 }
 0x319   : > { %s2463_s1 = sshra.s32 %s985_s8, 4  ;;  %s2464_s1 = int_to_ptr.hbm [resolvable:$true] %s2463_s1 }
 0x31a   : > { %s2465_s25 = scalar_lea.hbm %s2464_s1, 1  ;;  %p2468_p5 = scmp.lt.s32.totalorder %s2464_s1, %s3412_s4 }
 0x31b   : > { %p2466_p3 = scmp.ne.s32.totalorder %s2464_s1, %s2465_s25  ;;  %p2469_p7 = scmp.lt.s32.totalorder %s2999_s14, %s2465_s25 }
 0x31d   : > { %p2470_p0 = por %p2469_p7, %p2468_p5 }
 0x31f   : > { %p2471_p4 = pnand %p2470_p0, %p2466_p3 }
 0x321   : > { %2474 = shalt.err (!%p2471_p4)  }
 0x322   : > { %s2475_s18 = sshra.s32 %s987_s26, 4  ;;  %s2476_s18 = int_to_ptr.vmem [resolvable:$true] %s2475_s18 }
 0x323   : > { %s2477_s6 = scalar_lea.vmem %s2476_s18, 1  ;;  %p2480_p8 = scmp.lt.s32.totalorder %s2476_s18, [#allocation2] }
 0x324   : > { %p2478_p6 = scmp.ne.s32.totalorder %s2476_s18, %s2477_s6  ;;  %p2481_p9 = scmp.lt.s32.totalorder %s3006_s30, %s2477_s6 }
 0x326   : > { %p2482_p10 = por %p2481_p9, %p2480_p8 }
 0x328   : > { %p2483_p11 = pnand %p2482_p10, %p2478_p6 }
 0x32a   : > { %2486 = shalt.err (!%p2483_p11)  }
 0x32b   : > { %989 = dma.hbm_to_vmem [thread:$0]  %s985_s8, 16, %s987_s26, %s2994_s16 }
 0x32c PF: > { %s990_s2 = scalar_lea.sflag [#allocation3], %s3446_s15 }
 0x32d   : > { %2529 = dma.done.wait %s990_s2, 320 }
 0x32e   : > { %2530 = vsyncadd %s990_s2, 4294966976  ;;  %s994_s14 = smul.u32 24, %s3446_s15  ;;  %v999_v4 = vld [vmem:[%s2738_s28] sm:$0xff]  ;;  %vm1000_vm0 = vcmask 195584   ;;  %s3436_s16 = scalar_lea.vmem [#allocation11], %s2734_s21  ;;  %vm1026_vm1 = vcmask 1040384  }
 0x32f   : > { %v1024_v5 = vld [vmem:[%s3436_s16] sm:$0x1]  ;;  %s3437_s28 = scalar_lea.vmem [#allocation9], %s2734_s21  ;;  %s1323_s15 = sshll.u32 %s2668_s23, 7 }
 0x330   : > { %s995_s29 = scalar_lea.vmem [#allocation2], %s994_s14  ;;  %v1051_v25 = vld [vmem:[%s3437_s28] sm:$0x1]  ;;  %s1072_s21 = sshll.u32 %s3413_s5, 4  ;;  %s1073_s21 = int_to_ptr.vmem [resolvable:$true] %s1072_s21 }
 0x331   : > { %v998_v1 = vld [vmem:[%s995_s29 + $0x10] sm:$0xff]  ;;  %v997_v2 = vld [vmem:[%s995_s29 + $0x8] sm:$0xff]  ;;  %v996_v3 = vld [vmem:[%s995_s29] sm:$0xff]  ;;  %p1363_p12 = scmp.eq.s32.totalorder %s2668_s23, 7  ;;  %s1064_s17 = scalar_lea.smem [#allocation12], %s1323_s15 }
 0x332   : > { %1017 = vmatpush.msra.mxu0 %v998_v1  ;;  %s2574_s10 = smov [#allocation12]  }
 0x334   : > { %1018 = vmatpush.msra.mxu0 %v997_v2 }
 0x336   : > { %1019 = vmatpush.msra.mxu0 %v996_v3 }
 0x337   : > { %1322 = vmatmul.msk.f32.vlgmr.msra.gmra.mxu0 %vm1000_vm0, %v999_v4 }
 0x3b4   : > { %v1021_v6 = vpop.f32.mrf.mxu0 }
 0x3b5   : > { %v1025_v7 = vadd.f32 %v1024_v5, %v1021_v6 }
 0x3b7   : > { %v1027_v8 = vsel %vm1026_vm1, %v1025_v7, inf  ;;  %v1030_v9 = vsel %vm1026_vm1, %v1025_v7, -inf }
 0x3b8   : > { %1028 = vmin.xlane.f32.xlu0 %v1027_v8 }
 0x3c0   : > { %1031 = vmax.xlane.f32.xlu0 %v1030_v9 }
 0x42b   : > { %v1029_v10 = vpop.xlane.xlu0 %1028 }
 0x42c   : > { %v1033_v21 = vsub.f32 %v1025_v7, %v1029_v10 }
 0x433   : > { %v1032_v11 = vpop.xlane.xlu0 %1031 }
 0x434   : > { %v1034_v12 = vsub.f32 %v1032_v11, %v1029_v10 }
 0x436   : > { %1420 = vrcp.f32 %v1034_v12  ;;  %v1046_v16 = vand.u32 2147483648, %v1034_v12  ;;  %v1044_v18 = vand.u32 2147483647, %v1034_v12  ;;  %vm1040_vm3 = vweird.f32 %v1034_v12 }
 0x438   : > { %v1047_v20 = vor.u32 1.1754944e-38, %v1046_v16  ;;  %vm1045_vm5 = vcmp.eq.f32.partialorder %v1044_v18, 8.507059e+37 }
 0x43c   : > { %v1421_v13 = vpop.eup %1420 }
 0x43d   : > { %v1036_v14 = vmul.f32 %v1421_v13, %v1034_v12  ;;  %vm1041_vm2 = vweird.f32 %v1421_v13 }
 0x43e   : > { %vm1042_vm4 = vmor %vm1040_vm3, %vm1041_vm2 }
 0x43f   : > { %v1037_v15 = vsub.f32 1.0, %v1036_v14 }
 0x441   : > { %v1038_v17 = vmul.f32 %v1421_v13, %v1037_v15 }
 0x443   : > { %v1039_v19 = vadd.f32 %v1421_v13, %v1038_v17 }
 0x445   : > { %v1043_v22 = vsel %vm1042_vm4, %v1421_v13, %v1039_v19 }
 0x446   : > { %v1048_v23 = vsel %vm1045_vm5, %v1047_v20, %v1043_v22 }
 0x447   : > { %v1049_v24 = vmul.f32 %v1048_v23, %v1033_v21 }
 0x449   : > { %v1050_v26 = vsub.f32 1.0, %v1049_v24 }
 0x44b   : > { %v1052_v27 = vmul.f32 %v1051_v25, %v1050_v26 }
 0x44d   : > { %v1053_v28 = vsel %vm1026_vm1, %v1052_v27, 0.0 }
 0x44e   : > { %1054 = vadd.xlane.f32.xlu1 %v1053_v28 }
 0x4c1   : > { %v1055_v29 = vpop.xlane.xlu1 %1054 }
 0x4c2   : > { %v1056_v30 = vrot.slane %v1055_v29, 4 }
 0x4c4   : > { %v1057_v31 = vadd.f32 %v1056_v30, %v1055_v29 }
 0x4c6   : > { %v1058_v32 = vrot.slane %v1057_v31, 2 }
 0x4c8   : > { %v1059_v33 = vadd.f32 %v1058_v32, %v1057_v31 }
 0x4ca   : > { %v1060_v34 = vrot.slane %v1059_v33, 1 }
 0x4cc   : > { %v1061_v35 = vadd.f32 %v1060_v34, %v1059_v33 }
 0x4ce   : > { %1330 = vpush %v1061_v35 }
 0x4ff   : > { %s1331_s13 = spop %1330 }
 0x500   : > { %1065 = sst [smem:[%s1064_s17]] %s1331_s13 }
 0x501   : > { %1343 = dma.smem_to_vmem (%p1363_p12), %s2574_s10, 128, %s1073_s21, [#allocation7]  }
 0x502   : > { %2532 = dma.done.wait (%p1363_p12), [#allocation7], 128  }
 0x503   : > { %2534 = vsyncadd (%p1363_p12), [#allocation7], 4294967168 }
 0x504   : > { %1081 = sfence }
 0x505 PF: > { %s3438_s9 = sld [smem:[#allocation100_spill]]  ;;  %p20_p13 = scmp.ge.s32.totalorder %s2626_s22, 10  }
 0x506   : > { %s3439_s18 = smov %s2541_s19  ;;  %s3440_s19 = smov %s2545_s20 }
 0x507   : > { %s3442_s21 = smov %s2626_s22  ;;  %22 = sbr.rel (!%p20_p13) target bundleno = 12 (0xc), region = 355 }
 0x50b   : > { %s3441_s20 = smov %s3438_s9 }
 0x50c   :  { %1087 = vsyncpa [#allocation5], 1 }
 0x50d   :  { %1089 = vsyncpa [#allocation5 + $0x1], 1 }
 0x50e   :  { %1090 = vsyncpa [#allocation10], 1 }
 0x50f   :  { %1092 = vsyncpa [#allocation10 + $0x1], 1 }
 0x510   :  { %1093 = vsyncpa [#allocation6], 1 }
 0x511   :  { %1095 = vsyncpa [#allocation6 + $0x1], 1 }
 0x512   :  { %1096 = vsyncpa [#allocation7], 1 }
 0x513   :  { %1098 = vsyncpa [#allocation7 + $0x1], 1 }
 0x514   :  { %1099 = vsyncmov [#allocation3] }
 0x517   :  { %s1100_s23 = vpop.sfrf %1099 }
 0x518   :  { %p1328_p1 = scmp.ne.s32.totalorder %s1100_s23, 0 }
 0x51a   :  { %1104 = shalt.err (%p1328_p1)  }
 0x51b   :  { %1106 = vsyncmov [#allocation3 + $0x1] }
 0x51e   :  { %s1107_s24 = vpop.sfrf %1106 }
 0x51f   :  { %p1329_p2 = scmp.ne.s32.totalorder %s1107_s24, 0 }
 0x521   :  { %1111 = shalt.err (%p1329_p2)  }

</bundles_post_ra>
